<compile_context>
chip_gen: v7x
topology: tpu7x:2x2x1
jax: 0.10.0
libtpu: 0.0.40
codegen_flags: <defaults>
</compile_context>

<pallas_src>
import jax
import jax.numpy as jnp
from jax.experimental import pallas as pl
from jax.experimental.pallas import tpu as pltpu

MiB = 1024 * 1024


# ---------------------------------------------------------------------------
# Kernels
# ---------------------------------------------------------------------------
def expert_kernel_resident(x_ref, w1_ref, b1_ref, w2_ref, b2_ref, o_ref):
    """Both weight matrices VMEM-resident; single grid axis over row tiles."""
    xb = x_ref[...].astype(jnp.bfloat16)                 # in-kernel cast
    # fc1: [tm, In]bf16 @ [In, H]bf16 -> f32 on the MXU
    h = jnp.dot(xb, w1_ref[...], preferred_element_type=jnp.float32)
    # bias (f32) + ReLU on the VPU; dropout (eval) == identity
    h = jnp.maximum(h + b1_ref[...], 0.0)
    # fc2: [tm, H]bf16 @ [H, Out]bf16 -> f32
    out = jnp.dot(h.astype(w2_ref.dtype), w2_ref[...],
                  preferred_element_type=jnp.float32)
    o_ref[...] = (out + b2_ref[...]).astype(o_ref.dtype)


def expert_kernel_htiled(x_ref, w1_ref, b1_ref, w2_ref, b2_ref, o_ref, acc_ref):
    """Hidden dim tiled (fc2 reduction axis, last in grid); f32 scratch acc.

    ReLU per H-slice is exact: fc1's reduction (over In) is not tiled, so each
    hidden element is fully formed within its slice; fc2 sums slice partials.
    """
    hk = pl.program_id(1)

    @pl.when(hk == 0)
    def _init():
        acc_ref[...] = jnp.zeros_like(acc_ref)

    xb = x_ref[...].astype(jnp.bfloat16)
    h = jnp.dot(xb, w1_ref[...], preferred_element_type=jnp.float32)
    h = jnp.maximum(h + b1_ref[...], 0.0)
    acc_ref[...] += jnp.dot(h.astype(w2_ref.dtype), w2_ref[...],
                            preferred_element_type=jnp.float32)

    @pl.when(hk == pl.num_programs(1) - 1)
    def _finalize():
        o_ref[...] = (acc_ref[...] + b2_ref[...]).astype(o_ref.dtype)


# ---------------------------------------------------------------------------
# Wrapper
# ---------------------------------------------------------------------------
def expert_forward(x, w1, b1, w2, b2, *, block_m=512, block_h=None,
                   out_dtype=jnp.float32,
                   weight_vmem_budget_bytes=40 * MiB):
    """Expert forward pass.

    x:  [B, In]   (any float dtype; cast to bf16 inside the kernel)
    w1: [In, H]   (pre-transposed vs. torch's [out, in]; ideally stored bf16)
    b1: [H]
    w2: [H, Out]
    b2: [Out]
    Returns [B, Out] in `out_dtype` (f32 accumulation internally).
    """
    B, In = x.shape
    H = w1.shape[1]
    Out = w2.shape[1]

    # bf16 weights for the MXU (no-op if already stored bf16), f32 biases.
    w1b = w1 if w1.dtype == jnp.bfloat16 else w1.astype(jnp.bfloat16)
    w2b = w2 if w2.dtype == jnp.bfloat16 else w2.astype(jnp.bfloat16)
    b1_2d = b1.astype(jnp.float32).reshape(1, H)
    b2_2d = b2.astype(jnp.float32).reshape(1, Out)

    # Row tile: whole batch if small, else block_m.  Partial last tile is
    # masked by Pallas -> no padding / slicing HBM passes.
    if B <= block_m:
        tm = B
    else:
        assert block_m % 16 == 0, "block_m must be a multiple of 16"
        tm = block_m
    m_steps = pl.cdiv(B, tm)

    # Megacore: only shard the batch axis when there's enough work per TC
    # to amortize each core DMA'ing its own copy of the resident weights.
    batch_sem = "parallel" if m_steps >= 16 else "arbitrary"

    x_bytes = jnp.dtype(x.dtype).itemsize
    out_bytes = jnp.dtype(out_dtype).itemsize
    weight_bytes = (In * H + H * Out) * 2                    # bf16 resident

    resident = (block_h is None) and (weight_bytes <= weight_vmem_budget_bytes)

    def _clamp_budget(b):
        # Lower clamp for compiler slack; upper clamp keeps us sane everywhere
        # (v5e/v6e: 128 MiB physical; v7x: 64 MiB -- the weight budget / H-tiled
        # path keeps the resident footprint well below that there).
        return int(min(max(b, 16 * MiB), 96 * MiB))

    if resident:
        def _call(single_buffer_weights):
            wmode = ({"pipeline_mode": pl.Buffered(1)}
                     if single_buffer_weights else {})
            w_bufs = 1 if single_buffer_weights else 2
            vmem_budget = _clamp_budget(
                w_bufs * weight_bytes
                + 2 * (H + Out) * 4            # biases
                + 2 * tm * In * x_bytes        # double-buffered x tiles
                + 2 * tm * Out * out_bytes     # double-buffered out tiles
                + tm * H * 4                   # f32 hidden intermediate
                + 4 * MiB)                     # headroom
            return pl.pallas_call(
                expert_kernel_resident,
                out_shape=jax.ShapeDtypeStruct((B, Out), out_dtype),
                grid=(m_steps,),
                in_specs=[
                    # activations: streamed, one row tile per grid step
                    pl.BlockSpec((tm, In), lambda i: (i, 0)),
                    # weights/biases: constant index_map -> DMA'd once, resident
                    pl.BlockSpec((In, H), lambda i: (0, 0), **wmode),
                    pl.BlockSpec((1, H), lambda i: (0, 0), **wmode),
                    pl.BlockSpec((H, Out), lambda i: (0, 0), **wmode),
                    pl.BlockSpec((1, Out), lambda i: (0, 0), **wmode),
                ],
                out_specs=pl.BlockSpec((tm, Out), lambda i: (i, 0)),
                compiler_params=pltpu.CompilerParams(
                    dimension_semantics=(batch_sem,),
                    vmem_limit_bytes=vmem_budget),
            )(x, w1b, b1_2d, w2b, b2_2d)

        try:
            return _call(single_buffer_weights=True)
        except Exception:
            # Older Pallas without Buffered(1) support: default buffering.
            return _call(single_buffer_weights=False)

    # ------------------------------------------------------------------
    # Large-expert fallback: stream H-slices of w1/w2, accumulate fc2 in f32.
    # ------------------------------------------------------------------
    if block_h is not None:
        th = block_h
    else:
        th = next((c for c in (1024, 512, 256, 128) if H % c == 0), H)
        # TODO(synk): zero-pad H to a multiple of 128 for ragged hidden sizes.
    assert H % th == 0, "block_h must divide the hidden size"
    h_steps = H // th

    vmem_budget = _clamp_budget(
        2 * (In * th + th * Out) * 2       # double-buffered w1/w2 H-slices
        + 2 * (th + Out) * 4               # bias slices
        + 2 * tm * In * x_bytes
        + 2 * tm * Out * out_bytes
        + tm * Out * 4                     # f32 accumulator scratch
        + tm * th * 4                      # f32 hidden slice
        + 4 * MiB)

    return pl.pallas_call(
        expert_kernel_htiled,
        out_shape=jax.ShapeDtypeStruct((B, Out), out_dtype),
        grid=(m_steps, h_steps),           # reduction axis last
        in_specs=[
            pl.BlockSpec((tm, In), lambda i, k: (i, 0)),
            pl.BlockSpec((In, th), lambda i, k: (0, k)),
            pl.BlockSpec((1, th), lambda i, k: (0, k)),
            pl.BlockSpec((th, Out), lambda i, k: (k, 0)),
            pl.BlockSpec((1, Out), lambda i, k: (0, 0)),
        ],
        out_specs=pl.BlockSpec((tm, Out), lambda i, k: (i, 0)),
        scratch_shapes=[pltpu.VMEM((tm, Out), jnp.float32)],
        compiler_params=pltpu.CompilerParams(
            dimension_semantics=(batch_sem, "arbitrary"),
            vmem_limit_bytes=vmem_budget),
    )(x, w1b, b1_2d, w2b, b2_2d)


# ---------------------------------------------------------------------------
# Params / reference
# ---------------------------------------------------------------------------
def make_params(key, input_size, hidden_size, output_size):
    """nn.Linear-style init; weights stored transposed ([in, out]) and cast to
    bf16 ONCE here (hoisted out of the per-call path), biases kept f32."""
    k1, k2, k3, k4 = jax.random.split(key, 4)
    lim1 = 1.0 / (input_size ** 0.5)
    lim2 = 1.0 / (hidden_size ** 0.5)
    w1 = jax.random.uniform(k1, (input_size, hidden_size), jnp.float32, -lim1, lim1)
    b1 = jax.random.uniform(k2, (hidden_size,), jnp.float32, -lim1, lim1)
    w2 = jax.random.uniform(k3, (hidden_size, output_size), jnp.float32, -lim2, lim2)
    b2 = jax.random.uniform(k4, (output_size,), jnp.float32, -lim2, lim2)
    return w1.astype(jnp.bfloat16), b1, w2.astype(jnp.bfloat16), b2


def expert_ref(x, w1, b1, w2, b2):
    """Pure-JAX reference with the same bf16-operand / f32-accumulate path
    (eval-mode dropout == identity)."""
    xb = x.astype(jnp.bfloat16)
    w1b = w1.astype(jnp.bfloat16)
    w2b = w2.astype(jnp.bfloat16)
    h = jnp.maximum(
        jnp.dot(xb, w1b, preferred_element_type=jnp.float32)
        + b1.astype(jnp.float32), 0.0)
    return (jnp.dot(h.astype(jnp.bfloat16), w2b,
                    preferred_element_type=jnp.float32)
            + b2.astype(jnp.float32))


if __name__ == "__main__":
    key = jax.random.PRNGKey(0)
    kx, kp = jax.random.split(key)

    # 256-aligned feature dims (full MXU width on v6e/v7x; v5e unaffected).
    # B=384 is NOT a multiple of the 256-row tile -> exercises the masked
    # partial last tile (no padding / slicing in the wrapper).
    batch, input_size, hidden_size, output_size = 384, 256, 512, 256

    x = jax.random.normal(kx, (batch, input_size), jnp.float32)
    w1, b1, w2, b2 = make_params(kp, input_size, hidden_size, output_size)
    ref = expert_ref(x, w1, b1, w2, b2)

    # Path 1: resident-weight kernel (multi-step grid + partial last tile).
    out_res = expert_forward(x, w1, b1, w2, b2, block_m=256)
    out_res = jax.block_until_ready(out_res)
    assert out_res.shape == (batch, output_size)
    assert out_res.dtype == jnp.float32
    assert jnp.allclose(out_res, ref, atol=2e-2, rtol=2e-2)

    # Path 2: large-expert fallback (H tiled as a reduction axis), forced via
    # block_h so the f32 scratch-accumulator path is exercised too.
    out_ht = expert_forward(x, w1, b1, w2, b2, block_m=256, block_h=128)
    out_ht = jax.block_until_ready(out_ht)
    assert out_ht.shape == (batch, output_size)
    assert jnp.allclose(out_ht, ref, atol=2e-2, rtol=2e-2)

    print("KERNEL_OK")
</pallas_src>

<mosaic_0001>
module attributes {stable_mosaic.version = 11 : i64} {
  func.func @expert_kernel_resident(%arg0: i32, %arg1: memref<256x256xf32, #tpu.memory_space<vmem>>, %arg2: memref<256x512xbf16, #tpu.memory_space<vmem>>, %arg3: memref<1x512xf32, #tpu.memory_space<vmem>>, %arg4: memref<512x256xbf16, #tpu.memory_space<vmem>>, %arg5: memref<1x256xf32, #tpu.memory_space<vmem>>, %arg6: memref<256x256xf32, #tpu.memory_space<vmem>>) attributes {dimension_semantics = [#tpu.dimension_semantics<arbitrary>], iteration_bounds = array<i64: 2>, scalar_prefetch = 0 : i64, scratch_operands = 0 : i64, tpu.core_type = #tpu.core_type<tc>, window_params = [{transform_indices = @transform_0, window_bounds = array<i64: 256, 256>}, {pipeline_mode = #tpu.pipeline_mode<synchronous>, transform_indices = @transform_1, window_bounds = array<i64: 256, 512>}, {pipeline_mode = #tpu.pipeline_mode<synchronous>, transform_indices = @transform_2, window_bounds = array<i64: 1, 512>}, {pipeline_mode = #tpu.pipeline_mode<synchronous>, transform_indices = @transform_3, window_bounds = array<i64: 512, 256>}, {pipeline_mode = #tpu.pipeline_mode<synchronous>, transform_indices = @transform_4, window_bounds = array<i64: 1, 256>}, {transform_indices = @transform_5, window_bounds = array<i64: 256, 256>}]} {
    %c0 = arith.constant 0 : index
    %c0_0 = arith.constant 0 : index
    %0 = vector.load %arg1[%c0, %c0_0] : memref<256x256xf32, #tpu.memory_space<vmem>>, vector<256x256xf32>
    %1 = arith.truncf %0 : vector<256x256xf32> to vector<256x256xbf16>
    %c0_1 = arith.constant 0 : index
    %c0_2 = arith.constant 0 : index
    %2 = vector.load %arg2[%c0_1, %c0_2] : memref<256x512xbf16, #tpu.memory_space<vmem>>, vector<256x512xbf16>
    %cst = arith.constant dense<0.000000e+00> : vector<256x512xf32>
    %3 = tpu.matmul %1, %2, %cst {dimension_numbers = #tpu.dot_dimension_numbers<[1], [0], [0], [1], [0, 0, 1, 1], [], []>} : vector<256x256xbf16>, vector<256x512xbf16>, vector<256x512xf32> -> vector<256x512xf32>
    %c0_3 = arith.constant 0 : index
    %c0_4 = arith.constant 0 : index
    %4 = vector.load %arg3[%c0_3, %c0_4] : memref<1x512xf32, #tpu.memory_space<vmem>>, vector<1x512xf32>
    %5 = vector.broadcast %4 : vector<1x512xf32> to vector<256x512xf32>
    %6 = arith.addf %3, %5 : vector<256x512xf32>
    %cst_5 = arith.constant 0.000000e+00 : f32
    %7 = vector.broadcast %cst_5 : f32 to vector<256x512xf32>
    %8 = arith.maximumf %6, %7 : vector<256x512xf32>
    %9 = arith.truncf %8 : vector<256x512xf32> to vector<256x512xbf16>
    %c0_6 = arith.constant 0 : index
    %c0_7 = arith.constant 0 : index
    %10 = vector.load %arg4[%c0_6, %c0_7] : memref<512x256xbf16, #tpu.memory_space<vmem>>, vector<512x256xbf16>
    %cst_8 = arith.constant dense<0.000000e+00> : vector<256x256xf32>
    %11 = tpu.matmul %9, %10, %cst_8 {dimension_numbers = #tpu.dot_dimension_numbers<[1], [0], [0], [1], [0, 0, 1, 1], [], []>} : vector<256x512xbf16>, vector<512x256xbf16>, vector<256x256xf32> -> vector<256x256xf32>
    %c0_9 = arith.constant 0 : index
    %c0_10 = arith.constant 0 : index
    %12 = vector.load %arg5[%c0_9, %c0_10] : memref<1x256xf32, #tpu.memory_space<vmem>>, vector<1x256xf32>
    %13 = vector.broadcast %12 : vector<1x256xf32> to vector<256x256xf32>
    %14 = arith.addf %11, %13 : vector<256x256xf32>
    %c0_11 = arith.constant 0 : index
    %c0_12 = arith.constant 0 : index
    %15 = vector.load %arg6[%c0_11, %c0_12] : memref<256x256xf32, #tpu.memory_space<vmem>>, vector<256x256xf32>
    tpu.vector_store %arg6[%c0_11, %c0_12], %14 {strides = array<i32>} : memref<256x256xf32, #tpu.memory_space<vmem>>, vector<256x256xf32>,
    return
  }
  func.func @transform_0(%arg0: i32) -> (i32, i32) {
    %c0_i32 = arith.constant 0 : i32
    %c0_i32_0 = arith.constant 0 : i32
    return %arg0, %c0_i32 : i32, i32
  }
  func.func @transform_1(%arg0: i32) -> (i32, i32) {
    %c0_i32 = arith.constant 0 : i32
    %c0_i32_0 = arith.constant 0 : i32
    %c0_i32_1 = arith.constant 0 : i32
    return %c0_i32, %c0_i32_0 : i32, i32
  }
  func.func @transform_2(%arg0: i32) -> (i32, i32) {
    %c0_i32 = arith.constant 0 : i32
    %c0_i32_0 = arith.constant 0 : i32
    %c0_i32_1 = arith.constant 0 : i32
    return %c0_i32, %c0_i32_0 : i32, i32
  }
  func.func @transform_3(%arg0: i32) -> (i32, i32) {
    %c0_i32 = arith.constant 0 : i32
    %c0_i32_0 = arith.constant 0 : i32
    %c0_i32_1 = arith.constant 0 : i32
    return %c0_i32, %c0_i32_0 : i32, i32
  }
  func.func @transform_4(%arg0: i32) -> (i32, i32) {
    %c0_i32 = arith.constant 0 : i32
    %c0_i32_0 = arith.constant 0 : i32
    %c0_i32_1 = arith.constant 0 : i32
    return %c0_i32, %c0_i32_0 : i32, i32
  }
  func.func @transform_5(%arg0: i32) -> (i32, i32) {
    %c0_i32 = arith.constant 0 : i32
    %c0_i32_0 = arith.constant 0 : i32
    return %arg0, %c0_i32 : i32, i32
  }
}

module attributes {stable_mosaic.version = 11 : i64} {
  func.func @expert_kernel_resident(%arg0: i32, %arg1: memref<256x256xf32, #tpu.memory_space<vmem>>, %arg2: memref<256x512xbf16, #tpu.memory_space<vmem>>, %arg3: memref<1x512xf32, #tpu.memory_space<vmem>>, %arg4: memref<512x256xbf16, #tpu.memory_space<vmem>>, %arg5: memref<1x256xf32, #tpu.memory_space<vmem>>, %arg6: memref<256x256xf32, #tpu.memory_space<vmem>>) attributes {dimension_semantics = [#tpu.dimension_semantics<arbitrary>], iteration_bounds = array<i64: 2>, scalar_prefetch = 0 : i64, scratch_operands = 0 : i64, tpu.core_type = #tpu.core_type<tc>, window_params = [{transform_indices = @transform_0, window_bounds = array<i64: 256, 256>}, {pipeline_mode = #tpu.pipeline_mode<synchronous>, transform_indices = @transform_1, window_bounds = array<i64: 256, 512>}, {pipeline_mode = #tpu.pipeline_mode<synchronous>, transform_indices = @transform_2, window_bounds = array<i64: 1, 512>}, {pipeline_mode = #tpu.pipeline_mode<synchronous>, transform_indices = @transform_3, window_bounds = array<i64: 512, 256>}, {pipeline_mode = #tpu.pipeline_mode<synchronous>, transform_indices = @transform_4, window_bounds = array<i64: 1, 256>}, {transform_indices = @transform_5, window_bounds = array<i64: 256, 256>}]} {
    %c0 = arith.constant 0 : index
    %c0_0 = arith.constant 0 : index
    %0 = vector.load %arg1[%c0, %c0_0] : memref<256x256xf32, #tpu.memory_space<vmem>>, vector<256x256xf32>
    %1 = arith.truncf %0 : vector<256x256xf32> to vector<256x256xbf16>
    %c0_1 = arith.constant 0 : index
    %c0_2 = arith.constant 0 : index
    %2 = vector.load %arg2[%c0_1, %c0_2] : memref<256x512xbf16, #tpu.memory_space<vmem>>, vector<256x512xbf16>
    %cst = arith.constant dense<0.000000e+00> : vector<256x512xf32>
    %3 = tpu.matmul %1, %2, %cst {dimension_numbers = #tpu.dot_dimension_numbers<[1], [0], [0], [1], [0, 0, 1, 1], [], []>} : vector<256x256xbf16>, vector<256x512xbf16>, vector<256x512xf32> -> vector<256x512xf32>
    %c0_3 = arith.constant 0 : index
    %c0_4 = arith.constant 0 : index
    %4 = vector.load %arg3[%c0_3, %c0_4] : memref<1x512xf32, #tpu.memory_space<vmem>>, vector<1x512xf32>
    %5 = vector.broadcast %4 : vector<1x512xf32> to vector<256x512xf32>
    %6 = arith.addf %3, %5 : vector<256x512xf32>
    %cst_5 = arith.constant 0.000000e+00 : f32
    %7 = vector.broadcast %cst_5 : f32 to vector<256x512xf32>
    %8 = arith.maximumf %6, %7 : vector<256x512xf32>
    %9 = arith.truncf %8 : vector<256x512xf32> to vector<256x512xbf16>
    %c0_6 = arith.constant 0 : index
    %c0_7 = arith.constant 0 : index
    %10 = vector.load %arg4[%c0_6, %c0_7] : memref<512x256xbf16, #tpu.memory_space<vmem>>, vector<512x256xbf16>
    %cst_8 = arith.constant dense<0.000000e+00> : vector<256x256xf32>
    %11 = tpu.matmul %9, %10, %cst_8 {dimension_numbers = #tpu.dot_dimension_numbers<[1], [0], [0], [1], [0, 0, 1, 1], [], []>} : vector<256x512xbf16>, vector<512x256xbf16>, vector<256x256xf32> -> vector<256x256xf32>
    %c0_9 = arith.constant 0 : index
    %c0_10 = arith.constant 0 : index
    %12 = vector.load %arg5[%c0_9, %c0_10] : memref<1x256xf32, #tpu.memory_space<vmem>>, vector<1x256xf32>
    %13 = vector.broadcast %12 : vector<1x256xf32> to vector<256x256xf32>
    %14 = arith.addf %11, %13 : vector<256x256xf32>
    %c0_11 = arith.constant 0 : index
    %c0_12 = arith.constant 0 : index
    %15 = vector.load %arg6[%c0_11, %c0_12] : memref<256x256xf32, #tpu.memory_space<vmem>>, vector<256x256xf32>
    tpu.vector_store %arg6[%c0_11, %c0_12], %14 {strides = array<i32>} : memref<256x256xf32, #tpu.memory_space<vmem>>, vector<256x256xf32>,
    return
  }
  func.func @transform_0(%arg0: i32) -> (i32, i32) {
    %c0_i32 = arith.constant 0 : i32
    %c0_i32_0 = arith.constant 0 : i32
    return %arg0, %c0_i32 : i32, i32
  }
  func.func @transform_1(%arg0: i32) -> (i32, i32) {
    %c0_i32 = arith.constant 0 : i32
    %c0_i32_0 = arith.constant 0 : i32
    %c0_i32_1 = arith.constant 0 : i32
    return %c0_i32, %c0_i32_0 : i32, i32
  }
  func.func @transform_2(%arg0: i32) -> (i32, i32) {
    %c0_i32 = arith.constant 0 : i32
    %c0_i32_0 = arith.constant 0 : i32
    %c0_i32_1 = arith.constant 0 : i32
    return %c0_i32, %c0_i32_0 : i32, i32
  }
  func.func @transform_3(%arg0: i32) -> (i32, i32) {
    %c0_i32 = arith.constant 0 : i32
    %c0_i32_0 = arith.constant 0 : i32
    %c0_i32_1 = arith.constant 0 : i32
    return %c0_i32, %c0_i32_0 : i32, i32
  }
  func.func @transform_4(%arg0: i32) -> (i32, i32) {
    %c0_i32 = arith.constant 0 : i32
    %c0_i32_0 = arith.constant 0 : i32
    %c0_i32_1 = arith.constant 0 : i32
    return %c0_i32, %c0_i32_0 : i32, i32
  }
  func.func @transform_5(%arg0: i32) -> (i32, i32) {
    %c0_i32 = arith.constant 0 : i32
    %c0_i32_0 = arith.constant 0 : i32
    return %arg0, %c0_i32 : i32, i32
  }
}

</mosaic_0001>

<bundles_post_ra>
// kernel: tpu_custom_call.1
= control target key start
LH: loop header
LB: loop body
LE: loop exit
PB: predicated region body
PF: predicated region fallthrough
CT: control target
= control target key end

     0   :  { %10 = vsyncpa [#allocation3], 0  ;;  %s3822_s0 = inlined_call_operand.hbm [shape: f32[384,256], index: 0, kind: input, shape index: {}]   ;;  %s3823_s1 = inlined_call_operand.hbm [shape: bf16[256,512], index: 1, kind: input, shape index: {}]   ;;  %s3824_s2 = inlined_call_operand.vmem [shape: f32[1,512], index: 2, kind: input, shape index: {}]   ;;  %s3825_s3 = inlined_call_operand.hbm [shape: bf16[512,256], index: 3, kind: input, shape index: {}]   ;;  %s3826_s4 = inlined_call_operand.vmem [shape: f32[1,256], index: 4, kind: input, shape index: {}]   ;;  %s3827_s5 = inlined_call_operand.hbm [shape: f32[384,256], index: 5, kind: output, shape index: {}]  }
   0x1   :  { %12 = vsyncpa [#allocation3 + $0x1], 0 }
   0x2   :  { %13 = vsyncpa [#allocation6], 0 }
   0x3   :  { %14 = vsyncpa [#allocation4], 0 }
   0x4   :  { %16 = vsyncpa [#allocation4 + $0x1], 0  ;;  %s3082_s18 = smov 0   ;;  %s3084_s19 = smov 0  }
   0x5   :  { %s3086_s20 = smov 0   ;;  %s3088_s21 = smov 0  }
   0x6 LB: > { %s3103_s22 = sadd.s32 4294967295, %s3038_s21   ;;  %s2332_s23 = sadd.s32 4294967294, %s3038_s21   ;;  %s3038_s21 = sphi %s3088_s21, %s3849_s21   ;;  %s3034_s20 = sphi %s3086_s20, %s3848_s20   ;;  %s3030_s19 = sphi %s3084_s19, %s3847_s19   ;;  %s3026_s18 = sphi %s3082_s18, %s3846_s18  }
   0x7   : > { %s3107_s24 = sadd.s32 1, %s3038_s21   ;;  %s29_s25 = sadd.s32 1, %s3034_s20 }
   0x8   : > { %s26_s26 = ssub.s32 %s3038_s21, %s3107_s24  ;;  %p36_p0 = scmp.ne.s32.totalorder %s3034_s20, %s3030_s19 }
   0x9   : > { %p27_p1 = scmp.eq.s32.totalorder %s26_s26, 0  ;;  %p37_p2 = scmp.eq.s32.totalorder %s3038_s21, 0 }
   0xa   : > { %p42_p3 = scmp.ne.s32.totalorder %s3030_s19, %s3026_s18  ;;  %p3828_p4 = scmp.eq.s32.totalorder %s3103_s22, 0 }
   0xb   : > { %s3119_s27 = scalar_select %p27_p1, %s3034_s20, %s29_s25  }
   0xc   : > { %p3121_p5 = por %p37_p2, %p36_p0  ;;  %p3127_p6 = por %p3828_p4, %p42_p3 }
   0xd   : > { %3831 = sst [smem:[#allocation12_spill]] %s3119_s27  ;;  %p150_p7 = scmp.eq.s32.totalorder %s3103_s22, 1 }
   0xe   : > { %s3832_s28 = scalar_select %p3121_p5, 1, 0 }
   0xf   : > { %s3833_s29 = scalar_select %p3127_p6, 1, 0 }
  0x10   : > { %p156_p8 = scmp.eq.s32.totalorder %s2332_s23, 1  ;;  %p2333_p9 = scmp.ge.s32.totalorder %s3038_s21, 1 }
  0x11   : > { %p163_p10 = scmp.lt.s32.totalorder %s3038_s21, 3  ;;  %p3134_p11 = por %p150_p7, %p36_p0 }
  0x12   : > { %p3138_p12 = por %p156_p8, %p42_p3  ;;  %s3040_s8 = smov [#allocation5]  }
  0x13   : > { %s3834_s30 = scalar_select %p3134_p11, 1, 0 }
  0x14   : > { %s3835_s6 = scalar_select %p3138_p12, 1, 0 }
  0x15   : > { %p3142_p13 = pnand %p2333_p9, %p163_p10  ;;  %s175_s9 = sshll.u32 %s3040_s8, 4  ;;  %s176_s9 = int_to_ptr.vmem [resolvable:$true] %s175_s9 }
  0x16   : > { %s3041_s11 = smov [#allocation7]   ;;  %s2884_s15 = scalar_lea.hbm %s3823_s1, 8192 }
  0x17   : > { %s3836_s7 = scalar_select %p3142_p13, 1, 0 }
  0x18   : > { %p2634_p1 = pneg %p3142_p13  ;;  %s191_s12 = sshll.u32 %s3041_s11, 4  ;;  %s3154_s12 = int_to_ptr.vmem [resolvable:$true] %s191_s12 }
  0x19   : > { %p2885_p0 = scmp.ne.s32.totalorder %s3823_s1, %s2884_s15  ;;  %p2891_p9 = scmp.lt.u32.totalorder %s2884_s15, %s3823_s1 }
  0x1a   : > { %p3150_p2 = pnand %p2634_p1, %p3828_p4 }
  0x1c   : > { %p2886_p3 = pneg %p3150_p2 }
  0x1e   : > { %p2887_p7 = pnand %p2886_p3, %p2885_p0 }
  0x20   : > { %p2888_p8 = pneg %p2887_p7 }
  0x22   : > { %p2893_p10 = pnand %p2891_p9, %p2888_p8 }
  0x24   : > { %2896 = shalt.err (!%p2893_p10)
}
  0x25   : > { %s2897_s26 = scalar_lea.vmem %s176_s9, 8192  ;;  %p2905_p11 = scmp.lt.s32.totalorder %s176_s9, %s176_s9 }
  0x26   : > { %p2898_p1 = scmp.ne.s32.totalorder %s176_s9, %s2897_s26  ;;  %p2906_p6 = scmp.lt.s32.totalorder %s2897_s26, %s2897_s26 }
  0x28   : > { %p2900_p4 = pnand %p2898_p1, %p2886_p3  ;;  %p2907_p13 = por %p2906_p6, %p2905_p11 }
  0x2a   : > { %p2901_p12 = pneg %p2900_p4 }
  0x2c   : > { %p2908_p5 = pnand %p2907_p13, %p2901_p12 }
  0x2e   : > { %2911 = shalt.err (!%p2908_p5)
}
  0x2f   : > { %s3042_s8 = smov 256   ;;  %s3043_s11 = smov 16  }
  0x30   : > { %2637 = dma.hbm_to_vmem [thread:$0]  (!%p3150_p2), %s3823_s1, 8192, %s176_s9, [#allocation6], %s3042_s8, %s3042_s8, %s3043_s11  }
  0x31   : > { %s2912_s17 = scalar_lea.hbm %s3825_s3, 8192 }
  0x32   : > { %p2913_p4 = scmp.ne.s32.totalorder %s3825_s3, %s2912_s17  ;;  %p2919_p11 = scmp.lt.u32.totalorder %s2912_s17, %s3825_s3 }
  0x34   : > { %p2915_p5 = pnand %p2913_p4, %p2886_p3 }
  0x36   : > { %p2916_p6 = pneg %p2915_p5 }
  0x38   : > { %p2921_p12 = pnand %p2919_p11, %p2916_p6 }
  0x3a   : > { %2924 = shalt.err (!%p2921_p12)
}
  0x3b   : > { %s2925_s9 = scalar_lea.vmem %s3154_s12, 8192  ;;  %p2933_p8 = scmp.lt.s32.totalorder %s3154_s12, %s3154_s12 }
  0x3c   : > { %p2926_p13 = scmp.ne.s32.totalorder %s3154_s12, %s2925_s9  ;;  %p2934_p9 = scmp.lt.s32.totalorder %s2925_s9, %s2925_s9 }
  0x3e   : > { %p2928_p0 = pnand %p2926_p13, %p2886_p3  ;;  %p2935_p10 = por %p2934_p9, %p2933_p8 }
  0x40   : > { %p2929_p7 = pneg %p2928_p0 }
  0x42   : > { %p2936_p1 = pnand %p2935_p10, %p2929_p7 }
  0x44   : > { %2939 = shalt.err (!%p2936_p1)
}
  0x45   : > { %s3044_s27 = smov 128   ;;  %s3045_s8 = smov 8  }
  0x46   : > { %2640 = dma.hbm_to_vmem [thread:$0]  (!%p3150_p2), %s3825_s3, 8192, %s3154_s12, [#allocation6], %s3044_s27, %s3044_s27, %s3045_s8  }
  0x47   : > { %p2336_p4 = scmp.ge.s32.totalorder %s3038_s21, 2 }
  0x48   : > { %p3838_p3 = scmp.ne.s32.totalorder (!%p2336_p4), %s3832_s28, 0 }
  0x49   : > { %204 = sbr.rel (%p2336_p4) target bundleno = 115 (0x73), region = 32 }
  0x50   : > { %207 = sbr.rel (!%p3838_p3) target bundleno = 115 (0x73), region = 36  ;;  %s208_s14 = sand.u32 (%p3838_p3), 1, %s3034_s20  }
  0x51   : > { %s2338_s15 = sshll.u32 (%p3838_p3), %s3038_s21, 5  ;;  %s2337_s16 = sshll.u32 (%p3838_p3), %s208_s14, 9 }
  0x52   : > { %s214_s17 = ssub.s32 (%p3838_p3), 48, %s2338_s15  ;;  %s3213_s23 = scalar_lea.sflag (%p3838_p3), [#allocation3], %s208_s14 }
  0x53   : > { %p215_p5 = scmp.lt.s32.totalorder (%p3838_p3), %s214_s17, 32  ;;  %s212_s25 = scalar_lea.vmem (%p3838_p3), [#allocation2], %s2337_s16 }
  0x57   : > { %s3851_s17 = smov (!%p215_p5, %s214_s17), 32 }
  0x58   : > { %s3210_s10 = sshll.u32 %s3851_s17, 8 }
  0x59   : > { %s220_s12 = ssub.s32 8192, %s3210_s10 }
  0x5a   : > { %221 = vsyncadd %s3213_s23, %s220_s12  ;;  %p2341_p2 = scmp.ne.s32.totalorder %s3210_s10, 0  ;;  %s2492_s28 = sshll.u32 %s3038_s21, 13 }
  0x5b   : > { %s3221_s27 = scalar_lea.hbm %s3822_s0, %s2492_s28  ;;  %s227_s8 = sshll.u32 %s212_s25, 4  ;;  %s3223_s8 = int_to_ptr.vmem [resolvable:$true] %s227_s8 }
  0x5c   : > { %s2940_s11 = scalar_lea.hbm %s3221_s27, %s3210_s10  ;;  %s2944_s15 = scalar_lea.hbm %s3822_s0, 12288 }
  0x5d   : > { %p2941_p6 = scmp.ne.s32.totalorder %s3221_s27, %s2940_s11  ;;  %p2945_p13 = scmp.lt.u32.totalorder %s3221_s27, %s3822_s0 }
  0x5e   : > { %p2946_p0 = scmp.lt.u32.totalorder %s2944_s15, %s2940_s11  ;;  %p2948_p8 = scmp.lt.u32.totalorder %s2940_s11, %s3221_s27 }
  0x5f   : > { %p2942_p11 = pnand %p2941_p6, %p2341_p2 }
  0x60   : > { %p2947_p7 = por %p2946_p0, %p2945_p13 }
  0x61   : > { %p2943_p12 = pneg %p2942_p11 }
  0x62   : > { %p2949_p9 = por %p2948_p8, %p2947_p7 }
  0x64   : > { %p2950_p10 = pnand %p2949_p9, %p2943_p12 }
  0x66   : > { %2953 = shalt.err (!%p2950_p10)
}
  0x67   : > { %s2954_s12 = scalar_lea.vmem %s3223_s8, %s3210_s10  ;;  %s3046_s25 = smov [#allocation2]  }
  0x68   : > { %p2955_p1 = scmp.ne.s32.totalorder %s3223_s8, %s2954_s12  ;;  %s2958_s28 = sshll.u32 %s3046_s25, 4  ;;  %s2959_s28 = int_to_ptr.vmem [resolvable:$false] %s2958_s28 }
  0x69   : > { %s2960_s26 = scalar_lea.vmem %s2959_s28, 16384  ;;  %p2961_p6 = scmp.lt.s32.totalorder %s3223_s8, %s2959_s28 }
  0x6a   : > { %p2956_p3 = pnand %p2955_p1, %p2341_p2  ;;  %p2962_p11 = scmp.lt.s32.totalorder %s2960_s26, %s2954_s12 }
  0x6c   : > { %p2957_p5 = pneg %p2956_p3  ;;  %p2963_p13 = por %p2962_p11, %p2961_p6 }
  0x6e   : > { %p2964_p0 = pnand %p2963_p13, %p2957_p5 }
  0x70   : > { %2967 = shalt.err (!%p2964_p0)
}
  0x71   : > { %s3047_s9 = smov 256   ;;  %s3048_s11 = smov 16  }
  0x72   : > { %233 = dma.hbm_to_vmem [thread:$0]  (%p2341_p2), %s3221_s27, %s3210_s10, %s3223_s8, %s3213_s23, %s3047_s9, %s3047_s9, %s3048_s11  }
  0x73 PF: > { %p3839_p12 = scmp.ne.s32.totalorder %s3836_s7, 0 }
  0x74   : > { %s3253_s13 = sand.u32 (!%p3839_p12), 1, %s3030_s19   ;;  %p3840_p7 = scmp.ne.s32.totalorder (!%p3839_p12), %s3833_s29, 0 }
  0x75   : > { %239 = sbr.rel (%p3839_p12) target bundleno = 909 (0x38d), region = 40  ;;  %s2347_s14 = sshll.u32 (!%p3839_p12), %s3253_s13, 9 }
  0x76   : > { %s242_s15 = scalar_lea.sflag (!%p3839_p12), [#allocation3], %s3253_s13  ;;  %s3259_s16 = scalar_lea.vmem (!%p3839_p12), [#allocation2], %s2347_s14 }
  0x7c   : > { %3013 = dma.done.wait (%p3840_p7), %s242_s15, 8192  }
  0x7d   : > { %3015 = vsyncadd (%p3840_p7), %s242_s15, 4294959104  ;;  %p3841_p2 = scmp.eq.s32.totalorder %s3103_s22, 0 }
  0x7f   : > { %3017 = dma.done.wait (%p3841_p2), [#allocation6], 16384   ;;  %p3842_p8 = pmov %p3841_p2 }
  0x80   : > { %v2692_v0 = vld [vmem:[#allocation5 + $0x4] ss:$16 sps:$4 sm:$0xff]   ;;  %v2694_v1 = vld [vmem:[#allocation5] ss:$16 sps:$4 sm:$0xff]   ;;  %v293_v13 = vld [vmem:[%s3259_s16 + $0x8] sm:$0xff]  ;;  %s3631_s27 = scalar_lea.vmem [#allocation8], %s2347_s14 }
  0x81   : > { %3019 = vsyncadd (%p3842_p8), [#allocation6], 4294950912  ;;  %794 = vmatprep.subr.bf16.mxu1 %v2692_v0  ;;  %v2695_v2 = vld [vmem:[#allocation5 + $0x24] ss:$16 sps:$4 sm:$0xff]   ;;  %v2697_v3 = vld [vmem:[#allocation5 + $0x20] ss:$16 sps:$4 sm:$0xff]  }
  0x82   : > { %795 = vmatpush1.bf16.msra.mxu1 %v2694_v1  ;;  %v2698_v4 = vld [vmem:[#allocation5 + $0x44] ss:$16 sps:$4 sm:$0xff]   ;;  %v2700_v5 = vld [vmem:[#allocation5 + $0x40] ss:$16 sps:$4 sm:$0xff]   ;;  %v295_v14 = vld [vmem:[%s3259_s16 + $0x18] sm:$0xff]  ;;  %s2219_s8 = scalar_lea.sflag [#allocation4], %s3253_s13 }
  0x83   : > { %796 = vmatprep.subr.bf16.mxu1 %v2695_v2  ;;  %v2701_v6 = vld [vmem:[#allocation5 + $0x64] ss:$16 sps:$4 sm:$0xff]   ;;  %v2703_v7 = vld [vmem:[#allocation5 + $0x60] ss:$16 sps:$4 sm:$0xff]   ;;  %v3271_v15 = vpack.c.bf16 %v295_v14, %v293_v13  ;;  %v2742_v37 = vld [vmem:[#allocation5 + $0xc] ss:$16 sps:$4 sm:$0xff]  }
  0x84   : > { %v2704_v8 = vld [vmem:[#allocation5 + $0x84] ss:$16 sps:$4 sm:$0xff]   ;;  %v2706_v9 = vld [vmem:[#allocation5 + $0x80] ss:$16 sps:$4 sm:$0xff]   ;;  %v297_v38 = vld [vmem:[%s3259_s16 + $0x28] sm:$0xff]  ;;  %p3843_p9 = scmp.ne.s32.totalorder %s3834_s30, 0 }
  0x85   : > { %v2707_v10 = vld [vmem:[#allocation5 + $0xa4] ss:$16 sps:$4 sm:$0xff]   ;;  %v2709_v11 = vld [vmem:[#allocation5 + $0xa0] ss:$16 sps:$4 sm:$0xff]   ;;  %826 = vmatprep.mubr.bf16.mxu1 %v3271_v15  ;;  %v299_v39 = vld [vmem:[%s3259_s16 + $0x38] sm:$0xff]  ;;  %s2480_s17 = sshll.u32 (%p3843_p9), %s3103_s22, 5 }
  0x86   : > { %797 = vmatpush1.bf16.msra.mxu1 %v2697_v3  ;;  %v2710_v12 = vld [vmem:[#allocation5 + $0xc4] ss:$16 sps:$4 sm:$0xff]   ;;  %v2712_v16 = vld [vmem:[#allocation5 + $0xc0] ss:$16 sps:$4 sm:$0xff]   ;;  %v2740_v41 = vld [vmem:[#allocation5 + $0x8] ss:$16 sps:$4 sm:$0xff]   ;;  %v3280_v42 = vpack.c.bf16 %v299_v39, %v297_v38 }
  0x87   : > { %798 = vmatprep.subr.bf16.mxu1 %v2698_v4  ;;  %v2713_v17 = vld [vmem:[#allocation5 + $0xe4] ss:$16 sps:$4 sm:$0xff]   ;;  %v2715_v18 = vld [vmem:[#allocation5 + $0xe0] ss:$16 sps:$4 sm:$0xff]   ;;  %v2745_v43 = vld [vmem:[#allocation5 + $0x2c] ss:$16 sps:$4 sm:$0xff]  }
  0x88   : > { %v2716_v19 = vld [vmem:[#allocation5 + $0x104] ss:$16 sps:$4 sm:$0xff]   ;;  %v2718_v20 = vld [vmem:[#allocation5 + $0x100] ss:$16 sps:$4 sm:$0xff]   ;;  %v2743_v46 = vld [vmem:[#allocation5 + $0x28] ss:$16 sps:$4 sm:$0xff]  }
  0x89   : > { %v2719_v21 = vld [vmem:[#allocation5 + $0x124] ss:$16 sps:$4 sm:$0xff]   ;;  %v2721_v22 = vld [vmem:[#allocation5 + $0x120] ss:$16 sps:$4 sm:$0xff]   ;;  %v301_v47 = vld [vmem:[%s3259_s16 + $0x48] sm:$0xff]  ;;  %s2227_s12 = ssub.s32 (%p3843_p9), 48, %s2480_s17 }
  0x8a   : > { %799 = vmatpush1.bf16.msra.mxu1 %v2700_v5  ;;  %v2722_v23 = vld [vmem:[#allocation5 + $0x144] ss:$16 sps:$4 sm:$0xff]   ;;  %v2724_v24 = vld [vmem:[#allocation5 + $0x140] ss:$16 sps:$4 sm:$0xff]   ;;  %v303_v48 = vld [vmem:[%s3259_s16 + $0x58] sm:$0xff]  ;;  %p2228_p10 = scmp.lt.s32.totalorder (%p3843_p9), %s2227_s12, 32 }
  0x8b   : > { %800 = vmatprep.subr.bf16.mxu1 %v2701_v6  ;;  %v2725_v25 = vld [vmem:[#allocation5 + $0x164] ss:$16 sps:$4 sm:$0xff]   ;;  %v2727_v26 = vld [vmem:[#allocation5 + $0x160] ss:$16 sps:$4 sm:$0xff]   ;;  %v2748_v49 = vld [vmem:[#allocation5 + $0x4c] ss:$16 sps:$4 sm:$0xff]   ;;  %v3290_v53 = vpack.c.bf16 %v303_v48, %v301_v47 }
  0x8c   : > { %v2728_v27 = vld [vmem:[#allocation5 + $0x184] ss:$16 sps:$4 sm:$0xff]   ;;  %v2730_v28 = vld [vmem:[#allocation5 + $0x180] ss:$16 sps:$4 sm:$0xff]   ;;  %v2746_v50 = vld [vmem:[#allocation5 + $0x48] ss:$16 sps:$4 sm:$0xff]  }
  0x8d   : > { %v2731_v29 = vld [vmem:[#allocation5 + $0x1a4] ss:$16 sps:$4 sm:$0xff]   ;;  %v2733_v30 = vld [vmem:[#allocation5 + $0x1a0] ss:$16 sps:$4 sm:$0xff]   ;;  %v2751_v52 = vld [vmem:[#allocation5 + $0x6c] ss:$16 sps:$4 sm:$0xff]  }
  0x8e   : > { %801 = vmatpush1.bf16.msra.mxu1 %v2703_v7  ;;  %v2734_v31 = vld [vmem:[#allocation5 + $0x1c4] ss:$16 sps:$4 sm:$0xff]   ;;  %v2736_v32 = vld [vmem:[#allocation5 + $0x1c0] ss:$16 sps:$4 sm:$0xff]   ;;  %v2749_v56 = vld [vmem:[#allocation5 + $0x68] ss:$16 sps:$4 sm:$0xff]  }
  0x8f   : > { %802 = vmatprep.subr.bf16.mxu1 %v2704_v8  ;;  %v2737_v33 = vld [vmem:[#allocation5 + $0x1e4] ss:$16 sps:$4 sm:$0xff]   ;;  %v2739_v34 = vld [vmem:[#allocation5 + $0x1e0] ss:$16 sps:$4 sm:$0xff]   ;;  %v305_v57 = vld [vmem:[%s3259_s16 + $0x68] sm:$0xff] }
  0x90   : > { %v292_v35 = vld [vmem:[%s3259_s16] sm:$0xff]  ;;  %v294_v36 = vld [vmem:[%s3259_s16 + $0x10] sm:$0xff]  ;;  %v307_v58 = vld [vmem:[%s3259_s16 + $0x78] sm:$0xff] }
  0x91   : > { %v3278_v40 = vpack.c.bf16 %v294_v36, %v292_v35  ;;  %v296_v44 = vld [vmem:[%s3259_s16 + $0x20] sm:$0xff]  ;;  %v298_v45 = vld [vmem:[%s3259_s16 + $0x30] sm:$0xff]  ;;  %v2754_v59 = vld [vmem:[#allocation5 + $0x8c] ss:$16 sps:$4 sm:$0xff]   ;;  %v3300_v63 = vpack.c.bf16 %v307_v58, %v305_v57 }
  0x92   : > { %803 = vmatpush1.bf16.msra.mxu1 %v2706_v9  ;;  %v3288_v51 = vpack.c.bf16 %v298_v45, %v296_v44  ;;  %v300_v54 = vld [vmem:[%s3259_s16 + $0x40] sm:$0xff]  ;;  %v302_v55 = vld [vmem:[%s3259_s16 + $0x50] sm:$0xff]  ;;  %v2752_v60 = vld [vmem:[#allocation5 + $0x88] ss:$16 sps:$4 sm:$0xff]  }
  0x93   : > { %804 = vmatprep.subr.bf16.mxu1 %v2707_v10  ;;  %v3298_v61 = vpack.c.bf16 %v302_v55, %v300_v54  ;;  %v2757_v62 = vld [vmem:[#allocation5 + $0xac] ss:$16 sps:$4 sm:$0xff]   ;;  %v304_v0 = vld [vmem:[%s3259_s16 + $0x60] sm:$0xff]  ;;  %v306_v1 = vld [vmem:[%s3259_s16 + $0x70] sm:$0xff] }
  0x94   : > { %v2755_v2 = vld [vmem:[#allocation5 + $0xa8] ss:$16 sps:$4 sm:$0xff]   ;;  %v2760_v5 = vld [vmem:[#allocation5 + $0xcc] ss:$16 sps:$4 sm:$0xff]   ;;  %v3308_v6 = vpack.c.bf16 %v306_v1, %v304_v0  ;;  %v308_v10 = vld [vmem:[%s3259_s16 + $0x80] sm:$0xff] }
  0x95   : > { %v309_v3 = vld [vmem:[%s3259_s16 + $0x88] sm:$0xff]  ;;  %v311_v4 = vld [vmem:[%s3259_s16 + $0x98] sm:$0xff]  ;;  %v320_v58 = vld [vmem:[%s3259_s16 + $0xe0] sm:$0xff] }
  0x96   : > { %805 = vmatpush1.bf16.msra.mxu1 %v2709_v11  ;;  %v3310_v7 = vpack.c.bf16 %v311_v4, %v309_v3  ;;  %v2758_v8 = vld [vmem:[#allocation5 + $0xc8] ss:$16 sps:$4 sm:$0xff]   ;;  %v2763_v9 = vld [vmem:[#allocation5 + $0xec] ss:$16 sps:$4 sm:$0xff]  }
  0x97   : > { %806 = vmatprep.subr.bf16.mxu1 %v2710_v12  ;;  %v2788_v11 = vld [vmem:[#allocation7 + $0x4] ss:$8 sps:$4 sm:$0xff]   ;;  %v310_v12 = vld [vmem:[%s3259_s16 + $0x90] sm:$0xff]  ;;  %v2761_v13 = vld [vmem:[#allocation5 + $0xe8] ss:$16 sps:$4 sm:$0xff]  }
  0x98   : > { %v2790_v14 = vld [vmem:[#allocation7] ss:$8 sps:$4 sm:$0xff]   ;;  %1768 = vmatprep.subr.bf16.mxu0 %v2788_v11  ;;  %v2775_v36 = vld [vmem:[#allocation5 + $0x16c] ss:$16 sps:$4 sm:$0xff]   ;;  %v2799_v38 = vld [vmem:[#allocation7 + $0x30] ss:$8 sps:$4 sm:$0xff]  }
  0x99   : > { %1769 = vmatpush1.bf16.msra.mxu0 %v2790_v14  ;;  %v2770_v35 = vld [vmem:[#allocation5 + $0x148] ss:$16 sps:$4 sm:$0xff]   ;;  %v2800_v39 = vld [vmem:[#allocation7 + $0x44] ss:$8 sps:$4 sm:$0xff]   ;;  %v2803_v55 = vld [vmem:[#allocation7 + $0x54] ss:$8 sps:$4 sm:$0xff]  }
  0x9a   : > { %807 = vmatpush1.bf16.msra.mxu1 %v2712_v16  ;;  %v313_v16 = vld [vmem:[%s3259_s16 + $0xa8] sm:$0xff]  ;;  %v327_v0 = vld [vmem:[%s3259_s16 + $0x118] sm:$0xff] }
  0x9b   : > { %808 = vmatprep.subr.bf16.mxu1 %v2713_v17  ;;  %v315_v17 = vld [vmem:[%s3259_s16 + $0xb8] sm:$0xff]  ;;  %v321_v45 = vld [vmem:[%s3259_s16 + $0xe8] sm:$0xff] }
  0x9c   : > { %v2773_v44 = vld [vmem:[#allocation5 + $0x168] ss:$16 sps:$4 sm:$0xff]   ;;  %v2778_v47 = vld [vmem:[#allocation5 + $0x18c] ss:$16 sps:$4 sm:$0xff]  }
  0x9d   : > { %v2802_v48 = vld [vmem:[#allocation7 + $0x40] ss:$8 sps:$4 sm:$0xff]   ;;  %v2781_v54 = vld [vmem:[#allocation5 + $0x1ac] ss:$16 sps:$4 sm:$0xff]  }
  0x9e   : > { %809 = vmatpush1.bf16.msra.mxu1 %v2715_v18  ;;  %v2766_v18 = vld [vmem:[#allocation5 + $0x10c] ss:$16 sps:$4 sm:$0xff]   ;;  %v2785_v14 = vld [vmem:[#allocation5 + $0x1e8] ss:$16 sps:$4 sm:$0xff]  }
  0x9f   : > { %810 = vmatprep.subr.bf16.mxu1 %v2716_v19  ;;  %v3318_v19 = vpack.c.bf16 %v310_v12, %v308_v10  ;;  %v2806_v57 = vld [vmem:[#allocation7 + $0x64] ss:$8 sps:$4 sm:$0xff]   ;;  %v2811_v10 = vld [vmem:[#allocation7 + $0x70] ss:$8 sps:$4 sm:$0xff]  }
  0xa0   : > { %v2784_v1 = vld [vmem:[#allocation5 + $0x1cc] ss:$16 sps:$4 sm:$0xff]   ;;  %v324_v12 = vld [vmem:[%s3259_s16 + $0x100] sm:$0xff] }
  0xa1   : > { %v2812_v11 = vld [vmem:[#allocation7 + $0x84] ss:$8 sps:$4 sm:$0xff]  }
  0xa2   : > { %811 = vmatpush1.bf16.msra.mxu1 %v2718_v20  ;;  %v3320_v20 = vpack.c.bf16 %v315_v17, %v313_v16  ;;  %v329_v16 = vld [vmem:[%s3259_s16 + $0x128] sm:$0xff]  ;;  %v331_v17 = vld [vmem:[%s3259_s16 + $0x138] sm:$0xff] }
  0xa3   : > { %812 = vmatprep.subr.bf16.mxu1 %v2719_v21  ;;  %v2764_v21 = vld [vmem:[#allocation5 + $0x108] ss:$16 sps:$4 sm:$0xff]  }
  0xa6   : > { %813 = vmatpush1.bf16.msra.mxu1 %v2721_v22  ;;  %v2769_v22 = vld [vmem:[#allocation5 + $0x12c] ss:$16 sps:$4 sm:$0xff]  }
  0xa7   : > { %814 = vmatprep.subr.bf16.mxu1 %v2722_v23  ;;  %v2791_v23 = vld [vmem:[#allocation7 + $0x14] ss:$8 sps:$4 sm:$0xff]  }
  0xa8   : > { %1770 = vmatprep.subr.bf16.mxu0 %v2791_v23  ;;  %v2815_v23 = vld [vmem:[#allocation7 + $0x94] ss:$8 sps:$4 sm:$0xff]  }
  0xaa   : > { %815 = vmatpush1.bf16.msra.mxu1 %v2724_v24  ;;  %v2793_v24 = vld [vmem:[#allocation7 + $0x10] ss:$8 sps:$4 sm:$0xff]  }
  0xab   : > { %816 = vmatprep.subr.bf16.mxu1 %v2725_v25  ;;  %v2794_v25 = vld [vmem:[#allocation7 + $0x24] ss:$8 sps:$4 sm:$0xff]   ;;  %1771 = vmatpush1.bf16.msra.mxu0 %v2793_v24  ;;  %v2817_v24 = vld [vmem:[#allocation7 + $0x90] ss:$8 sps:$4 sm:$0xff]  }
  0xac   : > { %1772 = vmatprep.subr.bf16.mxu0 %v2794_v25  ;;  %v2818_v25 = vld [vmem:[#allocation7 + $0xa4] ss:$8 sps:$4 sm:$0xff]  }
  0xae   : > { %817 = vmatpush1.bf16.msra.mxu1 %v2727_v26  ;;  %v312_v26 = vld [vmem:[%s3259_s16 + $0xa0] sm:$0xff] }
  0xaf   : > { %818 = vmatprep.subr.bf16.mxu1 %v2728_v27  ;;  %v314_v27 = vld [vmem:[%s3259_s16 + $0xb0] sm:$0xff] }
  0xb2   : > { %819 = vmatpush1.bf16.msra.mxu1 %v2730_v28  ;;  %v2767_v28 = vld [vmem:[#allocation5 + $0x128] ss:$16 sps:$4 sm:$0xff]  }
  0xb3   : > { %820 = vmatprep.subr.bf16.mxu1 %v2731_v29  ;;  %v317_v29 = vld [vmem:[%s3259_s16 + $0xc8] sm:$0xff] }
  0xb6   : > { %821 = vmatpush1.bf16.msra.mxu1 %v2733_v30  ;;  %v319_v30 = vld [vmem:[%s3259_s16 + $0xd8] sm:$0xff] }
  0xb7   : > { %822 = vmatprep.subr.bf16.mxu1 %v2734_v31  ;;  %v2772_v31 = vld [vmem:[#allocation5 + $0x14c] ss:$16 sps:$4 sm:$0xff]  }
  0xba   : > { %823 = vmatpush1.bf16.msra.mxu1 %v2736_v32  ;;  %v2796_v32 = vld [vmem:[#allocation7 + $0x20] ss:$8 sps:$4 sm:$0xff]  }
  0xbb   : > { %824 = vmatprep.subr.bf16.mxu1 %v2737_v33  ;;  %v3328_v33 = vpack.c.bf16 %v314_v27, %v312_v26  ;;  %1773 = vmatpush1.bf16.msra.mxu0 %v2796_v32  ;;  %v328_v26 = vld [vmem:[%s3259_s16 + $0x120] sm:$0xff]  ;;  %v330_v27 = vld [vmem:[%s3259_s16 + $0x130] sm:$0xff] }
  0xbe   : > { %825 = vmatpush1.bf16.msra.mxu1 %v2739_v34  ;;  %v3330_v34 = vpack.c.bf16 %v319_v30, %v317_v29  ;;  %v335_v29 = vld [vmem:[%s3259_s16 + $0x158] sm:$0xff]  ;;  %v2820_v30 = vld [vmem:[#allocation7 + $0xa0] ss:$8 sps:$4 sm:$0xff]  }
  0xbf   : > { %987 = vmatprep.subr.bf16.mxu1 %v2742_v37  ;;  %v2797_v37 = vld [vmem:[#allocation7 + $0x34] ss:$8 sps:$4 sm:$0xff]  }
  0xc0   : > { %1774 = vmatprep.subr.bf16.mxu0 %v2797_v37  ;;  %v2824_v37 = vld [vmem:[#allocation7 + $0xc4] ss:$8 sps:$4 sm:$0xff]  }
  0xc1   : > { %827 = vmatmul.mubr.bf16.vlgmr.msra.gmra.mrb[0].mxu1 %v3278_v40  ;;  %1775 = vmatpush1.bf16.msra.mxu0 %v2799_v38  ;;  %v332_v38 = vld [vmem:[%s3259_s16 + $0x140] sm:$0xff] }
  0xc2   : > { %988 = vmatpush1.bf16.msra.mxu1 %v2740_v41  ;;  %836 = vmatprep.mubr.bf16.mxu1 %v3280_v42  ;;  %v316_v41 = vld [vmem:[%s3259_s16 + $0xc0] sm:$0xff] }
  0xc3   : > { %989 = vmatprep.subr.bf16.mxu1 %v2745_v43  ;;  %v318_v43 = vld [vmem:[%s3259_s16 + $0xd0] sm:$0xff]  ;;  %1776 = vmatprep.subr.bf16.mxu0 %v2800_v39 }
  0xc4   : > { %v334_v39 = vld [vmem:[%s3259_s16 + $0x150] sm:$0xff] }
  0xc5   : > { %1777 = vmatpush1.bf16.msra.mxu0 %v2802_v48  ;;  %v336_v48 = vld [vmem:[%s3259_s16 + $0x160] sm:$0xff] }
  0xc6   : > { %990 = vmatpush1.bf16.msra.mxu1 %v2743_v46  ;;  %v323_v46 = vld [vmem:[%s3259_s16 + $0xf8] sm:$0xff]  ;;  %1778 = vmatprep.subr.bf16.mxu0 %v2803_v55  ;;  %v341_v55 = vld [vmem:[%s3259_s16 + $0x188] sm:$0xff] }
  0xc7   : > { %991 = vmatprep.subr.bf16.mxu1 %v2748_v49  ;;  %v3338_v49 = vpack.c.bf16 %v318_v43, %v316_v41  ;;  %v337_v41 = vld [vmem:[%s3259_s16 + $0x168] sm:$0xff]  ;;  %v339_v43 = vld [vmem:[%s3259_s16 + $0x178] sm:$0xff] }
  0xc9   : > { %837 = vmatmul.mubr.bf16.gmra.mrb[4].mxu1 %v3288_v51 }
  0xca   : > { %846 = vmatprep.mubr.bf16.mxu1 %v3290_v53  ;;  %992 = vmatpush1.bf16.msra.mxu1 %v2746_v50  ;;  %v3340_v50 = vpack.c.bf16 %v323_v46, %v321_v45  ;;  %v3378_v45 = vpack.c.bf16 %v334_v39, %v332_v38  ;;  %v3380_v46 = vpack.c.bf16 %v339_v43, %v337_v41  ;;  %v2841_v41 = vld [vmem:[#allocation7 + $0x114] ss:$8 sps:$4 sm:$0xff]  }
  0xcb   : > { %993 = vmatprep.subr.bf16.mxu1 %v2751_v52  ;;  %v2776_v52 = vld [vmem:[#allocation5 + $0x188] ss:$16 sps:$4 sm:$0xff]  }
  0xce   : > { %994 = vmatpush1.bf16.msra.mxu1 %v2749_v56  ;;  %v2805_v56 = vld [vmem:[#allocation7 + $0x50] ss:$8 sps:$4 sm:$0xff]  }
  0xcf   : > { %995 = vmatprep.subr.bf16.mxu1 %v2754_v59  ;;  %v322_v59 = vld [vmem:[%s3259_s16 + $0xf0] sm:$0xff]  ;;  %1779 = vmatpush1.bf16.msra.mxu0 %v2805_v56  ;;  %v343_v56 = vld [vmem:[%s3259_s16 + $0x198] sm:$0xff] }
  0xd0   : > { %v3348_v3 = vpack.c.bf16 %v322_v59, %v320_v58  ;;  %1780 = vmatprep.subr.bf16.mxu0 %v2806_v57  ;;  %v2830_v58 = vld [vmem:[#allocation7 + $0xe4] ss:$8 sps:$4 sm:$0xff]   ;;  %v3390_v59 = vpack.c.bf16 %v343_v56, %v341_v55 }
  0xd1   : > { %847 = vmatmul.mubr.bf16.gmra.mrb[8].mxu1 %v3298_v61  ;;  %v2844_v55 = vld [vmem:[#allocation7 + $0x124] ss:$8 sps:$4 sm:$0xff]  }
  0xd2   : > { %856 = vmatprep.mubr.bf16.mxu1 %v3300_v63  ;;  %996 = vmatpush1.bf16.msra.mxu1 %v2752_v60  ;;  %v2779_v60 = vld [vmem:[#allocation5 + $0x1a8] ss:$16 sps:$4 sm:$0xff]  }
  0xd3   : > { %997 = vmatprep.subr.bf16.mxu1 %v2757_v62  ;;  %v325_v62 = vld [vmem:[%s3259_s16 + $0x108] sm:$0xff] }
  0xd4   : > { %v3350_v4 = vpack.c.bf16 %v327_v0, %v325_v62  ;;  %v2833_v62 = vld [vmem:[#allocation7 + $0xf4] ss:$8 sps:$4 sm:$0xff]   ;;  %v340_v0 = vld [vmem:[%s3259_s16 + $0x180] sm:$0xff] }
  0xd6   : > { %998 = vmatpush1.bf16.msra.mxu1 %v2755_v2  ;;  %v2808_v2 = vld [vmem:[#allocation7 + $0x60] ss:$8 sps:$4 sm:$0xff]  }
  0xd7   : > { %999 = vmatprep.subr.bf16.mxu1 %v2760_v5  ;;  %v2782_v5 = vld [vmem:[#allocation5 + $0x1c8] ss:$16 sps:$4 sm:$0xff]   ;;  %1781 = vmatpush1.bf16.msra.mxu0 %v2808_v2 }
  0xd8   : > { %v2835_v2 = vld [vmem:[#allocation7 + $0xf0] ss:$8 sps:$4 sm:$0xff]  }
  0xd9   : > { %857 = vmatmul.mubr.bf16.gmra.mrb[12].mxu1 %v3308_v6 }
  0xda   : > { %866 = vmatprep.mubr.bf16.mxu1 %v3310_v7  ;;  %1000 = vmatpush1.bf16.msra.mxu1 %v2758_v8  ;;  %v2787_v8 = vld [vmem:[#allocation5 + $0x1ec] ss:$16 sps:$4 sm:$0xff]  }
  0xdb   : > { %1001 = vmatprep.subr.bf16.mxu1 %v2763_v9  ;;  %v2809_v9 = vld [vmem:[#allocation7 + $0x74] ss:$8 sps:$4 sm:$0xff]  }
  0xdc   : > { %1782 = vmatprep.subr.bf16.mxu0 %v2809_v9 }
  0xdd   : > { %1783 = vmatpush1.bf16.msra.mxu0 %v2811_v10 }
  0xde   : > { %1002 = vmatpush1.bf16.msra.mxu1 %v2761_v13  ;;  %v326_v13 = vld [vmem:[%s3259_s16 + $0x110] sm:$0xff]  ;;  %1784 = vmatprep.subr.bf16.mxu0 %v2812_v11  ;;  %v344_v11 = vld [vmem:[%s3259_s16 + $0x1a0] sm:$0xff] }
  0xdf   : > { %1003 = vmatprep.subr.bf16.mxu1 %v2766_v18  ;;  %v2814_v18 = vld [vmem:[#allocation7 + $0x80] ss:$8 sps:$4 sm:$0xff]  }
  0xe1   : > { %867 = vmatmul.mubr.bf16.gmra.mrb[16].mxu1 %v3318_v19  ;;  %1785 = vmatpush1.bf16.msra.mxu0 %v2814_v18 }
  0xe2   : > { %876 = vmatprep.mubr.bf16.mxu1 %v3320_v20  ;;  %1004 = vmatpush1.bf16.msra.mxu1 %v2764_v21  ;;  %v3358_v21 = vpack.c.bf16 %v326_v13, %v324_v12  ;;  %v346_v12 = vld [vmem:[%s3259_s16 + $0x1b0] sm:$0xff]  ;;  %v349_v13 = vld [vmem:[%s3259_s16 + $0x1c8] sm:$0xff] }
  0xe3   : > { %1005 = vmatprep.subr.bf16.mxu1 %v2769_v22  ;;  %v3360_v22 = vpack.c.bf16 %v331_v17, %v329_v16  ;;  %1786 = vmatprep.subr.bf16.mxu0 %v2815_v23  ;;  %v2838_v16 = vld [vmem:[#allocation7 + $0x104] ss:$8 sps:$4 sm:$0xff]   ;;  %v3408_v17 = vpack.c.bf16 %v346_v12, %v344_v11  ;;  %v2845_v12 = vld [vmem:[#allocation7 + $0x130] ss:$8 sps:$4 sm:$0xff]  }
  0xe4   : > { %v348_v23 = vld [vmem:[%s3259_s16 + $0x1c0] sm:$0xff] }
  0xe5   : > { %1787 = vmatpush1.bf16.msra.mxu0 %v2817_v24  ;;  %v350_v24 = vld [vmem:[%s3259_s16 + $0x1d0] sm:$0xff] }
  0xe6   : > { %1006 = vmatpush1.bf16.msra.mxu1 %v2767_v28  ;;  %v333_v28 = vld [vmem:[%s3259_s16 + $0x148] sm:$0xff]  ;;  %1788 = vmatprep.subr.bf16.mxu0 %v2818_v25 }
  0xe7   : > { %1007 = vmatprep.subr.bf16.mxu1 %v2772_v31  ;;  %v3368_v31 = vpack.c.bf16 %v330_v27, %v328_v26  ;;  %v3370_v32 = vpack.c.bf16 %v335_v29, %v333_v28  ;;  %v353_v25 = vld [vmem:[%s3259_s16 + $0x1e8] sm:$0xff]  ;;  %v355_v26 = vld [vmem:[%s3259_s16 + $0x1f8] sm:$0xff]  ;;  %v3418_v27 = vpack.c.bf16 %v350_v24, %v348_v23  ;;  %v352_v29 = vld [vmem:[%s3259_s16 + $0x1e0] sm:$0xff] }
  0xe8   : > { %v3420_v28 = vpack.c.bf16 %v355_v26, %v353_v25 }
  0xe9   : > { %877 = vmatmul.mubr.bf16.gmra.mrb[20].mxu1 %v3328_v33  ;;  %1789 = vmatpush1.bf16.msra.mxu0 %v2820_v30  ;;  %v354_v30 = vld [vmem:[%s3259_s16 + $0x1f0] sm:$0xff] }
  0xea   : > { %886 = vmatprep.mubr.bf16.mxu1 %v3330_v34  ;;  %1008 = vmatpush1.bf16.msra.mxu1 %v2770_v35  ;;  %v2821_v35 = vld [vmem:[#allocation7 + $0xb4] ss:$8 sps:$4 sm:$0xff]  }
  0xeb   : > { %1009 = vmatprep.subr.bf16.mxu1 %v2775_v36  ;;  %v2823_v36 = vld [vmem:[#allocation7 + $0xb0] ss:$8 sps:$4 sm:$0xff]   ;;  %1790 = vmatprep.subr.bf16.mxu0 %v2821_v35  ;;  %v3426_v35 = vpack.c.bf16 %v354_v30, %v352_v29  ;;  %v2848_v30 = vld [vmem:[#allocation7 + $0x140] ss:$8 sps:$4 sm:$0xff]  }
  0xed   : > { %1791 = vmatpush1.bf16.msra.mxu0 %v2823_v36 }
  0xee   : > { %1010 = vmatpush1.bf16.msra.mxu1 %v2773_v44  ;;  %v2826_v44 = vld [vmem:[#allocation7 + $0xc0] ss:$8 sps:$4 sm:$0xff]   ;;  %1792 = vmatprep.subr.bf16.mxu0 %v2824_v37 }
  0xef   : > { %1011 = vmatprep.subr.bf16.mxu1 %v2778_v47  ;;  %v2827_v47 = vld [vmem:[#allocation7 + $0xd4] ss:$8 sps:$4 sm:$0xff]   ;;  %v2836_v37 = vld [vmem:[#allocation7 + $0x100] ss:$8 sps:$4 sm:$0xff]  }
  0xf1   : > { %887 = vmatmul.mubr.bf16.gmra.mrb[24].mxu1 %v3338_v49  ;;  %1793 = vmatpush1.bf16.msra.mxu0 %v2826_v44 }
  0xf2   : > { %896 = vmatprep.mubr.bf16.mxu1 %v3340_v50  ;;  %1012 = vmatpush1.bf16.msra.mxu1 %v2776_v52  ;;  %v338_v52 = vld [vmem:[%s3259_s16 + $0x170] sm:$0xff] }
  0xf3   : > { %1013 = vmatprep.subr.bf16.mxu1 %v2781_v54  ;;  %v2829_v54 = vld [vmem:[#allocation7 + $0xd0] ss:$8 sps:$4 sm:$0xff]   ;;  %1794 = vmatprep.subr.bf16.mxu0 %v2827_v47  ;;  %v3388_v57 = vpack.c.bf16 %v338_v52, %v336_v48 }
  0xf4   : > { %v2839_v48 = vld [vmem:[#allocation7 + $0x110] ss:$8 sps:$4 sm:$0xff]  }
  0xf5   : > { %1795 = vmatpush1.bf16.msra.mxu0 %v2829_v54 }
  0xf6   : > { %1014 = vmatpush1.bf16.msra.mxu1 %v2779_v60  ;;  %v2832_v60 = vld [vmem:[#allocation7 + $0xe0] ss:$8 sps:$4 sm:$0xff]   ;;  %1796 = vmatprep.subr.bf16.mxu0 %v2830_v58 }
  0xf7   : > { %1015 = vmatprep.subr.bf16.mxu1 %v2784_v1  ;;  %v342_v1 = vld [vmem:[%s3259_s16 + $0x190] sm:$0xff] }
  0xf8   : > { %v3398_v9 = vpack.c.bf16 %v342_v1, %v340_v0 }
  0xf9   : > { %897 = vmatmul.mubr.bf16.gmra.mrb[28].mxu1 %v3348_v3  ;;  %1797 = vmatpush1.bf16.msra.mxu0 %v2832_v60 }
  0xfa   : > { %906 = vmatprep.mubr.bf16.mxu1 %v3350_v4  ;;  %1016 = vmatpush1.bf16.msra.mxu1 %v2782_v5  ;;  %v345_v5 = vld [vmem:[%s3259_s16 + $0x1a8] sm:$0xff] }
  0xfb   : > { %1017 = vmatprep.subr.bf16.mxu1 %v2787_v8  ;;  %v347_v8 = vld [vmem:[%s3259_s16 + $0x1b8] sm:$0xff]  ;;  %1798 = vmatprep.subr.bf16.mxu0 %v2833_v62  ;;  %v2842_v62 = vld [vmem:[#allocation7 + $0x120] ss:$8 sps:$4 sm:$0xff]  }
  0xfc   : > { %v3400_v10 = vpack.c.bf16 %v347_v8, %v345_v5 }
  0xfd   : > { %1799 = vmatpush1.bf16.msra.mxu0 %v2835_v2  ;;  %v2847_v2 = vld [vmem:[#allocation7 + $0x134] ss:$8 sps:$4 sm:$0xff]  }
  0xfe   : > { %1018 = vmatpush1.bf16.msra.mxu1 %v2785_v14  ;;  %v351_v14 = vld [vmem:[%s3259_s16 + $0x1d8] sm:$0xff]  ;;  %1961 = vmatprep.subr.bf16.mxu0 %v2838_v16  ;;  %v2850_v16 = vld [vmem:[#allocation7 + $0x144] ss:$8 sps:$4 sm:$0xff]  }
  0xff   : > { %v3410_v18 = vpack.c.bf16 %v351_v14, %v349_v13 }
 0x101   : > { %907 = vmatmul.mubr.bf16.gmra.mrb[32].mxu1 %v3358_v21 }
 0x102   : > { %916 = vmatprep.mubr.bf16.mxu1 %v3360_v22 }
 0x109   : > { %917 = vmatmul.mubr.bf16.gmra.mrb[36].mxu1 %v3368_v31 }
 0x10a   : > { %926 = vmatprep.mubr.bf16.mxu1 %v3370_v32 }
 0x111   : > { %927 = vmatmul.mubr.bf16.gmra.mrb[40].mxu1 %v3378_v45 }
 0x112   : > { %936 = vmatprep.mubr.bf16.mxu1 %v3380_v46 }
 0x119   : > { %937 = vmatmul.mubr.bf16.gmra.mrb[44].mxu1 %v3388_v57 }
 0x11a   : > { %946 = vmatprep.mubr.bf16.mxu1 %v3390_v59 }
 0x121   : > { %947 = vmatmul.mubr.bf16.gmra.mrb[48].mxu1 %v3398_v9 }
 0x122   : > { %956 = vmatprep.mubr.bf16.mxu1 %v3400_v10 }
 0x129   : > { %957 = vmatmul.mubr.bf16.gmra.mrb[52].mxu1 %v3408_v17 }
 0x12a   : > { %966 = vmatprep.mubr.bf16.mxu1 %v3410_v18 }
 0x131   : > { %967 = vmatmul.mubr.bf16.gmra.mrb[56].mxu1 %v3418_v27 }
 0x132   : > { %976 = vmatprep.mubr.bf16.mxu1 %v3420_v28 }
 0x139   : > { %977 = vmatmul.mubr.bf16.gmra.mrb[60].mxu1 %v3426_v35 }
 0x13a   : > { %1019 = vmatprep.mubr.bf16.mxu1 %v3271_v15  ;;  %v454_v15 = vlaneseq }
 0x141   : > { %1020 = vmatmul.mubr.bf16.vlgmr.msra.gmra.mrb[64].mxu1 %v3278_v40  ;;  %v3449_v40 = vshrl.u32 %v454_v15, 7 }
 0x142   : > { %1029 = vmatprep.mubr.bf16.mxu1 %v3280_v42 }
 0x143   : > { %v456_v42 = vsub.s32 0, %v3449_v40 }
 0x149   : > { %1030 = vmatmul.mubr.bf16.gmra.mrb[68].mxu1 %v3288_v51  ;;  %v3456_v51 = vld [vmem:[%s3824_s2] sm:$0xf] }
 0x14a   : > { %1039 = vmatprep.mubr.bf16.mxu1 %v3290_v53  ;;  %v460_v53 = vsub.s32 1, %v3449_v40 }
 0x151   : > { %1040 = vmatmul.mubr.bf16.gmra.mrb[72].mxu1 %v3298_v61  ;;  %v3463_v61 = vrot.slane %v3456_v51, %v456_v42 }
 0x152   : > { %1049 = vmatprep.mubr.bf16.mxu1 %v3300_v63  ;;  %v3468_v63 = vrot.slane %v3456_v51, %v460_v53 }
 0x159   : > { %1050 = vmatmul.mubr.bf16.gmra.mrb[76].mxu1 %v3308_v6 }
 0x15a   : > { %1059 = vmatprep.mubr.bf16.mxu1 %v3310_v7 }
 0x161   : > { %1060 = vmatmul.mubr.bf16.gmra.mrb[80].mxu1 %v3318_v19 }
 0x162   : > { %1069 = vmatprep.mubr.bf16.mxu1 %v3320_v20 }
 0x169   : > { %1070 = vmatmul.mubr.bf16.gmra.mrb[84].mxu1 %v3328_v33 }
 0x16a   : > { %1079 = vmatprep.mubr.bf16.mxu1 %v3330_v34 }
 0x171   : > { %1080 = vmatmul.mubr.bf16.gmra.mrb[88].mxu1 %v3338_v49 }
 0x172   : > { %1089 = vmatprep.mubr.bf16.mxu1 %v3340_v50 }
 0x179   : > { %1090 = vmatmul.mubr.bf16.gmra.mrb[92].mxu1 %v3348_v3 }
 0x17a   : > { %1099 = vmatprep.mubr.bf16.mxu1 %v3350_v4 }
 0x181   : > { %1100 = vmatmul.mubr.bf16.gmra.mrb[96].mxu1 %v3358_v21 }
 0x182   : > { %1109 = vmatprep.mubr.bf16.mxu1 %v3360_v22 }
 0x189   : > { %1110 = vmatmul.mubr.bf16.gmra.mrb[100].mxu1 %v3368_v31 }
 0x18a   : > { %1119 = vmatprep.mubr.bf16.mxu1 %v3370_v32 }
 0x191   : > { %1120 = vmatmul.mubr.bf16.gmra.mrb[104].mxu1 %v3378_v45 }
 0x192   : > { %1129 = vmatprep.mubr.bf16.mxu1 %v3380_v46 }
 0x194   : > { %v828_v6 = vpop.f32.mrb[0].mxu1 }
 0x195   : > { %v829_v7 = vadd.f32 %v828_v6, %v3463_v61  ;;  %v830_v19 = vpop.f32.mrb[1].mxu1 }
 0x196   : > { %v831_v20 = vadd.f32 %v830_v19, %v3468_v63  ;;  %v832_v33 = vpop.f32.mrb[2].mxu1 }
 0x197   : > { %v833_v34 = vadd.f32 %v832_v33, %v3463_v61  ;;  %v834_v49 = vpop.f32.mrb[3].mxu1  ;;  %v1180_v3 = vmax.f32 %v829_v7, 0.0  ;;  %v2853_v7 = vld [vmem:[#allocation7 + $0x154] ss:$8 sps:$4 sm:$0xff]  }
 0x198   : > { %v835_v50 = vadd.f32 %v834_v49, %v3468_v63  ;;  %v1181_v21 = vmax.f32 %v831_v20, 0.0 }
 0x199   : > { %v1184_v4 = vmax.f32 %v833_v34, 0.0  ;;  %1130 = vmatmul.mubr.bf16.gmra.mrb[108].mxu1 %v3388_v57  ;;  %v2851_v34 = vld [vmem:[#allocation7 + $0x150] ss:$8 sps:$4 sm:$0xff]  }
 0x19a   : > { %v1185_v22 = vmax.f32 %v835_v50, 0.0  ;;  %1139 = vmatprep.mubr.bf16.mxu1 %v3390_v59 }
 0x19b   : > { %v1308_v31 = vpack.c.bf16 %v1184_v4, %v1180_v3  ;;  %v2856_v3 = vld [vmem:[#allocation7 + $0x164] ss:$8 sps:$4 sm:$0xff]  }
 0x19c   : > { %v838_v32 = vpop.f32.mrb[4].mxu1  ;;  %v1309_v36 = vpack.c.bf16 %v1185_v22, %v1181_v21 }
 0x19d   : > { %v839_v38 = vadd.f32 %v838_v32, %v3463_v61  ;;  %v840_v39 = vpop.f32.mrb[5].mxu1 }
 0x19e   : > { %v841_v43 = vadd.f32 %v840_v39, %v3468_v63  ;;  %v842_v44 = vpop.f32.mrb[6].mxu1  ;;  %1800 = vmatprep.mubr.bf16.mxu0 %v1309_v36  ;;  %v2854_v36 = vld [vmem:[#allocation7 + $0x160] ss:$8 sps:$4 sm:$0xff]   ;;  %v2859_v39 = vld [vmem:[#allocation7 + $0x174] ss:$8 sps:$4 sm:$0xff]  }
 0x19f   : > { %v843_v45 = vadd.f32 %v842_v44, %v3463_v61  ;;  %v844_v46 = vpop.f32.mrb[7].mxu1  ;;  %1801 = vmatmul.mubr.bf16.vlgmr.msra.gmra.mrb[0].mxu0 %v1308_v31  ;;  %v1188_v52 = vmax.f32 %v839_v38, 0.0 }
 0x1a0   : > { %v845_v47 = vadd.f32 %v844_v46, %v3468_v63  ;;  %1962 = vmatpush1.bf16.msra.mxu0 %v2836_v37  ;;  %v1189_v56 = vmax.f32 %v841_v43, 0.0 }
 0x1a1   : > { %v1192_v54 = vmax.f32 %v843_v45, 0.0  ;;  %1140 = vmatmul.mubr.bf16.gmra.mrb[112].mxu1 %v3398_v9  ;;  %1963 = vmatprep.subr.bf16.mxu0 %v2841_v41  ;;  %v2857_v45 = vld [vmem:[#allocation7 + $0x170] ss:$8 sps:$4 sm:$0xff]  }
 0x1a2   : > { %v1193_v57 = vmax.f32 %v845_v47, 0.0  ;;  %1149 = vmatprep.mubr.bf16.mxu1 %v3400_v10 }
 0x1a3   : > { %v1312_v58 = vpack.c.bf16 %v1192_v54, %v1188_v52 }
 0x1a4   : > { %v1313_v59 = vpack.c.bf16 %v1193_v57, %v1189_v56  ;;  %v848_v60 = vpop.f32.mrb[8].mxu1  ;;  %1964 = vmatpush1.bf16.msra.mxu0 %v2839_v48  ;;  %v2862_v48 = vld [vmem:[#allocation7 + $0x184] ss:$8 sps:$4 sm:$0xff]  }
 0x1a5   : > { %v849_v0 = vadd.f32 %v848_v60, %v3463_v61  ;;  %v850_v1 = vpop.f32.mrb[9].mxu1  ;;  %1965 = vmatprep.subr.bf16.mxu0 %v2844_v55 }
 0x1a6   : > { %v851_v5 = vadd.f32 %v850_v1, %v3468_v63  ;;  %v852_v8 = vpop.f32.mrb[10].mxu1  ;;  %1810 = vmatprep.mubr.bf16.mxu0 %v1313_v59 }
 0x1a7   : > { %v853_v9 = vadd.f32 %v852_v8, %v3463_v61  ;;  %v854_v11 = vpop.f32.mrb[11].mxu1  ;;  %1811 = vmatmul.mubr.bf16.gmra.mrb[4].mxu0 %v1312_v58  ;;  %v1196_v13 = vmax.f32 %v849_v0, 0.0  ;;  %v2860_v58 = vld [vmem:[#allocation7 + $0x180] ss:$8 sps:$4 sm:$0xff]   ;;  %v2863_v8 = vld [vmem:[#allocation7 + $0x190] ss:$8 sps:$4 sm:$0xff]  }
 0x1a8   : > { %v855_v10 = vadd.f32 %v854_v11, %v3468_v63  ;;  %1966 = vmatpush1.bf16.msra.mxu0 %v2842_v62  ;;  %v1197_v23 = vmax.f32 %v851_v5, 0.0  ;;  %v2865_v62 = vld [vmem:[#allocation7 + $0x194] ss:$8 sps:$4 sm:$0xff]  }
 0x1a9   : > { %v1200_v14 = vmax.f32 %v853_v9, 0.0  ;;  %1150 = vmatmul.mubr.bf16.gmra.mrb[116].mxu1 %v3408_v17  ;;  %1967 = vmatprep.subr.bf16.mxu0 %v2847_v2 }
 0x1aa   : > { %v1201_v24 = vmax.f32 %v855_v10, 0.0  ;;  %1159 = vmatprep.mubr.bf16.mxu1 %v3410_v18  ;;  %v2868_v10 = vld [vmem:[#allocation7 + $0x1a4] ss:$8 sps:$4 sm:$0xff]  }
 0x1ab   : > { %v1316_v25 = vpack.c.bf16 %v1200_v14, %v1196_v13 }
 0x1ac   : > { %v1317_v26 = vpack.c.bf16 %v1201_v24, %v1197_v23  ;;  %v858_v29 = vpop.f32.mrb[12].mxu1  ;;  %1968 = vmatpush1.bf16.msra.mxu0 %v2845_v12  ;;  %v2866_v24 = vld [vmem:[#allocation7 + $0x1a0] ss:$8 sps:$4 sm:$0xff]  }
 0x1ad   : > { %v859_v15 = vadd.f32 %v858_v29, %v3463_v61  ;;  %v860_v6 = vpop.f32.mrb[13].mxu1  ;;  %1969 = vmatprep.subr.bf16.mxu0 %v2850_v16  ;;  %v2871_v29 = vld [vmem:[#allocation7 + $0x1b4] ss:$8 sps:$4 sm:$0xff]  }
 0x1ae   : > { %v861_v19 = vadd.f32 %v860_v6, %v3468_v63  ;;  %v862_v20 = vpop.f32.mrb[14].mxu1  ;;  %1820 = vmatprep.mubr.bf16.mxu0 %v1317_v26 }
 0x1af   : > { %v863_v17 = vadd.f32 %v862_v20, %v3463_v61  ;;  %v864_v33 = vpop.f32.mrb[15].mxu1  ;;  %1821 = vmatmul.mubr.bf16.gmra.mrb[8].mxu0 %v1316_v25  ;;  %v1204_v49 = vmax.f32 %v859_v15, 0.0  ;;  %v2869_v20 = vld [vmem:[#allocation7 + $0x1b0] ss:$8 sps:$4 sm:$0xff]  }
 0x1b0   : > { %v865_v18 = vadd.f32 %v864_v33, %v3468_v63  ;;  %1970 = vmatpush1.bf16.msra.mxu0 %v2848_v30  ;;  %v1205_v4 = vmax.f32 %v861_v19, 0.0 }
 0x1b1   : > { %v1208_v50 = vmax.f32 %v863_v17, 0.0  ;;  %1160 = vmatmul.mubr.bf16.gmra.mrb[120].mxu1 %v3418_v27  ;;  %1971 = vmatprep.subr.bf16.mxu0 %v2853_v7 }
 0x1b2   : > { %v1209_v21 = vmax.f32 %v865_v18, 0.0  ;;  %1169 = vmatprep.mubr.bf16.mxu1 %v3420_v28  ;;  %v2874_v18 = vld [vmem:[#allocation7 + $0x1c4] ss:$8 sps:$4 sm:$0xff]  }
 0x1b3   : > { %v1320_v22 = vpack.c.bf16 %v1208_v50, %v1204_v49 }
 0x1b4   : > { %v1321_v31 = vpack.c.bf16 %v1209_v21, %v1205_v4  ;;  %v868_v32 = vpop.f32.mrb[16].mxu1  ;;  %1972 = vmatpush1.bf16.msra.mxu0 %v2851_v34  ;;  %v2872_v21 = vld [vmem:[#allocation7 + $0x1c0] ss:$8 sps:$4 sm:$0xff]  }
 0x1b5   : > { %v869_v37 = vadd.f32 %v868_v32, %v3463_v61  ;;  %v870_v38 = vpop.f32.mrb[17].mxu1  ;;  %1973 = vmatprep.subr.bf16.mxu0 %v2856_v3  ;;  %v2877_v32 = vld [vmem:[#allocation7 + $0x1d4] ss:$8 sps:$4 sm:$0xff]  }
 0x1b6   : > { %v871_v41 = vadd.f32 %v870_v38, %v3468_v63  ;;  %v872_v43 = vpop.f32.mrb[18].mxu1  ;;  %1830 = vmatprep.mubr.bf16.mxu0 %v1321_v31 }
 0x1b7   : > { %v873_v27 = vadd.f32 %v872_v43, %v3463_v61  ;;  %v874_v44 = vpop.f32.mrb[19].mxu1  ;;  %1831 = vmatmul.mubr.bf16.gmra.mrb[12].mxu0 %v1320_v22  ;;  %v1212_v46 = vmax.f32 %v869_v37, 0.0  ;;  %v2875_v43 = vld [vmem:[#allocation7 + $0x1d0] ss:$8 sps:$4 sm:$0xff]  }
 0x1b8   : > { %v875_v28 = vadd.f32 %v874_v44, %v3468_v63  ;;  %1974 = vmatpush1.bf16.msra.mxu0 %v2854_v36  ;;  %v1213_v52 = vmax.f32 %v871_v41, 0.0 }
 0x1b9   : > { %v1216_v47 = vmax.f32 %v873_v27, 0.0  ;;  %1170 = vmatmul.mubr.bf16.gmra.mrb[124].mxu1 %v3426_v35  ;;  %1975 = vmatprep.subr.bf16.mxu0 %v2859_v39 }
 0x1ba   : > { %v1217_v54 = vmax.f32 %v875_v28, 0.0  ;;  %v2880_v28 = vld [vmem:[#allocation7 + $0x1e4] ss:$8 sps:$4 sm:$0xff]  }
 0x1bb   : > { %v1324_v55 = vpack.c.bf16 %v1216_v47, %v1212_v46 }
 0x1bc   : > { %v1325_v56 = vpack.c.bf16 %v1217_v54, %v1213_v52  ;;  %v878_v57 = vpop.f32.mrb[20].mxu1  ;;  %1976 = vmatpush1.bf16.msra.mxu0 %v2857_v45  ;;  %v2878_v54 = vld [vmem:[#allocation7 + $0x1e0] ss:$8 sps:$4 sm:$0xff]  }
 0x1bd   : > { %v879_v59 = vadd.f32 %v878_v57, %v3463_v61  ;;  %v880_v60 = vpop.f32.mrb[21].mxu1  ;;  %1977 = vmatprep.subr.bf16.mxu0 %v2862_v48  ;;  %v2883_v57 = vld [vmem:[#allocation7 + $0x1f4] ss:$8 sps:$4 sm:$0xff]  }
 0x1be   : > { %v881_v0 = vadd.f32 %v880_v60, %v3468_v63  ;;  %v882_v1 = vpop.f32.mrb[22].mxu1  ;;  %1840 = vmatprep.mubr.bf16.mxu0 %v1325_v56 }
 0x1bf   : > { %v883_v35 = vadd.f32 %v882_v1, %v3463_v61  ;;  %v884_v2 = vpop.f32.mrb[23].mxu1  ;;  %1841 = vmatmul.mubr.bf16.gmra.mrb[16].mxu0 %v1324_v55  ;;  %v1220_v9 = vmax.f32 %v879_v59, 0.0  ;;  %v2881_v1 = vld [vmem:[#allocation7 + $0x1f0] ss:$8 sps:$4 sm:$0xff]  }
 0x1c0   : > { %v885_v5 = vadd.f32 %v884_v2, %v3468_v63  ;;  %1978 = vmatpush1.bf16.msra.mxu0 %v2860_v58  ;;  %v1221_v12 = vmax.f32 %v881_v0, 0.0 }
 0x1c1   : > { %v1224_v11 = vmax.f32 %v883_v35, 0.0  ;;  %1979 = vmatprep.subr.bf16.mxu0 %v2865_v62 }
 0x1c2   : > { %v1225_v13 = vmax.f32 %v885_v5, 0.0 }
 0x1c3   : > { %v1328_v14 = vpack.c.bf16 %v1224_v11, %v1220_v9 }
 0x1c4   : > { %v1329_v16 = vpack.c.bf16 %v1225_v13, %v1221_v12  ;;  %v888_v23 = vpop.f32.mrb[24].mxu1  ;;  %1980 = vmatpush1.bf16.msra.mxu0 %v2863_v8 }
 0x1c5   : > { %v889_v25 = vadd.f32 %v888_v23, %v3463_v61  ;;  %v890_v26 = vpop.f32.mrb[25].mxu1  ;;  %1981 = vmatprep.subr.bf16.mxu0 %v2868_v10 }
 0x1c6   : > { %v891_v30 = vadd.f32 %v890_v26, %v3468_v63  ;;  %v892_v15 = vpop.f32.mrb[26].mxu1  ;;  %1850 = vmatprep.mubr.bf16.mxu0 %v1329_v16 }
 0x1c7   : > { %v893_v6 = vadd.f32 %v892_v15, %v3463_v61  ;;  %v894_v7 = vpop.f32.mrb[27].mxu1  ;;  %1851 = vmatmul.mubr.bf16.gmra.mrb[20].mxu0 %v1328_v14  ;;  %v1228_v17 = vmax.f32 %v889_v25, 0.0 }
 0x1c8   : > { %v895_v19 = vadd.f32 %v894_v7, %v3468_v63  ;;  %1982 = vmatpush1.bf16.msra.mxu0 %v2866_v24  ;;  %v1229_v34 = vmax.f32 %v891_v30, 0.0 }
 0x1c9   : > { %v1232_v33 = vmax.f32 %v893_v6, 0.0  ;;  %1983 = vmatprep.subr.bf16.mxu0 %v2871_v29 }
 0x1ca   : > { %v1233_v49 = vmax.f32 %v895_v19, 0.0 }
 0x1cb   : > { %v1332_v50 = vpack.c.bf16 %v1232_v33, %v1228_v17 }
 0x1cc   : > { %v1333_v3 = vpack.c.bf16 %v1233_v49, %v1229_v34  ;;  %v898_v4 = vpop.f32.mrb[28].mxu1  ;;  %1984 = vmatpush1.bf16.msra.mxu0 %v2869_v20 }
 0x1cd   : > { %v899_v22 = vadd.f32 %v898_v4, %v3463_v61  ;;  %v900_v31 = vpop.f32.mrb[29].mxu1  ;;  %1985 = vmatprep.subr.bf16.mxu0 %v2874_v18 }
 0x1ce   : > { %v901_v36 = vadd.f32 %v900_v31, %v3468_v63  ;;  %v902_v37 = vpop.f32.mrb[30].mxu1  ;;  %1860 = vmatprep.mubr.bf16.mxu0 %v1333_v3 }
 0x1cf   : > { %v903_v38 = vadd.f32 %v902_v37, %v3463_v61  ;;  %v904_v39 = vpop.f32.mrb[31].mxu1  ;;  %1861 = vmatmul.mubr.bf16.gmra.mrb[24].mxu0 %v1332_v50  ;;  %v1236_v27 = vmax.f32 %v899_v22, 0.0 }
 0x1d0   : > { %v905_v41 = vadd.f32 %v904_v39, %v3468_v63  ;;  %1986 = vmatpush1.bf16.msra.mxu0 %v2872_v21  ;;  %v1237_v45 = vmax.f32 %v901_v36, 0.0 }
 0x1d1   : > { %v1240_v44 = vmax.f32 %v903_v38, 0.0  ;;  %1987 = vmatprep.subr.bf16.mxu0 %v2877_v32 }
 0x1d2   : > { %v1241_v46 = vmax.f32 %v905_v41, 0.0 }
 0x1d3   : > { %v1336_v47 = vpack.c.bf16 %v1240_v44, %v1236_v27 }
 0x1d4   : > { %v1337_v48 = vpack.c.bf16 %v1241_v46, %v1237_v45  ;;  %v908_v52 = vpop.f32.mrb[32].mxu1  ;;  %1988 = vmatpush1.bf16.msra.mxu0 %v2875_v43 }
 0x1d5   : > { %v909_v55 = vadd.f32 %v908_v52, %v3463_v61  ;;  %v910_v56 = vpop.f32.mrb[33].mxu1  ;;  %1989 = vmatprep.subr.bf16.mxu0 %v2880_v28 }
 0x1d6   : > { %v911_v58 = vadd.f32 %v910_v56, %v3468_v63  ;;  %v912_v59 = vpop.f32.mrb[34].mxu1  ;;  %1870 = vmatprep.mubr.bf16.mxu0 %v1337_v48 }
 0x1d7   : > { %v913_v60 = vadd.f32 %v912_v59, %v3463_v61  ;;  %v914_v62 = vpop.f32.mrb[35].mxu1  ;;  %1871 = vmatmul.mubr.bf16.gmra.mrb[28].mxu0 %v1336_v47  ;;  %v1244_v35 = vmax.f32 %v909_v55, 0.0 }
 0x1d8   : > { %v915_v0 = vadd.f32 %v914_v62, %v3468_v63  ;;  %1990 = vmatpush1.bf16.msra.mxu0 %v2878_v54  ;;  %v1245_v5 = vmax.f32 %v911_v58, 0.0 }
 0x1d9   : > { %v1248_v2 = vmax.f32 %v913_v60, 0.0  ;;  %1991 = vmatprep.subr.bf16.mxu0 %v2883_v57 }
 0x1da   : > { %v1249_v8 = vmax.f32 %v915_v0, 0.0 }
 0x1db   : > { %v1340_v9 = vpack.c.bf16 %v1248_v2, %v1244_v35 }
 0x1dc   : > { %v1341_v11 = vpack.c.bf16 %v1249_v8, %v1245_v5  ;;  %v918_v10 = vpop.f32.mrb[36].mxu1  ;;  %1992 = vmatpush1.bf16.msra.mxu0 %v2881_v1 }
 0x1dd   : > { %v919_v12 = vadd.f32 %v918_v10, %v3463_v61  ;;  %v920_v13 = vpop.f32.mrb[37].mxu1 }
 0x1de   : > { %v921_v14 = vadd.f32 %v920_v13, %v3468_v63  ;;  %v922_v16 = vpop.f32.mrb[38].mxu1  ;;  %1880 = vmatprep.mubr.bf16.mxu0 %v1341_v11 }
 0x1df   : > { %v923_v23 = vadd.f32 %v922_v16, %v3463_v61  ;;  %v924_v24 = vpop.f32.mrb[39].mxu1  ;;  %1881 = vmatmul.mubr.bf16.gmra.mrb[32].mxu0 %v1340_v9  ;;  %v1252_v26 = vmax.f32 %v919_v12, 0.0 }
 0x1e0   : > { %v925_v25 = vadd.f32 %v924_v24, %v3468_v63  ;;  %v1253_v30 = vmax.f32 %v921_v14, 0.0 }
 0x1e1   : > { %v1256_v29 = vmax.f32 %v923_v23, 0.0 }
 0x1e2   : > { %v1257_v15 = vmax.f32 %v925_v25, 0.0 }
 0x1e3   : > { %v1344_v6 = vpack.c.bf16 %v1256_v29, %v1252_v26 }
 0x1e4   : > { %v1345_v7 = vpack.c.bf16 %v1257_v15, %v1253_v30  ;;  %v928_v19 = vpop.f32.mrb[40].mxu1 }
 0x1e5   : > { %v929_v20 = vadd.f32 %v928_v19, %v3463_v61  ;;  %v930_v17 = vpop.f32.mrb[41].mxu1 }
 0x1e6   : > { %v931_v33 = vadd.f32 %v930_v17, %v3468_v63  ;;  %v932_v18 = vpop.f32.mrb[42].mxu1  ;;  %1890 = vmatprep.mubr.bf16.mxu0 %v1345_v7 }
 0x1e7   : > { %v933_v34 = vadd.f32 %v932_v18, %v3463_v61  ;;  %v934_v49 = vpop.f32.mrb[43].mxu1  ;;  %1891 = vmatmul.mubr.bf16.gmra.mrb[36].mxu0 %v1344_v6  ;;  %v1260_v3 = vmax.f32 %v929_v20, 0.0 }
 0x1e8   : > { %v935_v50 = vadd.f32 %v934_v49, %v3468_v63  ;;  %v1261_v21 = vmax.f32 %v931_v33, 0.0 }
 0x1e9   : > { %v1264_v4 = vmax.f32 %v933_v34, 0.0 }
 0x1ea   : > { %v1265_v22 = vmax.f32 %v935_v50, 0.0 }
 0x1eb   : > { %v1348_v31 = vpack.c.bf16 %v1264_v4, %v1260_v3 }
 0x1ec   : > { %v1349_v32 = vpack.c.bf16 %v1265_v22, %v1261_v21  ;;  %v938_v36 = vpop.f32.mrb[44].mxu1 }
 0x1ed   : > { %v939_v37 = vadd.f32 %v938_v36, %v3463_v61  ;;  %v940_v38 = vpop.f32.mrb[45].mxu1 }
 0x1ee   : > { %v941_v39 = vadd.f32 %v940_v38, %v3468_v63  ;;  %v942_v41 = vpop.f32.mrb[46].mxu1  ;;  %1900 = vmatprep.mubr.bf16.mxu0 %v1349_v32 }
 0x1ef   : > { %v943_v43 = vadd.f32 %v942_v41, %v3463_v61  ;;  %v944_v27 = vpop.f32.mrb[47].mxu1  ;;  %1901 = vmatmul.mubr.bf16.gmra.mrb[40].mxu0 %v1348_v31  ;;  %v1268_v28 = vmax.f32 %v939_v37, 0.0  ;;  %v464_v37 = vsub.s32 2, %v3449_v40  ;;  %v468_v41 = vsub.s32 3, %v3449_v40 }
 0x1f0   : > { %v945_v44 = vadd.f32 %v944_v27, %v3468_v63  ;;  %v1269_v46 = vmax.f32 %v941_v39, 0.0 }
 0x1f1   : > { %v1272_v45 = vmax.f32 %v943_v43, 0.0 }
 0x1f2   : > { %v1273_v47 = vmax.f32 %v945_v44, 0.0 }
 0x1f3   : > { %v1352_v48 = vpack.c.bf16 %v1272_v45, %v1268_v28 }
 0x1f4   : > { %v1353_v52 = vpack.c.bf16 %v1273_v47, %v1269_v46  ;;  %v948_v54 = vpop.f32.mrb[48].mxu1  ;;  %v3547_v46 = vrot.slane %v3456_v51, %v464_v37 }
 0x1f5   : > { %v949_v55 = vadd.f32 %v948_v54, %v3463_v61  ;;  %v950_v56 = vpop.f32.mrb[49].mxu1 }
 0x1f6   : > { %v951_v57 = vadd.f32 %v950_v56, %v3468_v63  ;;  %v952_v58 = vpop.f32.mrb[50].mxu1  ;;  %1910 = vmatprep.mubr.bf16.mxu0 %v1353_v52  ;;  %v3550_v52 = vrot.slane %v3456_v51, %v468_v41 }
 0x1f7   : > { %v953_v59 = vadd.f32 %v952_v58, %v3463_v61  ;;  %v954_v60 = vpop.f32.mrb[51].mxu1  ;;  %1911 = vmatmul.mubr.bf16.gmra.mrb[44].mxu0 %v1352_v48  ;;  %v1276_v0 = vmax.f32 %v949_v55, 0.0 }
 0x1f8   : > { %v955_v62 = vadd.f32 %v954_v60, %v3468_v63  ;;  %v1277_v35 = vmax.f32 %v951_v57, 0.0 }
 0x1f9   : > { %v1280_v1 = vmax.f32 %v953_v59, 0.0 }
 0x1fa   : > { %v1281_v2 = vmax.f32 %v955_v62, 0.0 }
 0x1fb   : > { %v1356_v5 = vpack.c.bf16 %v1280_v1, %v1276_v0 }
 0x1fc   : > { %v1357_v8 = vpack.c.bf16 %v1281_v2, %v1277_v35  ;;  %v958_v9 = vpop.f32.mrb[52].mxu1 }
 0x1fd   : > { %v959_v11 = vadd.f32 %v958_v9, %v3463_v61  ;;  %v960_v10 = vpop.f32.mrb[53].mxu1 }
 0x1fe   : > { %v961_v12 = vadd.f32 %v960_v10, %v3468_v63  ;;  %v962_v13 = vpop.f32.mrb[54].mxu1  ;;  %1920 = vmatprep.mubr.bf16.mxu0 %v1357_v8 }
 0x1ff   : > { %v963_v14 = vadd.f32 %v962_v13, %v3463_v61  ;;  %v964_v16 = vpop.f32.mrb[55].mxu1  ;;  %1921 = vmatmul.mubr.bf16.gmra.mrb[48].mxu0 %v1356_v5  ;;  %v1284_v24 = vmax.f32 %v959_v11, 0.0 }
 0x200   : > { %v965_v23 = vadd.f32 %v964_v16, %v3468_v63  ;;  %v1285_v26 = vmax.f32 %v961_v12, 0.0 }
 0x201   : > { %v1288_v25 = vmax.f32 %v963_v14, 0.0 }
 0x202   : > { %v1289_v29 = vmax.f32 %v965_v23, 0.0 }
 0x203   : > { %v1360_v30 = vpack.c.bf16 %v1288_v25, %v1284_v24 }
 0x204   : > { %v1361_v15 = vpack.c.bf16 %v1289_v29, %v1285_v26  ;;  %v968_v6 = vpop.f32.mrb[56].mxu1 }
 0x205   : > { %v969_v7 = vadd.f32 %v968_v6, %v3463_v61  ;;  %v970_v19 = vpop.f32.mrb[57].mxu1 }
 0x206   : > { %v971_v20 = vadd.f32 %v970_v19, %v3468_v63  ;;  %v972_v17 = vpop.f32.mrb[58].mxu1  ;;  %1930 = vmatprep.mubr.bf16.mxu0 %v1361_v15 }
 0x207   : > { %v973_v33 = vadd.f32 %v972_v17, %v3463_v61  ;;  %v974_v18 = vpop.f32.mrb[59].mxu1  ;;  %1931 = vmatmul.mubr.bf16.gmra.mrb[52].mxu0 %v1360_v30  ;;  %v1292_v49 = vmax.f32 %v969_v7, 0.0 }
 0x208   : > { %v975_v34 = vadd.f32 %v974_v18, %v3468_v63  ;;  %v1293_v3 = vmax.f32 %v971_v20, 0.0 }
 0x209   : > { %v1296_v50 = vmax.f32 %v973_v33, 0.0 }
 0x20a   : > { %v1297_v4 = vmax.f32 %v975_v34, 0.0 }
 0x20b   : > { %v1364_v21 = vpack.c.bf16 %v1296_v50, %v1292_v49 }
 0x20c   : > { %v1365_v22 = vpack.c.bf16 %v1297_v4, %v1293_v3  ;;  %v978_v31 = vpop.f32.mrb[60].mxu1 }
 0x20d   : > { %v979_v32 = vadd.f32 %v978_v31, %v3463_v61  ;;  %v980_v36 = vpop.f32.mrb[61].mxu1 }
 0x20e   : > { %v981_v38 = vadd.f32 %v980_v36, %v3468_v63  ;;  %v982_v39 = vpop.f32.mrb[62].mxu1  ;;  %1940 = vmatprep.mubr.bf16.mxu0 %v1365_v22 }
 0x20f   : > { %v983_v43 = vadd.f32 %v982_v39, %v3463_v61  ;;  %v984_v27 = vpop.f32.mrb[63].mxu1  ;;  %1941 = vmatmul.mubr.bf16.gmra.mrb[56].mxu0 %v1364_v21  ;;  %v1300_v28 = vmax.f32 %v979_v32, 0.0 }
 0x210   : > { %v985_v44 = vadd.f32 %v984_v27, %v3468_v63  ;;  %v1301_v47 = vmax.f32 %v981_v38, 0.0 }
 0x211   : > { %v1304_v45 = vmax.f32 %v983_v43, 0.0 }
 0x212   : > { %v1305_v48 = vmax.f32 %v985_v44, 0.0 }
 0x213   : > { %v1368_v54 = vpack.c.bf16 %v1304_v45, %v1300_v28 }
 0x214   : > { %v1369_v55 = vpack.c.bf16 %v1305_v48, %v1301_v47  ;;  %v1021_v56 = vpop.f32.mrb[64].mxu1 }
 0x215   : > { %v1022_v57 = vadd.f32 %v1021_v56, %v3547_v46  ;;  %v1023_v61 = vpop.f32.mrb[65].mxu1 }
 0x216   : > { %v1024_v58 = vadd.f32 %v1023_v61, %v3550_v52  ;;  %v1025_v59 = vpop.f32.mrb[66].mxu1  ;;  %1950 = vmatprep.mubr.bf16.mxu0 %v1369_v55 }
 0x217   : > { %v1026_v63 = vadd.f32 %v1025_v59, %v3547_v46  ;;  %v1027_v60 = vpop.f32.mrb[67].mxu1  ;;  %1951 = vmatmul.mubr.bf16.gmra.mrb[60].mxu0 %v1368_v54  ;;  %v1182_v0 = vmax.f32 %v1022_v57, 0.0 }
 0x218   : > { %v1028_v62 = vadd.f32 %v1027_v60, %v3550_v52  ;;  %v1183_v51 = vmax.f32 %v1024_v58, 0.0 }
 0x219   : > { %v1186_v1 = vmax.f32 %v1026_v63, 0.0 }
 0x21a   : > { %v1187_v35 = vmax.f32 %v1028_v62, 0.0 }
 0x21b   : > { %v1310_v2 = vpack.c.bf16 %v1186_v1, %v1182_v0 }
 0x21c   : > { %v1311_v5 = vpack.c.bf16 %v1187_v35, %v1183_v51  ;;  %v1031_v8 = vpop.f32.mrb[68].mxu1 }
 0x21d   : > { %v1032_v9 = vadd.f32 %v1031_v8, %v3547_v46  ;;  %v1033_v11 = vpop.f32.mrb[69].mxu1 }
 0x21e   : > { %v1034_v10 = vadd.f32 %v1033_v11, %v3550_v52  ;;  %v1035_v12 = vpop.f32.mrb[70].mxu1  ;;  %1993 = vmatprep.mubr.bf16.mxu0 %v1311_v5 }
 0x21f   : > { %v1036_v13 = vadd.f32 %v1035_v12, %v3547_v46  ;;  %v1037_v14 = vpop.f32.mrb[71].mxu1  ;;  %1994 = vmatmul.mubr.bf16.vlgmr.msra.gmra.mrb[0].mxu0 %v1310_v2  ;;  %v1190_v23 = vmax.f32 %v1032_v9, 0.0 }
 0x220   : > { %v1038_v16 = vadd.f32 %v1037_v14, %v3550_v52  ;;  %v1191_v25 = vmax.f32 %v1034_v10, 0.0 }
 0x221   : > { %v1194_v24 = vmax.f32 %v1036_v13, 0.0 }
 0x222   : > { %v1195_v26 = vmax.f32 %v1038_v16, 0.0 }
 0x223   : > { %v1314_v29 = vpack.c.bf16 %v1194_v24, %v1190_v23 }
 0x224   : > { %v1315_v30 = vpack.c.bf16 %v1195_v26, %v1191_v25  ;;  %v1041_v15 = vpop.f32.mrb[72].mxu1 }
 0x225   : > { %v1042_v6 = vadd.f32 %v1041_v15, %v3547_v46  ;;  %v1043_v7 = vpop.f32.mrb[73].mxu1 }
 0x226   : > { %v1044_v19 = vadd.f32 %v1043_v7, %v3550_v52  ;;  %v1045_v20 = vpop.f32.mrb[74].mxu1  ;;  %2003 = vmatprep.mubr.bf16.mxu0 %v1315_v30 }
 0x227   : > { %v1046_v17 = vadd.f32 %v1045_v20, %v3547_v46  ;;  %v1047_v33 = vpop.f32.mrb[75].mxu1  ;;  %2004 = vmatmul.mubr.bf16.gmra.mrb[4].mxu0 %v1314_v29  ;;  %v1198_v34 = vmax.f32 %v1042_v6, 0.0 }
 0x228   : > { %v1048_v18 = vadd.f32 %v1047_v33, %v3550_v52  ;;  %v1199_v50 = vmax.f32 %v1044_v19, 0.0 }
 0x229   : > { %v1202_v49 = vmax.f32 %v1046_v17, 0.0 }
 0x22a   : > { %v1203_v3 = vmax.f32 %v1048_v18, 0.0 }
 0x22b   : > { %v1318_v4 = vpack.c.bf16 %v1202_v49, %v1198_v34 }
 0x22c   : > { %v1319_v21 = vpack.c.bf16 %v1203_v3, %v1199_v50  ;;  %v1051_v22 = vpop.f32.mrb[76].mxu1 }
 0x22d   : > { %v1052_v31 = vadd.f32 %v1051_v22, %v3547_v46  ;;  %v1053_v32 = vpop.f32.mrb[77].mxu1 }
 0x22e   : > { %v1054_v36 = vadd.f32 %v1053_v32, %v3550_v52  ;;  %v1055_v37 = vpop.f32.mrb[78].mxu1  ;;  %2013 = vmatprep.mubr.bf16.mxu0 %v1319_v21 }
 0x22f   : > { %v1056_v38 = vadd.f32 %v1055_v37, %v3547_v46  ;;  %v1057_v39 = vpop.f32.mrb[79].mxu1  ;;  %2014 = vmatmul.mubr.bf16.gmra.mrb[8].mxu0 %v1318_v4  ;;  %v1206_v43 = vmax.f32 %v1052_v31, 0.0 }
 0x230   : > { %v1058_v41 = vadd.f32 %v1057_v39, %v3550_v52  ;;  %v1207_v44 = vmax.f32 %v1054_v36, 0.0 }
 0x231   : > { %v1210_v27 = vmax.f32 %v1056_v38, 0.0 }
 0x232   : > { %v1211_v28 = vmax.f32 %v1058_v41, 0.0 }
 0x233   : > { %v1322_v45 = vpack.c.bf16 %v1210_v27, %v1206_v43 }
 0x234   : > { %v1323_v47 = vpack.c.bf16 %v1211_v28, %v1207_v44  ;;  %v1061_v48 = vpop.f32.mrb[80].mxu1 }
 0x235   : > { %v1062_v54 = vadd.f32 %v1061_v48, %v3547_v46  ;;  %v1063_v55 = vpop.f32.mrb[81].mxu1 }
 0x236   : > { %v1064_v56 = vadd.f32 %v1063_v55, %v3550_v52  ;;  %v1065_v57 = vpop.f32.mrb[82].mxu1  ;;  %2023 = vmatprep.mubr.bf16.mxu0 %v1323_v47 }
 0x237   : > { %v1066_v61 = vadd.f32 %v1065_v57, %v3547_v46  ;;  %v1067_v58 = vpop.f32.mrb[83].mxu1  ;;  %2024 = vmatmul.mubr.bf16.gmra.mrb[12].mxu0 %v1322_v45  ;;  %v1214_v63 = vmax.f32 %v1062_v54, 0.0 }
 0x238   : > { %v1068_v59 = vadd.f32 %v1067_v58, %v3550_v52  ;;  %v1215_v62 = vmax.f32 %v1064_v56, 0.0 }
 0x239   : > { %v1218_v60 = vmax.f32 %v1066_v61, 0.0 }
 0x23a   : > { %v1219_v0 = vmax.f32 %v1068_v59, 0.0 }
 0x23b   : > { %v1326_v1 = vpack.c.bf16 %v1218_v60, %v1214_v63 }
 0x23c   : > { %v1327_v51 = vpack.c.bf16 %v1219_v0, %v1215_v62  ;;  %v1071_v35 = vpop.f32.mrb[84].mxu1 }
 0x23d   : > { %v1072_v2 = vadd.f32 %v1071_v35, %v3547_v46  ;;  %v1073_v5 = vpop.f32.mrb[85].mxu1 }
 0x23e   : > { %v1074_v8 = vadd.f32 %v1073_v5, %v3550_v52  ;;  %v1075_v9 = vpop.f32.mrb[86].mxu1  ;;  %2033 = vmatprep.mubr.bf16.mxu0 %v1327_v51 }
 0x23f   : > { %v1076_v11 = vadd.f32 %v1075_v9, %v3547_v46  ;;  %v1077_v10 = vpop.f32.mrb[87].mxu1  ;;  %2034 = vmatmul.mubr.bf16.gmra.mrb[16].mxu0 %v1326_v1  ;;  %v1222_v13 = vmax.f32 %v1072_v2, 0.0 }
 0x240   : > { %v1078_v12 = vadd.f32 %v1077_v10, %v3550_v52  ;;  %v1223_v16 = vmax.f32 %v1074_v8, 0.0 }
 0x241   : > { %v1226_v14 = vmax.f32 %v1076_v11, 0.0 }
 0x242   : > { %v1227_v23 = vmax.f32 %v1078_v12, 0.0 }
 0x243   : > { %v1330_v24 = vpack.c.bf16 %v1226_v14, %v1222_v13 }
 0x244   : > { %v1331_v25 = vpack.c.bf16 %v1227_v23, %v1223_v16  ;;  %v1081_v26 = vpop.f32.mrb[88].mxu1 }
 0x245   : > { %v1082_v29 = vadd.f32 %v1081_v26, %v3547_v46  ;;  %v1083_v30 = vpop.f32.mrb[89].mxu1 }
 0x246   : > { %v1084_v15 = vadd.f32 %v1083_v30, %v3550_v52  ;;  %v1085_v6 = vpop.f32.mrb[90].mxu1  ;;  %2043 = vmatprep.mubr.bf16.mxu0 %v1331_v25 }
 0x247   : > { %v1086_v7 = vadd.f32 %v1085_v6, %v3547_v46  ;;  %v1087_v19 = vpop.f32.mrb[91].mxu1  ;;  %2044 = vmatmul.mubr.bf16.gmra.mrb[20].mxu0 %v1330_v24  ;;  %v1230_v17 = vmax.f32 %v1082_v29, 0.0 }
 0x248   : > { %v1088_v20 = vadd.f32 %v1087_v19, %v3550_v52  ;;  %v1231_v18 = vmax.f32 %v1084_v15, 0.0 }
 0x249   : > { %v1234_v33 = vmax.f32 %v1086_v7, 0.0 }
 0x24a   : > { %v1235_v34 = vmax.f32 %v1088_v20, 0.0 }
 0x24b   : > { %v1334_v49 = vpack.c.bf16 %v1234_v33, %v1230_v17 }
 0x24c   : > { %v1335_v50 = vpack.c.bf16 %v1235_v34, %v1231_v18  ;;  %v1091_v3 = vpop.f32.mrb[92].mxu1 }
 0x24d   : > { %v1092_v4 = vadd.f32 %v1091_v3, %v3547_v46  ;;  %v1093_v21 = vpop.f32.mrb[93].mxu1 }
 0x24e   : > { %v1094_v22 = vadd.f32 %v1093_v21, %v3550_v52  ;;  %v1095_v31 = vpop.f32.mrb[94].mxu1  ;;  %2053 = vmatprep.mubr.bf16.mxu0 %v1335_v50 }
 0x24f   : > { %v1096_v32 = vadd.f32 %v1095_v31, %v3547_v46  ;;  %v1097_v36 = vpop.f32.mrb[95].mxu1  ;;  %2054 = vmatmul.mubr.bf16.gmra.mrb[24].mxu0 %v1334_v49  ;;  %v1238_v38 = vmax.f32 %v1092_v4, 0.0 }
 0x250   : > { %v1098_v37 = vadd.f32 %v1097_v36, %v3550_v52  ;;  %v1239_v41 = vmax.f32 %v1094_v22, 0.0 }
 0x251   : > { %v1242_v39 = vmax.f32 %v1096_v32, 0.0 }
 0x252   : > { %v1243_v43 = vmax.f32 %v1098_v37, 0.0 }
 0x253   : > { %v1338_v27 = vpack.c.bf16 %v1242_v39, %v1238_v38 }
 0x254   : > { %v1339_v44 = vpack.c.bf16 %v1243_v43, %v1239_v41  ;;  %v1101_v28 = vpop.f32.mrb[96].mxu1 }
 0x255   : > { %v1102_v45 = vadd.f32 %v1101_v28, %v3547_v46  ;;  %v1103_v47 = vpop.f32.mrb[97].mxu1 }
 0x256   : > { %v1104_v48 = vadd.f32 %v1103_v47, %v3550_v52  ;;  %v1105_v54 = vpop.f32.mrb[98].mxu1  ;;  %2063 = vmatprep.mubr.bf16.mxu0 %v1339_v44 }
 0x257   : > { %v1106_v55 = vadd.f32 %v1105_v54, %v3547_v46  ;;  %v1107_v56 = vpop.f32.mrb[99].mxu1  ;;  %2064 = vmatmul.mubr.bf16.gmra.mrb[28].mxu0 %v1338_v27  ;;  %v1246_v61 = vmax.f32 %v1102_v45, 0.0 }
 0x258   : > { %v1108_v57 = vadd.f32 %v1107_v56, %v3550_v52  ;;  %v1247_v59 = vmax.f32 %v1104_v48, 0.0 }
 0x259   : > { %v1250_v58 = vmax.f32 %v1106_v55, 0.0 }
 0x25a   : > { %v1251_v63 = vmax.f32 %v1108_v57, 0.0 }
 0x25b   : > { %v1342_v60 = vpack.c.bf16 %v1250_v58, %v1246_v61 }
 0x25c   : > { %v1343_v62 = vpack.c.bf16 %v1251_v63, %v1247_v59  ;;  %v1111_v0 = vpop.f32.mrb[100].mxu1 }
 0x25d   : > { %v1112_v1 = vadd.f32 %v1111_v0, %v3547_v46  ;;  %v1113_v51 = vpop.f32.mrb[101].mxu1 }
 0x25e   : > { %v1114_v35 = vadd.f32 %v1113_v51, %v3550_v52  ;;  %v1115_v2 = vpop.f32.mrb[102].mxu1  ;;  %2073 = vmatprep.mubr.bf16.mxu0 %v1343_v62 }
 0x25f   : > { %v1116_v5 = vadd.f32 %v1115_v2, %v3547_v46  ;;  %v1117_v8 = vpop.f32.mrb[103].mxu1  ;;  %2074 = vmatmul.mubr.bf16.gmra.mrb[32].mxu0 %v1342_v60  ;;  %v1254_v11 = vmax.f32 %v1112_v1, 0.0 }
 0x260   : > { %v1118_v9 = vadd.f32 %v1117_v8, %v3550_v52  ;;  %v1255_v12 = vmax.f32 %v1114_v35, 0.0 }
 0x261   : > { %v1258_v10 = vmax.f32 %v1116_v5, 0.0 }
 0x262   : > { %v1259_v13 = vmax.f32 %v1118_v9, 0.0 }
 0x263   : > { %v1346_v14 = vpack.c.bf16 %v1258_v10, %v1254_v11 }
 0x264   : > { %v1347_v16 = vpack.c.bf16 %v1259_v13, %v1255_v12  ;;  %v1121_v23 = vpop.f32.mrb[104].mxu1 }
 0x265   : > { %v1122_v24 = vadd.f32 %v1121_v23, %v3547_v46  ;;  %v1123_v25 = vpop.f32.mrb[105].mxu1 }
 0x266   : > { %v1124_v26 = vadd.f32 %v1123_v25, %v3550_v52  ;;  %v1125_v29 = vpop.f32.mrb[106].mxu1  ;;  %2083 = vmatprep.mubr.bf16.mxu0 %v1347_v16 }
 0x267   : > { %v1126_v30 = vadd.f32 %v1125_v29, %v3547_v46  ;;  %v1127_v15 = vpop.f32.mrb[107].mxu1  ;;  %2084 = vmatmul.mubr.bf16.gmra.mrb[36].mxu0 %v1346_v14  ;;  %v1262_v7 = vmax.f32 %v1122_v24, 0.0 }
 0x268   : > { %v1128_v6 = vadd.f32 %v1127_v15, %v3550_v52  ;;  %v1263_v20 = vmax.f32 %v1124_v26, 0.0 }
 0x269   : > { %v1266_v19 = vmax.f32 %v1126_v30, 0.0 }
 0x26a   : > { %v1267_v17 = vmax.f32 %v1128_v6, 0.0 }
 0x26b   : > { %v1350_v33 = vpack.c.bf16 %v1266_v19, %v1262_v7 }
 0x26c   : > { %v1351_v18 = vpack.c.bf16 %v1267_v17, %v1263_v20  ;;  %v1131_v34 = vpop.f32.mrb[108].mxu1 }
 0x26d   : > { %v1132_v49 = vadd.f32 %v1131_v34, %v3547_v46  ;;  %v1133_v50 = vpop.f32.mrb[109].mxu1 }
 0x26e   : > { %v1134_v3 = vadd.f32 %v1133_v50, %v3550_v52  ;;  %v1135_v4 = vpop.f32.mrb[110].mxu1  ;;  %2093 = vmatprep.mubr.bf16.mxu0 %v1351_v18 }
 0x26f   : > { %v1136_v21 = vadd.f32 %v1135_v4, %v3547_v46  ;;  %v1137_v22 = vpop.f32.mrb[111].mxu1  ;;  %2094 = vmatmul.mubr.bf16.gmra.mrb[40].mxu0 %v1350_v33  ;;  %v1270_v32 = vmax.f32 %v1132_v49, 0.0 }
 0x270   : > { %v1138_v31 = vadd.f32 %v1137_v22, %v3550_v52  ;;  %v1271_v37 = vmax.f32 %v1134_v3, 0.0 }
 0x271   : > { %v1274_v36 = vmax.f32 %v1136_v21, 0.0 }
 0x272   : > { %v1275_v38 = vmax.f32 %v1138_v31, 0.0 }
 0x273   : > { %v1354_v39 = vpack.c.bf16 %v1274_v36, %v1270_v32 }
 0x274   : > { %v1355_v41 = vpack.c.bf16 %v1275_v38, %v1271_v37  ;;  %v1141_v43 = vpop.f32.mrb[112].mxu1  ;;  %v1436_v38 = vld [vmem:[%s3826_s4] sm:$0x3] }
 0x275   : > { %v1142_v27 = vadd.f32 %v1141_v43, %v3547_v46  ;;  %v1143_v44 = vpop.f32.mrb[113].mxu1 }
 0x276   : > { %v1144_v28 = vadd.f32 %v1143_v44, %v3550_v52  ;;  %v1145_v45 = vpop.f32.mrb[114].mxu1  ;;  %2103 = vmatprep.mubr.bf16.mxu0 %v1355_v41 }
 0x277   : > { %v1146_v47 = vadd.f32 %v1145_v45, %v3547_v46  ;;  %v1147_v48 = vpop.f32.mrb[115].mxu1  ;;  %2104 = vmatmul.mubr.bf16.gmra.mrb[44].mxu0 %v1354_v39  ;;  %v1278_v55 = vmax.f32 %v1142_v27, 0.0 }
 0x278   : > { %v1148_v54 = vadd.f32 %v1147_v48, %v3550_v52  ;;  %v1279_v57 = vmax.f32 %v1144_v28, 0.0 }
 0x279   : > { %v1282_v56 = vmax.f32 %v1146_v47, 0.0 }
 0x27a   : > { %v1283_v61 = vmax.f32 %v1148_v54, 0.0 }
 0x27b   : > { %v1358_v58 = vpack.c.bf16 %v1282_v56, %v1278_v55 }
 0x27c   : > { %v1359_v59 = vpack.c.bf16 %v1283_v61, %v1279_v57  ;;  %v1151_v63 = vpop.f32.mrb[116].mxu1 }
 0x27d   : > { %v1152_v60 = vadd.f32 %v1151_v63, %v3547_v46  ;;  %v1153_v62 = vpop.f32.mrb[117].mxu1 }
 0x27e   : > { %v1154_v0 = vadd.f32 %v1153_v62, %v3550_v52  ;;  %v1155_v1 = vpop.f32.mrb[118].mxu1  ;;  %2113 = vmatprep.mubr.bf16.mxu0 %v1359_v59 }
 0x27f   : > { %v1156_v51 = vadd.f32 %v1155_v1, %v3547_v46  ;;  %v1157_v35 = vpop.f32.mrb[119].mxu1  ;;  %2114 = vmatmul.mubr.bf16.gmra.mrb[48].mxu0 %v1358_v58  ;;  %v1286_v5 = vmax.f32 %v1152_v60, 0.0 }
 0x280   : > { %v1158_v2 = vadd.f32 %v1157_v35, %v3550_v52  ;;  %v1287_v9 = vmax.f32 %v1154_v0, 0.0 }
 0x281   : > { %v1290_v8 = vmax.f32 %v1156_v51, 0.0 }
 0x282   : > { %v1291_v11 = vmax.f32 %v1158_v2, 0.0 }
 0x283   : > { %v1362_v10 = vpack.c.bf16 %v1290_v8, %v1286_v5 }
 0x284   : > { %v1363_v12 = vpack.c.bf16 %v1291_v11, %v1287_v9  ;;  %v1161_v13 = vpop.f32.mrb[120].mxu1 }
 0x285   : > { %v1162_v14 = vadd.f32 %v1161_v13, %v3547_v46  ;;  %v1163_v16 = vpop.f32.mrb[121].mxu1 }
 0x286   : > { %v1164_v23 = vadd.f32 %v1163_v16, %v3550_v52  ;;  %v1165_v24 = vpop.f32.mrb[122].mxu1  ;;  %2123 = vmatprep.mubr.bf16.mxu0 %v1363_v12 }
 0x287   : > { %v1166_v25 = vadd.f32 %v1165_v24, %v3547_v46  ;;  %v1167_v26 = vpop.f32.mrb[123].mxu1  ;;  %2124 = vmatmul.mubr.bf16.gmra.mrb[52].mxu0 %v1362_v10  ;;  %v1294_v30 = vmax.f32 %v1162_v14, 0.0 }
 0x288   : > { %v1168_v29 = vadd.f32 %v1167_v26, %v3550_v52  ;;  %v1295_v6 = vmax.f32 %v1164_v23, 0.0 }
 0x289   : > { %v1298_v15 = vmax.f32 %v1166_v25, 0.0 }
 0x28a   : > { %v1299_v7 = vmax.f32 %v1168_v29, 0.0 }
 0x28b   : > { %v1366_v19 = vpack.c.bf16 %v1298_v15, %v1294_v30 }
 0x28c   : > { %v1367_v20 = vpack.c.bf16 %v1299_v7, %v1295_v6  ;;  %v1171_v17 = vpop.f32.mrb[124].mxu1 }
 0x28d   : > { %v1172_v33 = vadd.f32 %v1171_v17, %v3547_v46  ;;  %v1173_v18 = vpop.f32.mrb[125].mxu1 }
 0x28e   : > { %v1174_v34 = vadd.f32 %v1173_v18, %v3550_v52  ;;  %v1175_v49 = vpop.f32.mrb[126].mxu1  ;;  %2133 = vmatprep.mubr.bf16.mxu0 %v1367_v20 }
 0x28f   : > { %v1176_v50 = vadd.f32 %v1175_v49, %v3547_v46  ;;  %v1177_v3 = vpop.f32.mrb[127].mxu1  ;;  %2134 = vmatmul.mubr.bf16.gmra.mrb[56].mxu0 %v1366_v19  ;;  %v1302_v21 = vmax.f32 %v1172_v33, 0.0  ;;  %v3621_v46 = vrot.slane %v1436_v38, %v456_v42 }
 0x290   : > { %v1178_v4 = vadd.f32 %v1177_v3, %v3550_v52  ;;  %v1303_v31 = vmax.f32 %v1174_v34, 0.0  ;;  %v3625_v52 = vrot.slane %v1436_v38, %v460_v53 }
 0x291   : > { %v1306_v22 = vmax.f32 %v1176_v50, 0.0 }
 0x292   : > { %v1307_v32 = vmax.f32 %v1178_v4, 0.0 }
 0x293   : > { %v1370_v36 = vpack.c.bf16 %v1306_v22, %v1302_v21 }
 0x294   : > { %v1371_v37 = vpack.c.bf16 %v1307_v32, %v1303_v31 }
 0x296   : > { %2143 = vmatprep.mubr.bf16.mxu0 %v1371_v37 }
 0x297   : > { %2144 = vmatmul.mubr.bf16.gmra.mrb[60].mxu0 %v1370_v36 }
 0x2f2   : > { %v1995_v39 = vpop.f32.mrb[0].mxu0 }
 0x2f3   : > { %v2496_v41 = vadd.f32 %v1995_v39, %v3621_v46  ;;  %v1997_v43 = vpop.f32.mrb[1].mxu0 }
 0x2f4   : > { %v2497_v27 = vadd.f32 %v1997_v43, %v3625_v52  ;;  %v1999_v44 = vpop.f32.mrb[2].mxu0 }
 0x2f5   : > { %2154 = vst [vmem:[%s3631_s27] sm:$0xff] %v2496_v41  ;;  %v2498_v40 = vadd.f32 %v1999_v44, %v3621_v46  ;;  %v2001_v42 = vpop.f32.mrb[3].mxu0 }
 0x2f6   : > { %2155 = vst [vmem:[%s3631_s27 + $0x8] sm:$0xff] %v2497_v27  ;;  %v2499_v53 = vadd.f32 %v2001_v42, %v3625_v52 }
 0x2f7   : > { %2156 = vst [vmem:[%s3631_s27 + $0x10] sm:$0xff] %v2498_v40 }
 0x2f8   : > { %2157 = vst [vmem:[%s3631_s27 + $0x18] sm:$0xff] %v2499_v53 }
 0x2fa   : > { %v2005_v28 = vpop.f32.mrb[4].mxu0 }
 0x2fb   : > { %v2500_v45 = vadd.f32 %v2005_v28, %v3621_v46  ;;  %v2007_v47 = vpop.f32.mrb[5].mxu0 }
 0x2fc   : > { %v2501_v48 = vadd.f32 %v2007_v47, %v3625_v52  ;;  %v2009_v54 = vpop.f32.mrb[6].mxu0 }
 0x2fd   : > { %2158 = vst [vmem:[%s3631_s27 + $0x20] sm:$0xff] %v2500_v45  ;;  %v2502_v55 = vadd.f32 %v2009_v54, %v3621_v46  ;;  %v2011_v56 = vpop.f32.mrb[7].mxu0 }
 0x2fe   : > { %2159 = vst [vmem:[%s3631_s27 + $0x28] sm:$0xff] %v2501_v48  ;;  %v2503_v57 = vadd.f32 %v2011_v56, %v3625_v52 }
 0x2ff   : > { %2160 = vst [vmem:[%s3631_s27 + $0x30] sm:$0xff] %v2502_v55 }
 0x300   : > { %2161 = vst [vmem:[%s3631_s27 + $0x38] sm:$0xff] %v2503_v57 }
 0x302   : > { %v2015_v61 = vpop.f32.mrb[8].mxu0 }
 0x303   : > { %v2504_v58 = vadd.f32 %v2015_v61, %v3621_v46  ;;  %v2017_v59 = vpop.f32.mrb[9].mxu0 }
 0x304   : > { %v2505_v63 = vadd.f32 %v2017_v59, %v3625_v52  ;;  %v2019_v60 = vpop.f32.mrb[10].mxu0 }
 0x305   : > { %2162 = vst [vmem:[%s3631_s27 + $0x40] sm:$0xff] %v2504_v58  ;;  %v2506_v62 = vadd.f32 %v2019_v60, %v3621_v46  ;;  %v2021_v0 = vpop.f32.mrb[11].mxu0 }
 0x306   : > { %2163 = vst [vmem:[%s3631_s27 + $0x48] sm:$0xff] %v2505_v63  ;;  %v2507_v1 = vadd.f32 %v2021_v0, %v3625_v52 }
 0x307   : > { %2164 = vst [vmem:[%s3631_s27 + $0x50] sm:$0xff] %v2506_v62 }
 0x308   : > { %2165 = vst [vmem:[%s3631_s27 + $0x58] sm:$0xff] %v2507_v1 }
 0x30a   : > { %v2025_v51 = vpop.f32.mrb[12].mxu0 }
 0x30b   : > { %v2508_v35 = vadd.f32 %v2025_v51, %v3621_v46  ;;  %v2027_v2 = vpop.f32.mrb[13].mxu0 }
 0x30c   : > { %v2509_v5 = vadd.f32 %v2027_v2, %v3625_v52  ;;  %v2029_v8 = vpop.f32.mrb[14].mxu0 }
 0x30d   : > { %2166 = vst [vmem:[%s3631_s27 + $0x60] sm:$0xff] %v2508_v35  ;;  %v2510_v9 = vadd.f32 %v2029_v8, %v3621_v46  ;;  %v2031_v11 = vpop.f32.mrb[15].mxu0 }
 0x30e   : > { %2167 = vst [vmem:[%s3631_s27 + $0x68] sm:$0xff] %v2509_v5  ;;  %v2511_v10 = vadd.f32 %v2031_v11, %v3625_v52 }
 0x30f   : > { %2168 = vst [vmem:[%s3631_s27 + $0x70] sm:$0xff] %v2510_v9 }
 0x310   : > { %2169 = vst [vmem:[%s3631_s27 + $0x78] sm:$0xff] %v2511_v10 }
 0x312   : > { %v2035_v12 = vpop.f32.mrb[16].mxu0 }
 0x313   : > { %v2512_v13 = vadd.f32 %v2035_v12, %v3621_v46  ;;  %v2037_v14 = vpop.f32.mrb[17].mxu0 }
 0x314   : > { %v2513_v16 = vadd.f32 %v2037_v14, %v3625_v52  ;;  %v2039_v23 = vpop.f32.mrb[18].mxu0 }
 0x315   : > { %2170 = vst [vmem:[%s3631_s27 + $0x80] sm:$0xff] %v2512_v13  ;;  %v2514_v24 = vadd.f32 %v2039_v23, %v3621_v46  ;;  %v2041_v25 = vpop.f32.mrb[19].mxu0 }
 0x316   : > { %2171 = vst [vmem:[%s3631_s27 + $0x88] sm:$0xff] %v2513_v16  ;;  %v2515_v26 = vadd.f32 %v2041_v25, %v3625_v52 }
 0x317   : > { %2172 = vst [vmem:[%s3631_s27 + $0x90] sm:$0xff] %v2514_v24 }
 0x318   : > { %2173 = vst [vmem:[%s3631_s27 + $0x98] sm:$0xff] %v2515_v26 }
 0x31a   : > { %v2045_v29 = vpop.f32.mrb[20].mxu0 }
 0x31b   : > { %v2516_v30 = vadd.f32 %v2045_v29, %v3621_v46  ;;  %v2047_v15 = vpop.f32.mrb[21].mxu0 }
 0x31c   : > { %v2517_v6 = vadd.f32 %v2047_v15, %v3625_v52  ;;  %v2049_v7 = vpop.f32.mrb[22].mxu0 }
 0x31d   : > { %2174 = vst [vmem:[%s3631_s27 + $0xa0] sm:$0xff] %v2516_v30  ;;  %v2518_v19 = vadd.f32 %v2049_v7, %v3621_v46  ;;  %v2051_v20 = vpop.f32.mrb[23].mxu0 }
 0x31e   : > { %2175 = vst [vmem:[%s3631_s27 + $0xa8] sm:$0xff] %v2517_v6  ;;  %v2519_v17 = vadd.f32 %v2051_v20, %v3625_v52 }
 0x31f   : > { %2176 = vst [vmem:[%s3631_s27 + $0xb0] sm:$0xff] %v2518_v19 }
 0x320   : > { %2177 = vst [vmem:[%s3631_s27 + $0xb8] sm:$0xff] %v2519_v17 }
 0x322   : > { %v2055_v33 = vpop.f32.mrb[24].mxu0 }
 0x323   : > { %v2520_v18 = vadd.f32 %v2055_v33, %v3621_v46  ;;  %v2057_v34 = vpop.f32.mrb[25].mxu0 }
 0x324   : > { %v2521_v49 = vadd.f32 %v2057_v34, %v3625_v52  ;;  %v2059_v50 = vpop.f32.mrb[26].mxu0 }
 0x325   : > { %2178 = vst [vmem:[%s3631_s27 + $0xc0] sm:$0xff] %v2520_v18  ;;  %v2522_v3 = vadd.f32 %v2059_v50, %v3621_v46  ;;  %v2061_v4 = vpop.f32.mrb[27].mxu0 }
 0x326   : > { %2179 = vst [vmem:[%s3631_s27 + $0xc8] sm:$0xff] %v2521_v49  ;;  %v2523_v21 = vadd.f32 %v2061_v4, %v3625_v52 }
 0x327   : > { %2180 = vst [vmem:[%s3631_s27 + $0xd0] sm:$0xff] %v2522_v3 }
 0x328   : > { %2181 = vst [vmem:[%s3631_s27 + $0xd8] sm:$0xff] %v2523_v21 }
 0x32a   : > { %v2065_v22 = vpop.f32.mrb[28].mxu0 }
 0x32b   : > { %v2524_v31 = vadd.f32 %v2065_v22, %v3621_v46  ;;  %v2067_v32 = vpop.f32.mrb[29].mxu0 }
 0x32c   : > { %v2525_v36 = vadd.f32 %v2067_v32, %v3625_v52  ;;  %v2069_v37 = vpop.f32.mrb[30].mxu0 }
 0x32d   : > { %2182 = vst [vmem:[%s3631_s27 + $0xe0] sm:$0xff] %v2524_v31  ;;  %v2526_v38 = vadd.f32 %v2069_v37, %v3621_v46  ;;  %v2071_v39 = vpop.f32.mrb[31].mxu0 }
 0x32e   : > { %2183 = vst [vmem:[%s3631_s27 + $0xe8] sm:$0xff] %v2525_v36  ;;  %v2527_v41 = vadd.f32 %v2071_v39, %v3625_v52 }
 0x32f   : > { %2184 = vst [vmem:[%s3631_s27 + $0xf0] sm:$0xff] %v2526_v38 }
 0x330   : > { %2185 = vst [vmem:[%s3631_s27 + $0xf8] sm:$0xff] %v2527_v41 }
 0x332   : > { %v2075_v43 = vpop.f32.mrb[32].mxu0 }
 0x333   : > { %v2528_v27 = vadd.f32 %v2075_v43, %v3621_v46  ;;  %v2077_v44 = vpop.f32.mrb[33].mxu0 }
 0x334   : > { %v2529_v40 = vadd.f32 %v2077_v44, %v3625_v52  ;;  %v2079_v42 = vpop.f32.mrb[34].mxu0 }
 0x335   : > { %2186 = vst [vmem:[%s3631_s27 + $0x100] sm:$0xff] %v2528_v27  ;;  %v2530_v53 = vadd.f32 %v2079_v42, %v3621_v46  ;;  %v2081_v28 = vpop.f32.mrb[35].mxu0 }
 0x336   : > { %2187 = vst [vmem:[%s3631_s27 + $0x108] sm:$0xff] %v2529_v40  ;;  %v2531_v45 = vadd.f32 %v2081_v28, %v3625_v52 }
 0x337   : > { %2188 = vst [vmem:[%s3631_s27 + $0x110] sm:$0xff] %v2530_v53 }
 0x338   : > { %2189 = vst [vmem:[%s3631_s27 + $0x118] sm:$0xff] %v2531_v45 }
 0x33a   : > { %v2085_v47 = vpop.f32.mrb[36].mxu0 }
 0x33b   : > { %v2532_v48 = vadd.f32 %v2085_v47, %v3621_v46  ;;  %v2087_v54 = vpop.f32.mrb[37].mxu0 }
 0x33c   : > { %v2533_v55 = vadd.f32 %v2087_v54, %v3625_v52  ;;  %v2089_v56 = vpop.f32.mrb[38].mxu0 }
 0x33d   : > { %2190 = vst [vmem:[%s3631_s27 + $0x120] sm:$0xff] %v2532_v48  ;;  %v2534_v57 = vadd.f32 %v2089_v56, %v3621_v46  ;;  %v2091_v61 = vpop.f32.mrb[39].mxu0 }
 0x33e   : > { %2191 = vst [vmem:[%s3631_s27 + $0x128] sm:$0xff] %v2533_v55  ;;  %v2535_v58 = vadd.f32 %v2091_v61, %v3625_v52 }
 0x33f   : > { %2192 = vst [vmem:[%s3631_s27 + $0x130] sm:$0xff] %v2534_v57 }
 0x340   : > { %2193 = vst [vmem:[%s3631_s27 + $0x138] sm:$0xff] %v2535_v58 }
 0x342   : > { %v2095_v59 = vpop.f32.mrb[40].mxu0 }
 0x343   : > { %v2536_v63 = vadd.f32 %v2095_v59, %v3621_v46  ;;  %v2097_v60 = vpop.f32.mrb[41].mxu0 }
 0x344   : > { %v2537_v62 = vadd.f32 %v2097_v60, %v3625_v52  ;;  %v2099_v0 = vpop.f32.mrb[42].mxu0 }
 0x345   : > { %2194 = vst [vmem:[%s3631_s27 + $0x140] sm:$0xff] %v2536_v63  ;;  %v2538_v1 = vadd.f32 %v2099_v0, %v3621_v46  ;;  %v2101_v51 = vpop.f32.mrb[43].mxu0 }
 0x346   : > { %2195 = vst [vmem:[%s3631_s27 + $0x148] sm:$0xff] %v2537_v62  ;;  %v2539_v35 = vadd.f32 %v2101_v51, %v3625_v52 }
 0x347   : > { %2196 = vst [vmem:[%s3631_s27 + $0x150] sm:$0xff] %v2538_v1 }
 0x348   : > { %2197 = vst [vmem:[%s3631_s27 + $0x158] sm:$0xff] %v2539_v35 }
 0x34a   : > { %v2105_v2 = vpop.f32.mrb[44].mxu0 }
 0x34b   : > { %v2540_v5 = vadd.f32 %v2105_v2, %v3621_v46  ;;  %v2107_v8 = vpop.f32.mrb[45].mxu0 }
 0x34c   : > { %v2541_v9 = vadd.f32 %v2107_v8, %v3625_v52  ;;  %v2109_v11 = vpop.f32.mrb[46].mxu0 }
 0x34d   : > { %2198 = vst [vmem:[%s3631_s27 + $0x160] sm:$0xff] %v2540_v5  ;;  %v2542_v10 = vadd.f32 %v2109_v11, %v3621_v46  ;;  %v2111_v12 = vpop.f32.mrb[47].mxu0 }
 0x34e   : > { %2199 = vst [vmem:[%s3631_s27 + $0x168] sm:$0xff] %v2541_v9  ;;  %v2543_v13 = vadd.f32 %v2111_v12, %v3625_v52 }
 0x34f   : > { %2200 = vst [vmem:[%s3631_s27 + $0x170] sm:$0xff] %v2542_v10 }
 0x350   : > { %2201 = vst [vmem:[%s3631_s27 + $0x178] sm:$0xff] %v2543_v13 }
 0x352   : > { %v2115_v14 = vpop.f32.mrb[48].mxu0 }
 0x353   : > { %v2544_v16 = vadd.f32 %v2115_v14, %v3621_v46  ;;  %v2117_v23 = vpop.f32.mrb[49].mxu0 }
 0x354   : > { %v2545_v24 = vadd.f32 %v2117_v23, %v3625_v52  ;;  %v2119_v25 = vpop.f32.mrb[50].mxu0 }
 0x355   : > { %2202 = vst [vmem:[%s3631_s27 + $0x180] sm:$0xff] %v2544_v16  ;;  %v2546_v26 = vadd.f32 %v2119_v25, %v3621_v46  ;;  %v2121_v29 = vpop.f32.mrb[51].mxu0 }
 0x356   : > { %2203 = vst [vmem:[%s3631_s27 + $0x188] sm:$0xff] %v2545_v24  ;;  %v2547_v30 = vadd.f32 %v2121_v29, %v3625_v52 }
 0x357   : > { %2204 = vst [vmem:[%s3631_s27 + $0x190] sm:$0xff] %v2546_v26 }
 0x358   : > { %2205 = vst [vmem:[%s3631_s27 + $0x198] sm:$0xff] %v2547_v30 }
 0x35a   : > { %v2125_v15 = vpop.f32.mrb[52].mxu0 }
 0x35b   : > { %v2548_v6 = vadd.f32 %v2125_v15, %v3621_v46  ;;  %v2127_v7 = vpop.f32.mrb[53].mxu0 }
 0x35c   : > { %v2549_v19 = vadd.f32 %v2127_v7, %v3625_v52  ;;  %v2129_v20 = vpop.f32.mrb[54].mxu0 }
 0x35d   : > { %2206 = vst [vmem:[%s3631_s27 + $0x1a0] sm:$0xff] %v2548_v6  ;;  %v2550_v17 = vadd.f32 %v2129_v20, %v3621_v46  ;;  %v2131_v33 = vpop.f32.mrb[55].mxu0 }
 0x35e   : > { %2207 = vst [vmem:[%s3631_s27 + $0x1a8] sm:$0xff] %v2549_v19  ;;  %v2551_v18 = vadd.f32 %v2131_v33, %v3625_v52 }
 0x35f   : > { %2208 = vst [vmem:[%s3631_s27 + $0x1b0] sm:$0xff] %v2550_v17 }
 0x360   : > { %2209 = vst [vmem:[%s3631_s27 + $0x1b8] sm:$0xff] %v2551_v18 }
 0x362   : > { %v2135_v34 = vpop.f32.mrb[56].mxu0 }
 0x363   : > { %v2552_v49 = vadd.f32 %v2135_v34, %v3621_v46  ;;  %v2137_v50 = vpop.f32.mrb[57].mxu0 }
 0x364   : > { %v2553_v3 = vadd.f32 %v2137_v50, %v3625_v52  ;;  %v2139_v4 = vpop.f32.mrb[58].mxu0 }
 0x365   : > { %2210 = vst [vmem:[%s3631_s27 + $0x1c0] sm:$0xff] %v2552_v49  ;;  %v2554_v21 = vadd.f32 %v2139_v4, %v3621_v46  ;;  %v2141_v22 = vpop.f32.mrb[59].mxu0 }
 0x366   : > { %2211 = vst [vmem:[%s3631_s27 + $0x1c8] sm:$0xff] %v2553_v3  ;;  %v2555_v31 = vadd.f32 %v2141_v22, %v3625_v52 }
 0x367   : > { %2212 = vst [vmem:[%s3631_s27 + $0x1d0] sm:$0xff] %v2554_v21 }
 0x368   : > { %2213 = vst [vmem:[%s3631_s27 + $0x1d8] sm:$0xff] %v2555_v31 }
 0x36a   : > { %v2145_v32 = vpop.f32.mrb[60].mxu0  ;;  %2225 = sbr.rel (!%p3843_p9) target bundleno = 909 (0x38d), region = 56 }
 0x36b   : > { %v2556_v36 = vadd.f32 %v2145_v32, %v3621_v46  ;;  %v2147_v37 = vpop.f32.mrb[61].mxu0 }
 0x36c   : > { %v2557_v38 = vadd.f32 %v2147_v37, %v3625_v52  ;;  %v2149_v39 = vpop.f32.mrb[62].mxu0 }
 0x36d   : > { %2214 = vst [vmem:[%s3631_s27 + $0x1e0] sm:$0xff] %v2556_v36  ;;  %v2558_v41 = vadd.f32 %v2149_v39, %v3621_v46  ;;  %v2151_v43 = vpop.f32.mrb[63].mxu0 }
 0x36e   : > { %2215 = vst [vmem:[%s3631_s27 + $0x1e8] sm:$0xff] %v2557_v38  ;;  %v2559_v27 = vadd.f32 %v2151_v43, %v3625_v52 }
 0x36f   : > { %2216 = vst [vmem:[%s3631_s27 + $0x1f0] sm:$0xff] %v2558_v41 }
 0x370   : > { %2217 = vst [vmem:[%s3631_s27 + $0x1f8] sm:$0xff] %v2559_v27 }
 0x371   : > { %s3853_s12 = smov (!%p2228_p10, %s2227_s12), 32 }
 0x372   : > { %s3763_s25 = sshll.u32 %s3853_s12, 8 }
 0x373   : > { %s2233_s28 = ssub.s32 8192, %s3763_s25 }
 0x374   : > { %2234 = vsyncadd %s2219_s8, %s2233_s28  ;;  %p2483_p1 = scmp.ne.s32.totalorder %s3763_s25, 0  ;;  %s2495_s30 = sshll.u32 %s3103_s22, 13 }
 0x375   : > { %s3773_s11 = scalar_lea.hbm %s3827_s5, %s2495_s30  ;;  %s2240_s14 = sshll.u32 %s3631_s27, 4  ;;  %s3776_s14 = int_to_ptr.vmem [resolvable:$true] %s2240_s14 }
 0x376   : > { %s2968_s15 = scalar_lea.vmem %s3776_s14, %s3763_s25  ;;  %s3049_s16 = smov [#allocation8]  }
 0x377   : > { %p2969_p3 = scmp.ne.s32.totalorder %s3776_s14, %s2968_s15  ;;  %s2972_s29 = sshll.u32 %s3049_s16, 4  ;;  %s2973_s29 = int_to_ptr.vmem [resolvable:$false] %s2972_s29 }
 0x378   : > { %s2974_s22 = scalar_lea.vmem %s2973_s29, 16384  ;;  %p2975_p11 = scmp.lt.s32.totalorder %s3776_s14, %s2973_s29 }
 0x379   : > { %p2970_p5 = pnand %p2969_p3, %p2483_p1  ;;  %p2976_p13 = scmp.lt.s32.totalorder %s2974_s22, %s2968_s15 }
 0x37b   : > { %p2971_p6 = pneg %p2970_p5  ;;  %p2977_p0 = por %p2976_p13, %p2975_p11 }
 0x37d   : > { %p2978_p12 = pnand %p2977_p0, %p2971_p6 }
 0x37f   : > { %2981 = shalt.err (!%p2978_p12)
}
 0x380   : > { %s2982_s7 = scalar_lea.hbm %s3773_s11, %s3763_s25  ;;  %s2986_s27 = scalar_lea.hbm %s3827_s5, 12288 }
 0x381   : > { %p2983_p7 = scmp.ne.s32.totalorder %s3773_s11, %s2982_s7  ;;  %p2987_p9 = scmp.lt.u32.totalorder %s3773_s11, %s3827_s5 }
 0x382   : > { %p2988_p10 = scmp.lt.u32.totalorder %s2986_s27, %s2982_s7  ;;  %p2990_p5 = scmp.lt.u32.totalorder %s2982_s7, %s3773_s11 }
 0x383   : > { %p2984_p2 = pnand %p2983_p7, %p2483_p1 }
 0x384   : > { %p2989_p3 = por %p2988_p10, %p2987_p9 }
 0x385   : > { %p2985_p8 = pneg %p2984_p2 }
 0x386   : > { %p2991_p6 = por %p2990_p5, %p2989_p3 }
 0x388   : > { %p2992_p11 = pnand %p2991_p6, %p2985_p8 }
 0x38a   : > { %2995 = shalt.err (!%p2992_p11)
}
 0x38b   : > { %s3050_s28 = smov 256   ;;  %s3051_s30 = smov 16  }
 0x38c   : > { %2246 = dma.vmem_to_hbm [thread:$0]  (%p2483_p1), %s3776_s14, %s3763_s25, %s3773_s11, %s2219_s8, %s3050_s28, %s3050_s28, %s3051_s30  }
 0x38d PF: > { %s2255_s26 = sand.u32 1, %s3026_s18   ;;  %p3844_p13 = scmp.ne.s32.totalorder %s3835_s6, 0 }
 0x38e   : > { %s2256_s9 = scalar_lea.sflag [#allocation4], %s2255_s26 }
 0x38f   : > { %p2642_p0 = pnand %p2336_p4, %p3844_p13 }
 0x391   : > { %3021 = dma.done.wait (!%p2642_p0), %s2256_s9, 8192  }
 0x392   : > { %3023 = vsyncadd (!%p2642_p0), %s2256_s9, 4294959104  ;;  %s3845_s15 = sld [smem:[#allocation12_spill]]  ;;  %p19_p12 = scmp.ge.s32.totalorder %s3107_s24, 4  }
 0x393   : > { %s3846_s18 = smov %s3030_s19  ;;  %s3847_s19 = smov %s3034_s20 }
 0x394   : > { %s3849_s21 = smov %s3107_s24  ;;  %21 = sbr.rel (!%p19_p12) target bundleno = 6 (0x6), region = 93 }
 0x398   : > { %s3848_s20 = smov %s3845_s15 }
 0x39b   :  { %2261 = vsyncpa [#allocation3], 1 }
 0x39c   :  { %2263 = vsyncpa [#allocation3 + $0x1], 1 }
 0x39d   :  { %2264 = vsyncpa [#allocation6], 1 }
 0x39e   :  { %2265 = vsyncpa [#allocation4], 1 }
 0x39f   :  { %2267 = vsyncpa [#allocation4 + $0x1], 1 }

// kernel: tpu_custom_call.1
= control target key start
LH: loop header
LB: loop body
LE: loop exit
PB: predicated region body
PF: predicated region fallthrough
CT: control target
= control target key end

     0   :  { %10 = vsyncpa [#allocation3], 0  ;;  %s3822_s0 = inlined_call_operand.hbm [shape: f32[384,256], index: 0, kind: input, shape index: {}]   ;;  %s3823_s1 = inlined_call_operand.hbm [shape: bf16[256,512], index: 1, kind: input, shape index: {}]   ;;  %s3824_s2 = inlined_call_operand.vmem [shape: f32[1,512], index: 2, kind: input, shape index: {}]   ;;  %s3825_s3 = inlined_call_operand.hbm [shape: bf16[512,256], index: 3, kind: input, shape index: {}]   ;;  %s3826_s4 = inlined_call_operand.vmem [shape: f32[1,256], index: 4, kind: input, shape index: {}]   ;;  %s3827_s5 = inlined_call_operand.hbm [shape: f32[384,256], index: 5, kind: output, shape index: {}]  }
   0x1   :  { %12 = vsyncpa [#allocation3 + $0x1], 0 }
   0x2   :  { %13 = vsyncpa [#allocation6], 0 }
   0x3   :  { %14 = vsyncpa [#allocation4], 0 }
   0x4   :  { %16 = vsyncpa [#allocation4 + $0x1], 0  ;;  %s3082_s18 = smov 0   ;;  %s3084_s19 = smov 0  }
   0x5   :  { %s3086_s20 = smov 0   ;;  %s3088_s21 = smov 0  }
   0x6 LB: > { %s3103_s22 = sadd.s32 4294967295, %s3038_s21   ;;  %s2332_s23 = sadd.s32 4294967294, %s3038_s21   ;;  %s3038_s21 = sphi %s3088_s21, %s3849_s21   ;;  %s3034_s20 = sphi %s3086_s20, %s3848_s20   ;;  %s3030_s19 = sphi %s3084_s19, %s3847_s19   ;;  %s3026_s18 = sphi %s3082_s18, %s3846_s18  }
   0x7   : > { %s3107_s24 = sadd.s32 1, %s3038_s21   ;;  %s29_s25 = sadd.s32 1, %s3034_s20 }
   0x8   : > { %s26_s26 = ssub.s32 %s3038_s21, %s3107_s24  ;;  %p36_p0 = scmp.ne.s32.totalorder %s3034_s20, %s3030_s19 }
   0x9   : > { %p27_p1 = scmp.eq.s32.totalorder %s26_s26, 0  ;;  %p37_p2 = scmp.eq.s32.totalorder %s3038_s21, 0 }
   0xa   : > { %p42_p3 = scmp.ne.s32.totalorder %s3030_s19, %s3026_s18  ;;  %p3828_p4 = scmp.eq.s32.totalorder %s3103_s22, 0 }
   0xb   : > { %s3119_s27 = scalar_select %p27_p1, %s3034_s20, %s29_s25  }
   0xc   : > { %p3121_p5 = por %p37_p2, %p36_p0  ;;  %p3127_p6 = por %p3828_p4, %p42_p3 }
   0xd   : > { %3831 = sst [smem:[#allocation12_spill]] %s3119_s27  ;;  %p150_p7 = scmp.eq.s32.totalorder %s3103_s22, 1 }
   0xe   : > { %s3832_s28 = scalar_select %p3121_p5, 1, 0 }
   0xf   : > { %s3833_s29 = scalar_select %p3127_p6, 1, 0 }
  0x10   : > { %p156_p8 = scmp.eq.s32.totalorder %s2332_s23, 1  ;;  %p2333_p9 = scmp.ge.s32.totalorder %s3038_s21, 1 }
  0x11   : > { %p163_p10 = scmp.lt.s32.totalorder %s3038_s21, 3  ;;  %p3134_p11 = por %p150_p7, %p36_p0 }
  0x12   : > { %p3138_p12 = por %p156_p8, %p42_p3  ;;  %s3040_s8 = smov [#allocation5]  }
  0x13   : > { %s3834_s30 = scalar_select %p3134_p11, 1, 0 }
  0x14   : > { %s3835_s6 = scalar_select %p3138_p12, 1, 0 }
  0x15   : > { %p3142_p13 = pnand %p2333_p9, %p163_p10  ;;  %s175_s9 = sshll.u32 %s3040_s8, 4  ;;  %s176_s9 = int_to_ptr.vmem [resolvable:$true] %s175_s9 }
  0x16   : > { %s3041_s11 = smov [#allocation7]   ;;  %s2884_s15 = scalar_lea.hbm %s3823_s1, 8192 }
  0x17   : > { %s3836_s7 = scalar_select %p3142_p13, 1, 0 }
  0x18   : > { %p2634_p1 = pneg %p3142_p13  ;;  %s191_s12 = sshll.u32 %s3041_s11, 4  ;;  %s3154_s12 = int_to_ptr.vmem [resolvable:$true] %s191_s12 }
  0x19   : > { %p2885_p0 = scmp.ne.s32.totalorder %s3823_s1, %s2884_s15  ;;  %p2891_p9 = scmp.lt.u32.totalorder %s2884_s15, %s3823_s1 }
  0x1a   : > { %p3150_p2 = pnand %p2634_p1, %p3828_p4 }
  0x1c   : > { %p2886_p3 = pneg %p3150_p2 }
  0x1e   : > { %p2887_p7 = pnand %p2886_p3, %p2885_p0 }
  0x20   : > { %p2888_p8 = pneg %p2887_p7 }
  0x22   : > { %p2893_p10 = pnand %p2891_p9, %p2888_p8 }
  0x24   : > { %2896 = shalt.err (!%p2893_p10)
}
  0x25   : > { %s2897_s26 = scalar_lea.vmem %s176_s9, 8192  ;;  %p2905_p11 = scmp.lt.s32.totalorder %s176_s9, %s176_s9 }
  0x26   : > { %p2898_p1 = scmp.ne.s32.totalorder %s176_s9, %s2897_s26  ;;  %p2906_p6 = scmp.lt.s32.totalorder %s2897_s26, %s2897_s26 }
  0x28   : > { %p2900_p4 = pnand %p2898_p1, %p2886_p3  ;;  %p2907_p13 = por %p2906_p6, %p2905_p11 }
  0x2a   : > { %p2901_p12 = pneg %p2900_p4 }
  0x2c   : > { %p2908_p5 = pnand %p2907_p13, %p2901_p12 }
  0x2e   : > { %2911 = shalt.err (!%p2908_p5)
}
  0x2f   : > { %s3042_s8 = smov 256   ;;  %s3043_s11 = smov 16  }
  0x30   : > { %2637 = dma.hbm_to_vmem [thread:$0]  (!%p3150_p2), %s3823_s1, 8192, %s176_s9, [#allocation6], %s3042_s8, %s3042_s8, %s3043_s11  }
  0x31   : > { %s2912_s17 = scalar_lea.hbm %s3825_s3, 8192 }
  0x32   : > { %p2913_p4 = scmp.ne.s32.totalorder %s3825_s3, %s2912_s17  ;;  %p2919_p11 = scmp.lt.u32.totalorder %s2912_s17, %s3825_s3 }
  0x34   : > { %p2915_p5 = pnand %p2913_p4, %p2886_p3 }
  0x36   : > { %p2916_p6 = pneg %p2915_p5 }
  0x38   : > { %p2921_p12 = pnand %p2919_p11, %p2916_p6 }
  0x3a   : > { %2924 = shalt.err (!%p2921_p12)
}
  0x3b   : > { %s2925_s9 = scalar_lea.vmem %s3154_s12, 8192  ;;  %p2933_p8 = scmp.lt.s32.totalorder %s3154_s12, %s3154_s12 }
  0x3c   : > { %p2926_p13 = scmp.ne.s32.totalorder %s3154_s12, %s2925_s9  ;;  %p2934_p9 = scmp.lt.s32.totalorder %s2925_s9, %s2925_s9 }
  0x3e   : > { %p2928_p0 = pnand %p2926_p13, %p2886_p3  ;;  %p2935_p10 = por %p2934_p9, %p2933_p8 }
  0x40   : > { %p2929_p7 = pneg %p2928_p0 }
  0x42   : > { %p2936_p1 = pnand %p2935_p10, %p2929_p7 }
  0x44   : > { %2939 = shalt.err (!%p2936_p1)
}
  0x45   : > { %s3044_s27 = smov 128   ;;  %s3045_s8 = smov 8  }
  0x46   : > { %2640 = dma.hbm_to_vmem [thread:$0]  (!%p3150_p2), %s3825_s3, 8192, %s3154_s12, [#allocation6], %s3044_s27, %s3044_s27, %s3045_s8  }
  0x47   : > { %p2336_p4 = scmp.ge.s32.totalorder %s3038_s21, 2 }
  0x48   : > { %p3838_p3 = scmp.ne.s32.totalorder (!%p2336_p4), %s3832_s28, 0 }
  0x49   : > { %204 = sbr.rel (%p2336_p4) target bundleno = 115 (0x73), region = 32 }
  0x50   : > { %207 = sbr.rel (!%p3838_p3) target bundleno = 115 (0x73), region = 36  ;;  %s208_s14 = sand.u32 (%p3838_p3), 1, %s3034_s20  }
  0x51   : > { %s2338_s15 = sshll.u32 (%p3838_p3), %s3038_s21, 5  ;;  %s2337_s16 = sshll.u32 (%p3838_p3), %s208_s14, 9 }
  0x52   : > { %s214_s17 = ssub.s32 (%p3838_p3), 48, %s2338_s15  ;;  %s3213_s23 = scalar_lea.sflag (%p3838_p3), [#allocation3], %s208_s14 }
  0x53   : > { %p215_p5 = scmp.lt.s32.totalorder (%p3838_p3), %s214_s17, 32  ;;  %s212_s25 = scalar_lea.vmem (%p3838_p3), [#allocation2], %s2337_s16 }
  0x57   : > { %s3851_s17 = smov (!%p215_p5, %s214_s17), 32 }
  0x58   : > { %s3210_s10 = sshll.u32 %s3851_s17, 8 }
  0x59   : > { %s220_s12 = ssub.s32 8192, %s3210_s10 }
  0x5a   : > { %221 = vsyncadd %s3213_s23, %s220_s12  ;;  %p2341_p2 = scmp.ne.s32.totalorder %s3210_s10, 0  ;;  %s2492_s28 = sshll.u32 %s3038_s21, 13 }
  0x5b   : > { %s3221_s27 = scalar_lea.hbm %s3822_s0, %s2492_s28  ;;  %s227_s8 = sshll.u32 %s212_s25, 4  ;;  %s3223_s8 = int_to_ptr.vmem [resolvable:$true] %s227_s8 }
  0x5c   : > { %s2940_s11 = scalar_lea.hbm %s3221_s27, %s3210_s10  ;;  %s2944_s15 = scalar_lea.hbm %s3822_s0, 12288 }
  0x5d   : > { %p2941_p6 = scmp.ne.s32.totalorder %s3221_s27, %s2940_s11  ;;  %p2945_p13 = scmp.lt.u32.totalorder %s3221_s27, %s3822_s0 }
  0x5e   : > { %p2946_p0 = scmp.lt.u32.totalorder %s2944_s15, %s2940_s11  ;;  %p2948_p8 = scmp.lt.u32.totalorder %s2940_s11, %s3221_s27 }
  0x5f   : > { %p2942_p11 = pnand %p2941_p6, %p2341_p2 }
  0x60   : > { %p2947_p7 = por %p2946_p0, %p2945_p13 }
  0x61   : > { %p2943_p12 = pneg %p2942_p11 }
  0x62   : > { %p2949_p9 = por %p2948_p8, %p2947_p7 }
  0x64   : > { %p2950_p10 = pnand %p2949_p9, %p2943_p12 }
  0x66   : > { %2953 = shalt.err (!%p2950_p10)
}
  0x67   : > { %s2954_s12 = scalar_lea.vmem %s3223_s8, %s3210_s10  ;;  %s3046_s25 = smov [#allocation2]  }
  0x68   : > { %p2955_p1 = scmp.ne.s32.totalorder %s3223_s8, %s2954_s12  ;;  %s2958_s28 = sshll.u32 %s3046_s25, 4  ;;  %s2959_s28 = int_to_ptr.vmem [resolvable:$false] %s2958_s28 }
  0x69   : > { %s2960_s26 = scalar_lea.vmem %s2959_s28, 16384  ;;  %p2961_p6 = scmp.lt.s32.totalorder %s3223_s8, %s2959_s28 }
  0x6a   : > { %p2956_p3 = pnand %p2955_p1, %p2341_p2  ;;  %p2962_p11 = scmp.lt.s32.totalorder %s2960_s26, %s2954_s12 }
  0x6c   : > { %p2957_p5 = pneg %p2956_p3  ;;  %p2963_p13 = por %p2962_p11, %p2961_p6 }
  0x6e   : > { %p2964_p0 = pnand %p2963_p13, %p2957_p5 }
  0x70   : > { %2967 = shalt.err (!%p2964_p0)
}
  0x71   : > { %s3047_s9 = smov 256   ;;  %s3048_s11 = smov 16  }
  0x72   : > { %233 = dma.hbm_to_vmem [thread:$0]  (%p2341_p2), %s3221_s27, %s3210_s10, %s3223_s8, %s3213_s23, %s3047_s9, %s3047_s9, %s3048_s11  }
  0x73 PF: > { %p3839_p12 = scmp.ne.s32.totalorder %s3836_s7, 0 }
  0x74   : > { %s3253_s13 = sand.u32 (!%p3839_p12), 1, %s3030_s19   ;;  %p3840_p7 = scmp.ne.s32.totalorder (!%p3839_p12), %s3833_s29, 0 }
  0x75   : > { %239 = sbr.rel (%p3839_p12) target bundleno = 909 (0x38d), region = 40  ;;  %s2347_s14 = sshll.u32 (!%p3839_p12), %s3253_s13, 9 }
  0x76   : > { %s242_s15 = scalar_lea.sflag (!%p3839_p12), [#allocation3], %s3253_s13  ;;  %s3259_s16 = scalar_lea.vmem (!%p3839_p12), [#allocation2], %s2347_s14 }
  0x7c   : > { %3013 = dma.done.wait (%p3840_p7), %s242_s15, 8192  }
  0x7d   : > { %3015 = vsyncadd (%p3840_p7), %s242_s15, 4294959104  ;;  %p3841_p2 = scmp.eq.s32.totalorder %s3103_s22, 0 }
  0x7f   : > { %3017 = dma.done.wait (%p3841_p2), [#allocation6], 16384   ;;  %p3842_p8 = pmov %p3841_p2 }
  0x80   : > { %v2692_v0 = vld [vmem:[#allocation5 + $0x4] ss:$16 sps:$4 sm:$0xff]   ;;  %v2694_v1 = vld [vmem:[#allocation5] ss:$16 sps:$4 sm:$0xff]   ;;  %v293_v13 = vld [vmem:[%s3259_s16 + $0x8] sm:$0xff]  ;;  %s3631_s27 = scalar_lea.vmem [#allocation8], %s2347_s14 }
  0x81   : > { %3019 = vsyncadd (%p3842_p8), [#allocation6], 4294950912  ;;  %794 = vmatprep.subr.bf16.mxu1 %v2692_v0  ;;  %v2695_v2 = vld [vmem:[#allocation5 + $0x24] ss:$16 sps:$4 sm:$0xff]   ;;  %v2697_v3 = vld [vmem:[#allocation5 + $0x20] ss:$16 sps:$4 sm:$0xff]  }
  0x82   : > { %795 = vmatpush1.bf16.msra.mxu1 %v2694_v1  ;;  %v2698_v4 = vld [vmem:[#allocation5 + $0x44] ss:$16 sps:$4 sm:$0xff]   ;;  %v2700_v5 = vld [vmem:[#allocation5 + $0x40] ss:$16 sps:$4 sm:$0xff]   ;;  %v295_v14 = vld [vmem:[%s3259_s16 + $0x18] sm:$0xff]  ;;  %s2219_s8 = scalar_lea.sflag [#allocation4], %s3253_s13 }
  0x83   : > { %796 = vmatprep.subr.bf16.mxu1 %v2695_v2  ;;  %v2701_v6 = vld [vmem:[#allocation5 + $0x64] ss:$16 sps:$4 sm:$0xff]   ;;  %v2703_v7 = vld [vmem:[#allocation5 + $0x60] ss:$16 sps:$4 sm:$0xff]   ;;  %v3271_v15 = vpack.c.bf16 %v295_v14, %v293_v13  ;;  %v2742_v37 = vld [vmem:[#allocation5 + $0xc] ss:$16 sps:$4 sm:$0xff]  }
  0x84   : > { %v2704_v8 = vld [vmem:[#allocation5 + $0x84] ss:$16 sps:$4 sm:$0xff]   ;;  %v2706_v9 = vld [vmem:[#allocation5 + $0x80] ss:$16 sps:$4 sm:$0xff]   ;;  %v297_v38 = vld [vmem:[%s3259_s16 + $0x28] sm:$0xff]  ;;  %p3843_p9 = scmp.ne.s32.totalorder %s3834_s30, 0 }
  0x85   : > { %v2707_v10 = vld [vmem:[#allocation5 + $0xa4] ss:$16 sps:$4 sm:$0xff]   ;;  %v2709_v11 = vld [vmem:[#allocation5 + $0xa0] ss:$16 sps:$4 sm:$0xff]   ;;  %826 = vmatprep.mubr.bf16.mxu1 %v3271_v15  ;;  %v299_v39 = vld [vmem:[%s3259_s16 + $0x38] sm:$0xff]  ;;  %s2480_s17 = sshll.u32 (%p3843_p9), %s3103_s22, 5 }
  0x86   : > { %797 = vmatpush1.bf16.msra.mxu1 %v2697_v3  ;;  %v2710_v12 = vld [vmem:[#allocation5 + $0xc4] ss:$16 sps:$4 sm:$0xff]   ;;  %v2712_v16 = vld [vmem:[#allocation5 + $0xc0] ss:$16 sps:$4 sm:$0xff]   ;;  %v2740_v41 = vld [vmem:[#allocation5 + $0x8] ss:$16 sps:$4 sm:$0xff]   ;;  %v3280_v42 = vpack.c.bf16 %v299_v39, %v297_v38 }
  0x87   : > { %798 = vmatprep.subr.bf16.mxu1 %v2698_v4  ;;  %v2713_v17 = vld [vmem:[#allocation5 + $0xe4] ss:$16 sps:$4 sm:$0xff]   ;;  %v2715_v18 = vld [vmem:[#allocation5 + $0xe0] ss:$16 sps:$4 sm:$0xff]   ;;  %v2745_v43 = vld [vmem:[#allocation5 + $0x2c] ss:$16 sps:$4 sm:$0xff]  }
  0x88   : > { %v2716_v19 = vld [vmem:[#allocation5 + $0x104] ss:$16 sps:$4 sm:$0xff]   ;;  %v2718_v20 = vld [vmem:[#allocation5 + $0x100] ss:$16 sps:$4 sm:$0xff]   ;;  %v2743_v46 = vld [vmem:[#allocation5 + $0x28] ss:$16 sps:$4 sm:$0xff]  }
  0x89   : > { %v2719_v21 = vld [vmem:[#allocation5 + $0x124] ss:$16 sps:$4 sm:$0xff]   ;;  %v2721_v22 = vld [vmem:[#allocation5 + $0x120] ss:$16 sps:$4 sm:$0xff]   ;;  %v301_v47 = vld [vmem:[%s3259_s16 + $0x48] sm:$0xff]  ;;  %s2227_s12 = ssub.s32 (%p3843_p9), 48, %s2480_s17 }
  0x8a   : > { %799 = vmatpush1.bf16.msra.mxu1 %v2700_v5  ;;  %v2722_v23 = vld [vmem:[#allocation5 + $0x144] ss:$16 sps:$4 sm:$0xff]   ;;  %v2724_v24 = vld [vmem:[#allocation5 + $0x140] ss:$16 sps:$4 sm:$0xff]   ;;  %v303_v48 = vld [vmem:[%s3259_s16 + $0x58] sm:$0xff]  ;;  %p2228_p10 = scmp.lt.s32.totalorder (%p3843_p9), %s2227_s12, 32 }
  0x8b   : > { %800 = vmatprep.subr.bf16.mxu1 %v2701_v6  ;;  %v2725_v25 = vld [vmem:[#allocation5 + $0x164] ss:$16 sps:$4 sm:$0xff]   ;;  %v2727_v26 = vld [vmem:[#allocation5 + $0x160] ss:$16 sps:$4 sm:$0xff]   ;;  %v2748_v49 = vld [vmem:[#allocation5 + $0x4c] ss:$16 sps:$4 sm:$0xff]   ;;  %v3290_v53 = vpack.c.bf16 %v303_v48, %v301_v47 }
  0x8c   : > { %v2728_v27 = vld [vmem:[#allocation5 + $0x184] ss:$16 sps:$4 sm:$0xff]   ;;  %v2730_v28 = vld [vmem:[#allocation5 + $0x180] ss:$16 sps:$4 sm:$0xff]   ;;  %v2746_v50 = vld [vmem:[#allocation5 + $0x48] ss:$16 sps:$4 sm:$0xff]  }
  0x8d   : > { %v2731_v29 = vld [vmem:[#allocation5 + $0x1a4] ss:$16 sps:$4 sm:$0xff]   ;;  %v2733_v30 = vld [vmem:[#allocation5 + $0x1a0] ss:$16 sps:$4 sm:$0xff]   ;;  %v2751_v52 = vld [vmem:[#allocation5 + $0x6c] ss:$16 sps:$4 sm:$0xff]  }
  0x8e   : > { %801 = vmatpush1.bf16.msra.mxu1 %v2703_v7  ;;  %v2734_v31 = vld [vmem:[#allocation5 + $0x1c4] ss:$16 sps:$4 sm:$0xff]   ;;  %v2736_v32 = vld [vmem:[#allocation5 + $0x1c0] ss:$16 sps:$4 sm:$0xff]   ;;  %v2749_v56 = vld [vmem:[#allocation5 + $0x68] ss:$16 sps:$4 sm:$0xff]  }
  0x8f   : > { %802 = vmatprep.subr.bf16.mxu1 %v2704_v8  ;;  %v2737_v33 = vld [vmem:[#allocation5 + $0x1e4] ss:$16 sps:$4 sm:$0xff]   ;;  %v2739_v34 = vld [vmem:[#allocation5 + $0x1e0] ss:$16 sps:$4 sm:$0xff]   ;;  %v305_v57 = vld [vmem:[%s3259_s16 + $0x68] sm:$0xff] }
  0x90   : > { %v292_v35 = vld [vmem:[%s3259_s16] sm:$0xff]  ;;  %v294_v36 = vld [vmem:[%s3259_s16 + $0x10] sm:$0xff]  ;;  %v307_v58 = vld [vmem:[%s3259_s16 + $0x78] sm:$0xff] }
  0x91   : > { %v3278_v40 = vpack.c.bf16 %v294_v36, %v292_v35  ;;  %v296_v44 = vld [vmem:[%s3259_s16 + $0x20] sm:$0xff]  ;;  %v298_v45 = vld [vmem:[%s3259_s16 + $0x30] sm:$0xff]  ;;  %v2754_v59 = vld [vmem:[#allocation5 + $0x8c] ss:$16 sps:$4 sm:$0xff]   ;;  %v3300_v63 = vpack.c.bf16 %v307_v58, %v305_v57 }
  0x92   : > { %803 = vmatpush1.bf16.msra.mxu1 %v2706_v9  ;;  %v3288_v51 = vpack.c.bf16 %v298_v45, %v296_v44  ;;  %v300_v54 = vld [vmem:[%s3259_s16 + $0x40] sm:$0xff]  ;;  %v302_v55 = vld [vmem:[%s3259_s16 + $0x50] sm:$0xff]  ;;  %v2752_v60 = vld [vmem:[#allocation5 + $0x88] ss:$16 sps:$4 sm:$0xff]  }
  0x93   : > { %804 = vmatprep.subr.bf16.mxu1 %v2707_v10  ;;  %v3298_v61 = vpack.c.bf16 %v302_v55, %v300_v54  ;;  %v2757_v62 = vld [vmem:[#allocation5 + $0xac] ss:$16 sps:$4 sm:$0xff]   ;;  %v304_v0 = vld [vmem:[%s3259_s16 + $0x60] sm:$0xff]  ;;  %v306_v1 = vld [vmem:[%s3259_s16 + $0x70] sm:$0xff] }
  0x94   : > { %v2755_v2 = vld [vmem:[#allocation5 + $0xa8] ss:$16 sps:$4 sm:$0xff]   ;;  %v2760_v5 = vld [vmem:[#allocation5 + $0xcc] ss:$16 sps:$4 sm:$0xff]   ;;  %v3308_v6 = vpack.c.bf16 %v306_v1, %v304_v0  ;;  %v308_v10 = vld [vmem:[%s3259_s16 + $0x80] sm:$0xff] }
  0x95   : > { %v309_v3 = vld [vmem:[%s3259_s16 + $0x88] sm:$0xff]  ;;  %v311_v4 = vld [vmem:[%s3259_s16 + $0x98] sm:$0xff]  ;;  %v320_v58 = vld [vmem:[%s3259_s16 + $0xe0] sm:$0xff] }
  0x96   : > { %805 = vmatpush1.bf16.msra.mxu1 %v2709_v11  ;;  %v3310_v7 = vpack.c.bf16 %v311_v4, %v309_v3  ;;  %v2758_v8 = vld [vmem:[#allocation5 + $0xc8] ss:$16 sps:$4 sm:$0xff]   ;;  %v2763_v9 = vld [vmem:[#allocation5 + $0xec] ss:$16 sps:$4 sm:$0xff]  }
  0x97   : > { %806 = vmatprep.subr.bf16.mxu1 %v2710_v12  ;;  %v2788_v11 = vld [vmem:[#allocation7 + $0x4] ss:$8 sps:$4 sm:$0xff]   ;;  %v310_v12 = vld [vmem:[%s3259_s16 + $0x90] sm:$0xff]  ;;  %v2761_v13 = vld [vmem:[#allocation5 + $0xe8] ss:$16 sps:$4 sm:$0xff]  }
  0x98   : > { %v2790_v14 = vld [vmem:[#allocation7] ss:$8 sps:$4 sm:$0xff]   ;;  %1768 = vmatprep.subr.bf16.mxu0 %v2788_v11  ;;  %v2775_v36 = vld [vmem:[#allocation5 + $0x16c] ss:$16 sps:$4 sm:$0xff]   ;;  %v2799_v38 = vld [vmem:[#allocation7 + $0x30] ss:$8 sps:$4 sm:$0xff]  }
  0x99   : > { %1769 = vmatpush1.bf16.msra.mxu0 %v2790_v14  ;;  %v2770_v35 = vld [vmem:[#allocation5 + $0x148] ss:$16 sps:$4 sm:$0xff]   ;;  %v2800_v39 = vld [vmem:[#allocation7 + $0x44] ss:$8 sps:$4 sm:$0xff]   ;;  %v2803_v55 = vld [vmem:[#allocation7 + $0x54] ss:$8 sps:$4 sm:$0xff]  }
  0x9a   : > { %807 = vmatpush1.bf16.msra.mxu1 %v2712_v16  ;;  %v313_v16 = vld [vmem:[%s3259_s16 + $0xa8] sm:$0xff]  ;;  %v327_v0 = vld [vmem:[%s3259_s16 + $0x118] sm:$0xff] }
  0x9b   : > { %808 = vmatprep.subr.bf16.mxu1 %v2713_v17  ;;  %v315_v17 = vld [vmem:[%s3259_s16 + $0xb8] sm:$0xff]  ;;  %v321_v45 = vld [vmem:[%s3259_s16 + $0xe8] sm:$0xff] }
  0x9c   : > { %v2773_v44 = vld [vmem:[#allocation5 + $0x168] ss:$16 sps:$4 sm:$0xff]   ;;  %v2778_v47 = vld [vmem:[#allocation5 + $0x18c] ss:$16 sps:$4 sm:$0xff]  }
  0x9d   : > { %v2802_v48 = vld [vmem:[#allocation7 + $0x40] ss:$8 sps:$4 sm:$0xff]   ;;  %v2781_v54 = vld [vmem:[#allocation5 + $0x1ac] ss:$16 sps:$4 sm:$0xff]  }
  0x9e   : > { %809 = vmatpush1.bf16.msra.mxu1 %v2715_v18  ;;  %v2766_v18 = vld [vmem:[#allocation5 + $0x10c] ss:$16 sps:$4 sm:$0xff]   ;;  %v2785_v14 = vld [vmem:[#allocation5 + $0x1e8] ss:$16 sps:$4 sm:$0xff]  }
  0x9f   : > { %810 = vmatprep.subr.bf16.mxu1 %v2716_v19  ;;  %v3318_v19 = vpack.c.bf16 %v310_v12, %v308_v10  ;;  %v2806_v57 = vld [vmem:[#allocation7 + $0x64] ss:$8 sps:$4 sm:$0xff]   ;;  %v2811_v10 = vld [vmem:[#allocation7 + $0x70] ss:$8 sps:$4 sm:$0xff]  }
  0xa0   : > { %v2784_v1 = vld [vmem:[#allocation5 + $0x1cc] ss:$16 sps:$4 sm:$0xff]   ;;  %v324_v12 = vld [vmem:[%s3259_s16 + $0x100] sm:$0xff] }
  0xa1   : > { %v2812_v11 = vld [vmem:[#allocation7 + $0x84] ss:$8 sps:$4 sm:$0xff]  }
  0xa2   : > { %811 = vmatpush1.bf16.msra.mxu1 %v2718_v20  ;;  %v3320_v20 = vpack.c.bf16 %v315_v17, %v313_v16  ;;  %v329_v16 = vld [vmem:[%s3259_s16 + $0x128] sm:$0xff]  ;;  %v331_v17 = vld [vmem:[%s3259_s16 + $0x138] sm:$0xff] }
  0xa3   : > { %812 = vmatprep.subr.bf16.mxu1 %v2719_v21  ;;  %v2764_v21 = vld [vmem:[#allocation5 + $0x108] ss:$16 sps:$4 sm:$0xff]  }
  0xa6   : > { %813 = vmatpush1.bf16.msra.mxu1 %v2721_v22  ;;  %v2769_v22 = vld [vmem:[#allocation5 + $0x12c] ss:$16 sps:$4 sm:$0xff]  }
  0xa7   : > { %814 = vmatprep.subr.bf16.mxu1 %v2722_v23  ;;  %v2791_v23 = vld [vmem:[#allocation7 + $0x14] ss:$8 sps:$4 sm:$0xff]  }
  0xa8   : > { %1770 = vmatprep.subr.bf16.mxu0 %v2791_v23  ;;  %v2815_v23 = vld [vmem:[#allocation7 + $0x94] ss:$8 sps:$4 sm:$0xff]  }
  0xaa   : > { %815 = vmatpush1.bf16.msra.mxu1 %v2724_v24  ;;  %v2793_v24 = vld [vmem:[#allocation7 + $0x10] ss:$8 sps:$4 sm:$0xff]  }
  0xab   : > { %816 = vmatprep.subr.bf16.mxu1 %v2725_v25  ;;  %v2794_v25 = vld [vmem:[#allocation7 + $0x24] ss:$8 sps:$4 sm:$0xff]   ;;  %1771 = vmatpush1.bf16.msra.mxu0 %v2793_v24  ;;  %v2817_v24 = vld [vmem:[#allocation7 + $0x90] ss:$8 sps:$4 sm:$0xff]  }
  0xac   : > { %1772 = vmatprep.subr.bf16.mxu0 %v2794_v25  ;;  %v2818_v25 = vld [vmem:[#allocation7 + $0xa4] ss:$8 sps:$4 sm:$0xff]  }
  0xae   : > { %817 = vmatpush1.bf16.msra.mxu1 %v2727_v26  ;;  %v312_v26 = vld [vmem:[%s3259_s16 + $0xa0] sm:$0xff] }
  0xaf   : > { %818 = vmatprep.subr.bf16.mxu1 %v2728_v27  ;;  %v314_v27 = vld [vmem:[%s3259_s16 + $0xb0] sm:$0xff] }
  0xb2   : > { %819 = vmatpush1.bf16.msra.mxu1 %v2730_v28  ;;  %v2767_v28 = vld [vmem:[#allocation5 + $0x128] ss:$16 sps:$4 sm:$0xff]  }
  0xb3   : > { %820 = vmatprep.subr.bf16.mxu1 %v2731_v29  ;;  %v317_v29 = vld [vmem:[%s3259_s16 + $0xc8] sm:$0xff] }
  0xb6   : > { %821 = vmatpush1.bf16.msra.mxu1 %v2733_v30  ;;  %v319_v30 = vld [vmem:[%s3259_s16 + $0xd8] sm:$0xff] }
  0xb7   : > { %822 = vmatprep.subr.bf16.mxu1 %v2734_v31  ;;  %v2772_v31 = vld [vmem:[#allocation5 + $0x14c] ss:$16 sps:$4 sm:$0xff]  }
  0xba   : > { %823 = vmatpush1.bf16.msra.mxu1 %v2736_v32  ;;  %v2796_v32 = vld [vmem:[#allocation7 + $0x20] ss:$8 sps:$4 sm:$0xff]  }
  0xbb   : > { %824 = vmatprep.subr.bf16.mxu1 %v2737_v33  ;;  %v3328_v33 = vpack.c.bf16 %v314_v27, %v312_v26  ;;  %1773 = vmatpush1.bf16.msra.mxu0 %v2796_v32  ;;  %v328_v26 = vld [vmem:[%s3259_s16 + $0x120] sm:$0xff]  ;;  %v330_v27 = vld [vmem:[%s3259_s16 + $0x130] sm:$0xff] }
  0xbe   : > { %825 = vmatpush1.bf16.msra.mxu1 %v2739_v34  ;;  %v3330_v34 = vpack.c.bf16 %v319_v30, %v317_v29  ;;  %v335_v29 = vld [vmem:[%s3259_s16 + $0x158] sm:$0xff]  ;;  %v2820_v30 = vld [vmem:[#allocation7 + $0xa0] ss:$8 sps:$4 sm:$0xff]  }
  0xbf   : > { %987 = vmatprep.subr.bf16.mxu1 %v2742_v37  ;;  %v2797_v37 = vld [vmem:[#allocation7 + $0x34] ss:$8 sps:$4 sm:$0xff]  }
  0xc0   : > { %1774 = vmatprep.subr.bf16.mxu0 %v2797_v37  ;;  %v2824_v37 = vld [vmem:[#allocation7 + $0xc4] ss:$8 sps:$4 sm:$0xff]  }
  0xc1   : > { %827 = vmatmul.mubr.bf16.vlgmr.msra.gmra.mrb[0].mxu1 %v3278_v40  ;;  %1775 = vmatpush1.bf16.msra.mxu0 %v2799_v38  ;;  %v332_v38 = vld [vmem:[%s3259_s16 + $0x140] sm:$0xff] }
  0xc2   : > { %988 = vmatpush1.bf16.msra.mxu1 %v2740_v41  ;;  %836 = vmatprep.mubr.bf16.mxu1 %v3280_v42  ;;  %v316_v41 = vld [vmem:[%s3259_s16 + $0xc0] sm:$0xff] }
  0xc3   : > { %989 = vmatprep.subr.bf16.mxu1 %v2745_v43  ;;  %v318_v43 = vld [vmem:[%s3259_s16 + $0xd0] sm:$0xff]  ;;  %1776 = vmatprep.subr.bf16.mxu0 %v2800_v39 }
  0xc4   : > { %v334_v39 = vld [vmem:[%s3259_s16 + $0x150] sm:$0xff] }
  0xc5   : > { %1777 = vmatpush1.bf16.msra.mxu0 %v2802_v48  ;;  %v336_v48 = vld [vmem:[%s3259_s16 + $0x160] sm:$0xff] }
  0xc6   : > { %990 = vmatpush1.bf16.msra.mxu1 %v2743_v46  ;;  %v323_v46 = vld [vmem:[%s3259_s16 + $0xf8] sm:$0xff]  ;;  %1778 = vmatprep.subr.bf16.mxu0 %v2803_v55  ;;  %v341_v55 = vld [vmem:[%s3259_s16 + $0x188] sm:$0xff] }
  0xc7   : > { %991 = vmatprep.subr.bf16.mxu1 %v2748_v49  ;;  %v3338_v49 = vpack.c.bf16 %v318_v43, %v316_v41  ;;  %v337_v41 = vld [vmem:[%s3259_s16 + $0x168] sm:$0xff]  ;;  %v339_v43 = vld [vmem:[%s3259_s16 + $0x178] sm:$0xff] }
  0xc9   : > { %837 = vmatmul.mubr.bf16.gmra.mrb[4].mxu1 %v3288_v51 }
  0xca   : > { %846 = vmatprep.mubr.bf16.mxu1 %v3290_v53  ;;  %992 = vmatpush1.bf16.msra.mxu1 %v2746_v50  ;;  %v3340_v50 = vpack.c.bf16 %v323_v46, %v321_v45  ;;  %v3378_v45 = vpack.c.bf16 %v334_v39, %v332_v38  ;;  %v3380_v46 = vpack.c.bf16 %v339_v43, %v337_v41  ;;  %v2841_v41 = vld [vmem:[#allocation7 + $0x114] ss:$8 sps:$4 sm:$0xff]  }
  0xcb   : > { %993 = vmatprep.subr.bf16.mxu1 %v2751_v52  ;;  %v2776_v52 = vld [vmem:[#allocation5 + $0x188] ss:$16 sps:$4 sm:$0xff]  }
  0xce   : > { %994 = vmatpush1.bf16.msra.mxu1 %v2749_v56  ;;  %v2805_v56 = vld [vmem:[#allocation7 + $0x50] ss:$8 sps:$4 sm:$0xff]  }
  0xcf   : > { %995 = vmatprep.subr.bf16.mxu1 %v2754_v59  ;;  %v322_v59 = vld [vmem:[%s3259_s16 + $0xf0] sm:$0xff]  ;;  %1779 = vmatpush1.bf16.msra.mxu0 %v2805_v56  ;;  %v343_v56 = vld [vmem:[%s3259_s16 + $0x198] sm:$0xff] }
  0xd0   : > { %v3348_v3 = vpack.c.bf16 %v322_v59, %v320_v58  ;;  %1780 = vmatprep.subr.bf16.mxu0 %v2806_v57  ;;  %v2830_v58 = vld [vmem:[#allocation7 + $0xe4] ss:$8 sps:$4 sm:$0xff]   ;;  %v3390_v59 = vpack.c.bf16 %v343_v56, %v341_v55 }
  0xd1   : > { %847 = vmatmul.mubr.bf16.gmra.mrb[8].mxu1 %v3298_v61  ;;  %v2844_v55 = vld [vmem:[#allocation7 + $0x124] ss:$8 sps:$4 sm:$0xff]  }
  0xd2   : > { %856 = vmatprep.mubr.bf16.mxu1 %v3300_v63  ;;  %996 = vmatpush1.bf16.msra.mxu1 %v2752_v60  ;;  %v2779_v60 = vld [vmem:[#allocation5 + $0x1a8] ss:$16 sps:$4 sm:$0xff]  }
  0xd3   : > { %997 = vmatprep.subr.bf16.mxu1 %v2757_v62  ;;  %v325_v62 = vld [vmem:[%s3259_s16 + $0x108] sm:$0xff] }
  0xd4   : > { %v3350_v4 = vpack.c.bf16 %v327_v0, %v325_v62  ;;  %v2833_v62 = vld [vmem:[#allocation7 + $0xf4] ss:$8 sps:$4 sm:$0xff]   ;;  %v340_v0 = vld [vmem:[%s3259_s16 + $0x180] sm:$0xff] }
  0xd6   : > { %998 = vmatpush1.bf16.msra.mxu1 %v2755_v2  ;;  %v2808_v2 = vld [vmem:[#allocation7 + $0x60] ss:$8 sps:$4 sm:$0xff]  }
  0xd7   : > { %999 = vmatprep.subr.bf16.mxu1 %v2760_v5  ;;  %v2782_v5 = vld [vmem:[#allocation5 + $0x1c8] ss:$16 sps:$4 sm:$0xff]   ;;  %1781 = vmatpush1.bf16.msra.mxu0 %v2808_v2 }
  0xd8   : > { %v2835_v2 = vld [vmem:[#allocation7 + $0xf0] ss:$8 sps:$4 sm:$0xff]  }
  0xd9   : > { %857 = vmatmul.mubr.bf16.gmra.mrb[12].mxu1 %v3308_v6 }
  0xda   : > { %866 = vmatprep.mubr.bf16.mxu1 %v3310_v7  ;;  %1000 = vmatpush1.bf16.msra.mxu1 %v2758_v8  ;;  %v2787_v8 = vld [vmem:[#allocation5 + $0x1ec] ss:$16 sps:$4 sm:$0xff]  }
  0xdb   : > { %1001 = vmatprep.subr.bf16.mxu1 %v2763_v9  ;;  %v2809_v9 = vld [vmem:[#allocation7 + $0x74] ss:$8 sps:$4 sm:$0xff]  }
  0xdc   : > { %1782 = vmatprep.subr.bf16.mxu0 %v2809_v9 }
  0xdd   : > { %1783 = vmatpush1.bf16.msra.mxu0 %v2811_v10 }
  0xde   : > { %1002 = vmatpush1.bf16.msra.mxu1 %v2761_v13  ;;  %v326_v13 = vld [vmem:[%s3259_s16 + $0x110] sm:$0xff]  ;;  %1784 = vmatprep.subr.bf16.mxu0 %v2812_v11  ;;  %v344_v11 = vld [vmem:[%s3259_s16 + $0x1a0] sm:$0xff] }
  0xdf   : > { %1003 = vmatprep.subr.bf16.mxu1 %v2766_v18  ;;  %v2814_v18 = vld [vmem:[#allocation7 + $0x80] ss:$8 sps:$4 sm:$0xff]  }
  0xe1   : > { %867 = vmatmul.mubr.bf16.gmra.mrb[16].mxu1 %v3318_v19  ;;  %1785 = vmatpush1.bf16.msra.mxu0 %v2814_v18 }
  0xe2   : > { %876 = vmatprep.mubr.bf16.mxu1 %v3320_v20  ;;  %1004 = vmatpush1.bf16.msra.mxu1 %v2764_v21  ;;  %v3358_v21 = vpack.c.bf16 %v326_v13, %v324_v12  ;;  %v346_v12 = vld [vmem:[%s3259_s16 + $0x1b0] sm:$0xff]  ;;  %v349_v13 = vld [vmem:[%s3259_s16 + $0x1c8] sm:$0xff] }
  0xe3   : > { %1005 = vmatprep.subr.bf16.mxu1 %v2769_v22  ;;  %v3360_v22 = vpack.c.bf16 %v331_v17, %v329_v16  ;;  %1786 = vmatprep.subr.bf16.mxu0 %v2815_v23  ;;  %v2838_v16 = vld [vmem:[#allocation7 + $0x104] ss:$8 sps:$4 sm:$0xff]   ;;  %v3408_v17 = vpack.c.bf16 %v346_v12, %v344_v11  ;;  %v2845_v12 = vld [vmem:[#allocation7 + $0x130] ss:$8 sps:$4 sm:$0xff]  }
  0xe4   : > { %v348_v23 = vld [vmem:[%s3259_s16 + $0x1c0] sm:$0xff] }
  0xe5   : > { %1787 = vmatpush1.bf16.msra.mxu0 %v2817_v24  ;;  %v350_v24 = vld [vmem:[%s3259_s16 + $0x1d0] sm:$0xff] }
  0xe6   : > { %1006 = vmatpush1.bf16.msra.mxu1 %v2767_v28  ;;  %v333_v28 = vld [vmem:[%s3259_s16 + $0x148] sm:$0xff]  ;;  %1788 = vmatprep.subr.bf16.mxu0 %v2818_v25 }
  0xe7   : > { %1007 = vmatprep.subr.bf16.mxu1 %v2772_v31  ;;  %v3368_v31 = vpack.c.bf16 %v330_v27, %v328_v26  ;;  %v3370_v32 = vpack.c.bf16 %v335_v29, %v333_v28  ;;  %v353_v25 = vld [vmem:[%s3259_s16 + $0x1e8] sm:$0xff]  ;;  %v355_v26 = vld [vmem:[%s3259_s16 + $0x1f8] sm:$0xff]  ;;  %v3418_v27 = vpack.c.bf16 %v350_v24, %v348_v23  ;;  %v352_v29 = vld [vmem:[%s3259_s16 + $0x1e0] sm:$0xff] }
  0xe8   : > { %v3420_v28 = vpack.c.bf16 %v355_v26, %v353_v25 }
  0xe9   : > { %877 = vmatmul.mubr.bf16.gmra.mrb[20].mxu1 %v3328_v33  ;;  %1789 = vmatpush1.bf16.msra.mxu0 %v2820_v30  ;;  %v354_v30 = vld [vmem:[%s3259_s16 + $0x1f0] sm:$0xff] }
  0xea   : > { %886 = vmatprep.mubr.bf16.mxu1 %v3330_v34  ;;  %1008 = vmatpush1.bf16.msra.mxu1 %v2770_v35  ;;  %v2821_v35 = vld [vmem:[#allocation7 + $0xb4] ss:$8 sps:$4 sm:$0xff]  }
  0xeb   : > { %1009 = vmatprep.subr.bf16.mxu1 %v2775_v36  ;;  %v2823_v36 = vld [vmem:[#allocation7 + $0xb0] ss:$8 sps:$4 sm:$0xff]   ;;  %1790 = vmatprep.subr.bf16.mxu0 %v2821_v35  ;;  %v3426_v35 = vpack.c.bf16 %v354_v30, %v352_v29  ;;  %v2848_v30 = vld [vmem:[#allocation7 + $0x140] ss:$8 sps:$4 sm:$0xff]  }
  0xed   : > { %1791 = vmatpush1.bf16.msra.mxu0 %v2823_v36 }
  0xee   : > { %1010 = vmatpush1.bf16.msra.mxu1 %v2773_v44  ;;  %v2826_v44 = vld [vmem:[#allocation7 + $0xc0] ss:$8 sps:$4 sm:$0xff]   ;;  %1792 = vmatprep.subr.bf16.mxu0 %v2824_v37 }
  0xef   : > { %1011 = vmatprep.subr.bf16.mxu1 %v2778_v47  ;;  %v2827_v47 = vld [vmem:[#allocation7 + $0xd4] ss:$8 sps:$4 sm:$0xff]   ;;  %v2836_v37 = vld [vmem:[#allocation7 + $0x100] ss:$8 sps:$4 sm:$0xff]  }
  0xf1   : > { %887 = vmatmul.mubr.bf16.gmra.mrb[24].mxu1 %v3338_v49  ;;  %1793 = vmatpush1.bf16.msra.mxu0 %v2826_v44 }
  0xf2   : > { %896 = vmatprep.mubr.bf16.mxu1 %v3340_v50  ;;  %1012 = vmatpush1.bf16.msra.mxu1 %v2776_v52  ;;  %v338_v52 = vld [vmem:[%s3259_s16 + $0x170] sm:$0xff] }
  0xf3   : > { %1013 = vmatprep.subr.bf16.mxu1 %v2781_v54  ;;  %v2829_v54 = vld [vmem:[#allocation7 + $0xd0] ss:$8 sps:$4 sm:$0xff]   ;;  %1794 = vmatprep.subr.bf16.mxu0 %v2827_v47  ;;  %v3388_v57 = vpack.c.bf16 %v338_v52, %v336_v48 }
  0xf4   : > { %v2839_v48 = vld [vmem:[#allocation7 + $0x110] ss:$8 sps:$4 sm:$0xff]  }
  0xf5   : > { %1795 = vmatpush1.bf16.msra.mxu0 %v2829_v54 }
  0xf6   : > { %1014 = vmatpush1.bf16.msra.mxu1 %v2779_v60  ;;  %v2832_v60 = vld [vmem:[#allocation7 + $0xe0] ss:$8 sps:$4 sm:$0xff]   ;;  %1796 = vmatprep.subr.bf16.mxu0 %v2830_v58 }
  0xf7   : > { %1015 = vmatprep.subr.bf16.mxu1 %v2784_v1  ;;  %v342_v1 = vld [vmem:[%s3259_s16 + $0x190] sm:$0xff] }
  0xf8   : > { %v3398_v9 = vpack.c.bf16 %v342_v1, %v340_v0 }
  0xf9   : > { %897 = vmatmul.mubr.bf16.gmra.mrb[28].mxu1 %v3348_v3  ;;  %1797 = vmatpush1.bf16.msra.mxu0 %v2832_v60 }
  0xfa   : > { %906 = vmatprep.mubr.bf16.mxu1 %v3350_v4  ;;  %1016 = vmatpush1.bf16.msra.mxu1 %v2782_v5  ;;  %v345_v5 = vld [vmem:[%s3259_s16 + $0x1a8] sm:$0xff] }
  0xfb   : > { %1017 = vmatprep.subr.bf16.mxu1 %v2787_v8  ;;  %v347_v8 = vld [vmem:[%s3259_s16 + $0x1b8] sm:$0xff]  ;;  %1798 = vmatprep.subr.bf16.mxu0 %v2833_v62  ;;  %v2842_v62 = vld [vmem:[#allocation7 + $0x120] ss:$8 sps:$4 sm:$0xff]  }
  0xfc   : > { %v3400_v10 = vpack.c.bf16 %v347_v8, %v345_v5 }
  0xfd   : > { %1799 = vmatpush1.bf16.msra.mxu0 %v2835_v2  ;;  %v2847_v2 = vld [vmem:[#allocation7 + $0x134] ss:$8 sps:$4 sm:$0xff]  }
  0xfe   : > { %1018 = vmatpush1.bf16.msra.mxu1 %v2785_v14  ;;  %v351_v14 = vld [vmem:[%s3259_s16 + $0x1d8] sm:$0xff]  ;;  %1961 = vmatprep.subr.bf16.mxu0 %v2838_v16  ;;  %v2850_v16 = vld [vmem:[#allocation7 + $0x144] ss:$8 sps:$4 sm:$0xff]  }
  0xff   : > { %v3410_v18 = vpack.c.bf16 %v351_v14, %v349_v13 }
 0x101   : > { %907 = vmatmul.mubr.bf16.gmra.mrb[32].mxu1 %v3358_v21 }
 0x102   : > { %916 = vmatprep.mubr.bf16.mxu1 %v3360_v22 }
 0x109   : > { %917 = vmatmul.mubr.bf16.gmra.mrb[36].mxu1 %v3368_v31 }
 0x10a   : > { %926 = vmatprep.mubr.bf16.mxu1 %v3370_v32 }
 0x111   : > { %927 = vmatmul.mubr.bf16.gmra.mrb[40].mxu1 %v3378_v45 }
 0x112   : > { %936 = vmatprep.mubr.bf16.mxu1 %v3380_v46 }
 0x119   : > { %937 = vmatmul.mubr.bf16.gmra.mrb[44].mxu1 %v3388_v57 }
 0x11a   : > { %946 = vmatprep.mubr.bf16.mxu1 %v3390_v59 }
 0x121   : > { %947 = vmatmul.mubr.bf16.gmra.mrb[48].mxu1 %v3398_v9 }
 0x122   : > { %956 = vmatprep.mubr.bf16.mxu1 %v3400_v10 }
 0x129   : > { %957 = vmatmul.mubr.bf16.gmra.mrb[52].mxu1 %v3408_v17 }
 0x12a   : > { %966 = vmatprep.mubr.bf16.mxu1 %v3410_v18 }
 0x131   : > { %967 = vmatmul.mubr.bf16.gmra.mrb[56].mxu1 %v3418_v27 }
 0x132   : > { %976 = vmatprep.mubr.bf16.mxu1 %v3420_v28 }
 0x139   : > { %977 = vmatmul.mubr.bf16.gmra.mrb[60].mxu1 %v3426_v35 }
 0x13a   : > { %1019 = vmatprep.mubr.bf16.mxu1 %v3271_v15  ;;  %v454_v15 = vlaneseq }
 0x141   : > { %1020 = vmatmul.mubr.bf16.vlgmr.msra.gmra.mrb[64].mxu1 %v3278_v40  ;;  %v3449_v40 = vshrl.u32 %v454_v15, 7 }
 0x142   : > { %1029 = vmatprep.mubr.bf16.mxu1 %v3280_v42 }
 0x143   : > { %v456_v42 = vsub.s32 0, %v3449_v40 }
 0x149   : > { %1030 = vmatmul.mubr.bf16.gmra.mrb[68].mxu1 %v3288_v51  ;;  %v3456_v51 = vld [vmem:[%s3824_s2] sm:$0xf] }
 0x14a   : > { %1039 = vmatprep.mubr.bf16.mxu1 %v3290_v53  ;;  %v460_v53 = vsub.s32 1, %v3449_v40 }
 0x151   : > { %1040 = vmatmul.mubr.bf16.gmra.mrb[72].mxu1 %v3298_v61  ;;  %v3463_v61 = vrot.slane %v3456_v51, %v456_v42 }
 0x152   : > { %1049 = vmatprep.mubr.bf16.mxu1 %v3300_v63  ;;  %v3468_v63 = vrot.slane %v3456_v51, %v460_v53 }
 0x159   : > { %1050 = vmatmul.mubr.bf16.gmra.mrb[76].mxu1 %v3308_v6 }
 0x15a   : > { %1059 = vmatprep.mubr.bf16.mxu1 %v3310_v7 }
 0x161   : > { %1060 = vmatmul.mubr.bf16.gmra.mrb[80].mxu1 %v3318_v19 }
 0x162   : > { %1069 = vmatprep.mubr.bf16.mxu1 %v3320_v20 }
 0x169   : > { %1070 = vmatmul.mubr.bf16.gmra.mrb[84].mxu1 %v3328_v33 }
 0x16a   : > { %1079 = vmatprep.mubr.bf16.mxu1 %v3330_v34 }
 0x171   : > { %1080 = vmatmul.mubr.bf16.gmra.mrb[88].mxu1 %v3338_v49 }
 0x172   : > { %1089 = vmatprep.mubr.bf16.mxu1 %v3340_v50 }
 0x179   : > { %1090 = vmatmul.mubr.bf16.gmra.mrb[92].mxu1 %v3348_v3 }
 0x17a   : > { %1099 = vmatprep.mubr.bf16.mxu1 %v3350_v4 }
 0x181   : > { %1100 = vmatmul.mubr.bf16.gmra.mrb[96].mxu1 %v3358_v21 }
 0x182   : > { %1109 = vmatprep.mubr.bf16.mxu1 %v3360_v22 }
 0x189   : > { %1110 = vmatmul.mubr.bf16.gmra.mrb[100].mxu1 %v3368_v31 }
 0x18a   : > { %1119 = vmatprep.mubr.bf16.mxu1 %v3370_v32 }
 0x191   : > { %1120 = vmatmul.mubr.bf16.gmra.mrb[104].mxu1 %v3378_v45 }
 0x192   : > { %1129 = vmatprep.mubr.bf16.mxu1 %v3380_v46 }
 0x194   : > { %v828_v6 = vpop.f32.mrb[0].mxu1 }
 0x195   : > { %v829_v7 = vadd.f32 %v828_v6, %v3463_v61  ;;  %v830_v19 = vpop.f32.mrb[1].mxu1 }
 0x196   : > { %v831_v20 = vadd.f32 %v830_v19, %v3468_v63  ;;  %v832_v33 = vpop.f32.mrb[2].mxu1 }
 0x197   : > { %v833_v34 = vadd.f32 %v832_v33, %v3463_v61  ;;  %v834_v49 = vpop.f32.mrb[3].mxu1  ;;  %v1180_v3 = vmax.f32 %v829_v7, 0.0  ;;  %v2853_v7 = vld [vmem:[#allocation7 + $0x154] ss:$8 sps:$4 sm:$0xff]  }
 0x198   : > { %v835_v50 = vadd.f32 %v834_v49, %v3468_v63  ;;  %v1181_v21 = vmax.f32 %v831_v20, 0.0 }
 0x199   : > { %v1184_v4 = vmax.f32 %v833_v34, 0.0  ;;  %1130 = vmatmul.mubr.bf16.gmra.mrb[108].mxu1 %v3388_v57  ;;  %v2851_v34 = vld [vmem:[#allocation7 + $0x150] ss:$8 sps:$4 sm:$0xff]  }
 0x19a   : > { %v1185_v22 = vmax.f32 %v835_v50, 0.0  ;;  %1139 = vmatprep.mubr.bf16.mxu1 %v3390_v59 }
 0x19b   : > { %v1308_v31 = vpack.c.bf16 %v1184_v4, %v1180_v3  ;;  %v2856_v3 = vld [vmem:[#allocation7 + $0x164] ss:$8 sps:$4 sm:$0xff]  }
 0x19c   : > { %v838_v32 = vpop.f32.mrb[4].mxu1  ;;  %v1309_v36 = vpack.c.bf16 %v1185_v22, %v1181_v21 }
 0x19d   : > { %v839_v38 = vadd.f32 %v838_v32, %v3463_v61  ;;  %v840_v39 = vpop.f32.mrb[5].mxu1 }
 0x19e   : > { %v841_v43 = vadd.f32 %v840_v39, %v3468_v63  ;;  %v842_v44 = vpop.f32.mrb[6].mxu1  ;;  %1800 = vmatprep.mubr.bf16.mxu0 %v1309_v36  ;;  %v2854_v36 = vld [vmem:[#allocation7 + $0x160] ss:$8 sps:$4 sm:$0xff]   ;;  %v2859_v39 = vld [vmem:[#allocation7 + $0x174] ss:$8 sps:$4 sm:$0xff]  }
 0x19f   : > { %v843_v45 = vadd.f32 %v842_v44, %v3463_v61  ;;  %v844_v46 = vpop.f32.mrb[7].mxu1  ;;  %1801 = vmatmul.mubr.bf16.vlgmr.msra.gmra.mrb[0].mxu0 %v1308_v31  ;;  %v1188_v52 = vmax.f32 %v839_v38, 0.0 }
 0x1a0   : > { %v845_v47 = vadd.f32 %v844_v46, %v3468_v63  ;;  %1962 = vmatpush1.bf16.msra.mxu0 %v2836_v37  ;;  %v1189_v56 = vmax.f32 %v841_v43, 0.0 }
 0x1a1   : > { %v1192_v54 = vmax.f32 %v843_v45, 0.0  ;;  %1140 = vmatmul.mubr.bf16.gmra.mrb[112].mxu1 %v3398_v9  ;;  %1963 = vmatprep.subr.bf16.mxu0 %v2841_v41  ;;  %v2857_v45 = vld [vmem:[#allocation7 + $0x170] ss:$8 sps:$4 sm:$0xff]  }
 0x1a2   : > { %v1193_v57 = vmax.f32 %v845_v47, 0.0  ;;  %1149 = vmatprep.mubr.bf16.mxu1 %v3400_v10 }
 0x1a3   : > { %v1312_v58 = vpack.c.bf16 %v1192_v54, %v1188_v52 }
 0x1a4   : > { %v1313_v59 = vpack.c.bf16 %v1193_v57, %v1189_v56  ;;  %v848_v60 = vpop.f32.mrb[8].mxu1  ;;  %1964 = vmatpush1.bf16.msra.mxu0 %v2839_v48  ;;  %v2862_v48 = vld [vmem:[#allocation7 + $0x184] ss:$8 sps:$4 sm:$0xff]  }
 0x1a5   : > { %v849_v0 = vadd.f32 %v848_v60, %v3463_v61  ;;  %v850_v1 = vpop.f32.mrb[9].mxu1  ;;  %1965 = vmatprep.subr.bf16.mxu0 %v2844_v55 }
 0x1a6   : > { %v851_v5 = vadd.f32 %v850_v1, %v3468_v63  ;;  %v852_v8 = vpop.f32.mrb[10].mxu1  ;;  %1810 = vmatprep.mubr.bf16.mxu0 %v1313_v59 }
 0x1a7   : > { %v853_v9 = vadd.f32 %v852_v8, %v3463_v61  ;;  %v854_v11 = vpop.f32.mrb[11].mxu1  ;;  %1811 = vmatmul.mubr.bf16.gmra.mrb[4].mxu0 %v1312_v58  ;;  %v1196_v13 = vmax.f32 %v849_v0, 0.0  ;;  %v2860_v58 = vld [vmem:[#allocation7 + $0x180] ss:$8 sps:$4 sm:$0xff]   ;;  %v2863_v8 = vld [vmem:[#allocation7 + $0x190] ss:$8 sps:$4 sm:$0xff]  }
 0x1a8   : > { %v855_v10 = vadd.f32 %v854_v11, %v3468_v63  ;;  %1966 = vmatpush1.bf16.msra.mxu0 %v2842_v62  ;;  %v1197_v23 = vmax.f32 %v851_v5, 0.0  ;;  %v2865_v62 = vld [vmem:[#allocation7 + $0x194] ss:$8 sps:$4 sm:$0xff]  }
 0x1a9   : > { %v1200_v14 = vmax.f32 %v853_v9, 0.0  ;;  %1150 = vmatmul.mubr.bf16.gmra.mrb[116].mxu1 %v3408_v17  ;;  %1967 = vmatprep.subr.bf16.mxu0 %v2847_v2 }
 0x1aa   : > { %v1201_v24 = vmax.f32 %v855_v10, 0.0  ;;  %1159 = vmatprep.mubr.bf16.mxu1 %v3410_v18  ;;  %v2868_v10 = vld [vmem:[#allocation7 + $0x1a4] ss:$8 sps:$4 sm:$0xff]  }
 0x1ab   : > { %v1316_v25 = vpack.c.bf16 %v1200_v14, %v1196_v13 }
 0x1ac   : > { %v1317_v26 = vpack.c.bf16 %v1201_v24, %v1197_v23  ;;  %v858_v29 = vpop.f32.mrb[12].mxu1  ;;  %1968 = vmatpush1.bf16.msra.mxu0 %v2845_v12  ;;  %v2866_v24 = vld [vmem:[#allocation7 + $0x1a0] ss:$8 sps:$4 sm:$0xff]  }
 0x1ad   : > { %v859_v15 = vadd.f32 %v858_v29, %v3463_v61  ;;  %v860_v6 = vpop.f32.mrb[13].mxu1  ;;  %1969 = vmatprep.subr.bf16.mxu0 %v2850_v16  ;;  %v2871_v29 = vld [vmem:[#allocation7 + $0x1b4] ss:$8 sps:$4 sm:$0xff]  }
 0x1ae   : > { %v861_v19 = vadd.f32 %v860_v6, %v3468_v63  ;;  %v862_v20 = vpop.f32.mrb[14].mxu1  ;;  %1820 = vmatprep.mubr.bf16.mxu0 %v1317_v26 }
 0x1af   : > { %v863_v17 = vadd.f32 %v862_v20, %v3463_v61  ;;  %v864_v33 = vpop.f32.mrb[15].mxu1  ;;  %1821 = vmatmul.mubr.bf16.gmra.mrb[8].mxu0 %v1316_v25  ;;  %v1204_v49 = vmax.f32 %v859_v15, 0.0  ;;  %v2869_v20 = vld [vmem:[#allocation7 + $0x1b0] ss:$8 sps:$4 sm:$0xff]  }
 0x1b0   : > { %v865_v18 = vadd.f32 %v864_v33, %v3468_v63  ;;  %1970 = vmatpush1.bf16.msra.mxu0 %v2848_v30  ;;  %v1205_v4 = vmax.f32 %v861_v19, 0.0 }
 0x1b1   : > { %v1208_v50 = vmax.f32 %v863_v17, 0.0  ;;  %1160 = vmatmul.mubr.bf16.gmra.mrb[120].mxu1 %v3418_v27  ;;  %1971 = vmatprep.subr.bf16.mxu0 %v2853_v7 }
 0x1b2   : > { %v1209_v21 = vmax.f32 %v865_v18, 0.0  ;;  %1169 = vmatprep.mubr.bf16.mxu1 %v3420_v28  ;;  %v2874_v18 = vld [vmem:[#allocation7 + $0x1c4] ss:$8 sps:$4 sm:$0xff]  }
 0x1b3   : > { %v1320_v22 = vpack.c.bf16 %v1208_v50, %v1204_v49 }
 0x1b4   : > { %v1321_v31 = vpack.c.bf16 %v1209_v21, %v1205_v4  ;;  %v868_v32 = vpop.f32.mrb[16].mxu1  ;;  %1972 = vmatpush1.bf16.msra.mxu0 %v2851_v34  ;;  %v2872_v21 = vld [vmem:[#allocation7 + $0x1c0] ss:$8 sps:$4 sm:$0xff]  }
 0x1b5   : > { %v869_v37 = vadd.f32 %v868_v32, %v3463_v61  ;;  %v870_v38 = vpop.f32.mrb[17].mxu1  ;;  %1973 = vmatprep.subr.bf16.mxu0 %v2856_v3  ;;  %v2877_v32 = vld [vmem:[#allocation7 + $0x1d4] ss:$8 sps:$4 sm:$0xff]  }
 0x1b6   : > { %v871_v41 = vadd.f32 %v870_v38, %v3468_v63  ;;  %v872_v43 = vpop.f32.mrb[18].mxu1  ;;  %1830 = vmatprep.mubr.bf16.mxu0 %v1321_v31 }
 0x1b7   : > { %v873_v27 = vadd.f32 %v872_v43, %v3463_v61  ;;  %v874_v44 = vpop.f32.mrb[19].mxu1  ;;  %1831 = vmatmul.mubr.bf16.gmra.mrb[12].mxu0 %v1320_v22  ;;  %v1212_v46 = vmax.f32 %v869_v37, 0.0  ;;  %v2875_v43 = vld [vmem:[#allocation7 + $0x1d0] ss:$8 sps:$4 sm:$0xff]  }
 0x1b8   : > { %v875_v28 = vadd.f32 %v874_v44, %v3468_v63  ;;  %1974 = vmatpush1.bf16.msra.mxu0 %v2854_v36  ;;  %v1213_v52 = vmax.f32 %v871_v41, 0.0 }
 0x1b9   : > { %v1216_v47 = vmax.f32 %v873_v27, 0.0  ;;  %1170 = vmatmul.mubr.bf16.gmra.mrb[124].mxu1 %v3426_v35  ;;  %1975 = vmatprep.subr.bf16.mxu0 %v2859_v39 }
 0x1ba   : > { %v1217_v54 = vmax.f32 %v875_v28, 0.0  ;;  %v2880_v28 = vld [vmem:[#allocation7 + $0x1e4] ss:$8 sps:$4 sm:$0xff]  }
 0x1bb   : > { %v1324_v55 = vpack.c.bf16 %v1216_v47, %v1212_v46 }
 0x1bc   : > { %v1325_v56 = vpack.c.bf16 %v1217_v54, %v1213_v52  ;;  %v878_v57 = vpop.f32.mrb[20].mxu1  ;;  %1976 = vmatpush1.bf16.msra.mxu0 %v2857_v45  ;;  %v2878_v54 = vld [vmem:[#allocation7 + $0x1e0] ss:$8 sps:$4 sm:$0xff]  }
 0x1bd   : > { %v879_v59 = vadd.f32 %v878_v57, %v3463_v61  ;;  %v880_v60 = vpop.f32.mrb[21].mxu1  ;;  %1977 = vmatprep.subr.bf16.mxu0 %v2862_v48  ;;  %v2883_v57 = vld [vmem:[#allocation7 + $0x1f4] ss:$8 sps:$4 sm:$0xff]  }
 0x1be   : > { %v881_v0 = vadd.f32 %v880_v60, %v3468_v63  ;;  %v882_v1 = vpop.f32.mrb[22].mxu1  ;;  %1840 = vmatprep.mubr.bf16.mxu0 %v1325_v56 }
 0x1bf   : > { %v883_v35 = vadd.f32 %v882_v1, %v3463_v61  ;;  %v884_v2 = vpop.f32.mrb[23].mxu1  ;;  %1841 = vmatmul.mubr.bf16.gmra.mrb[16].mxu0 %v1324_v55  ;;  %v1220_v9 = vmax.f32 %v879_v59, 0.0  ;;  %v2881_v1 = vld [vmem:[#allocation7 + $0x1f0] ss:$8 sps:$4 sm:$0xff]  }
 0x1c0   : > { %v885_v5 = vadd.f32 %v884_v2, %v3468_v63  ;;  %1978 = vmatpush1.bf16.msra.mxu0 %v2860_v58  ;;  %v1221_v12 = vmax.f32 %v881_v0, 0.0 }
 0x1c1   : > { %v1224_v11 = vmax.f32 %v883_v35, 0.0  ;;  %1979 = vmatprep.subr.bf16.mxu0 %v2865_v62 }
 0x1c2   : > { %v1225_v13 = vmax.f32 %v885_v5, 0.0 }
 0x1c3   : > { %v1328_v14 = vpack.c.bf16 %v1224_v11, %v1220_v9 }
 0x1c4   : > { %v1329_v16 = vpack.c.bf16 %v1225_v13, %v1221_v12  ;;  %v888_v23 = vpop.f32.mrb[24].mxu1  ;;  %1980 = vmatpush1.bf16.msra.mxu0 %v2863_v8 }
 0x1c5   : > { %v889_v25 = vadd.f32 %v888_v23, %v3463_v61  ;;  %v890_v26 = vpop.f32.mrb[25].mxu1  ;;  %1981 = vmatprep.subr.bf16.mxu0 %v2868_v10 }
 0x1c6   : > { %v891_v30 = vadd.f32 %v890_v26, %v3468_v63  ;;  %v892_v15 = vpop.f32.mrb[26].mxu1  ;;  %1850 = vmatprep.mubr.bf16.mxu0 %v1329_v16 }
 0x1c7   : > { %v893_v6 = vadd.f32 %v892_v15, %v3463_v61  ;;  %v894_v7 = vpop.f32.mrb[27].mxu1  ;;  %1851 = vmatmul.mubr.bf16.gmra.mrb[20].mxu0 %v1328_v14  ;;  %v1228_v17 = vmax.f32 %v889_v25, 0.0 }
 0x1c8   : > { %v895_v19 = vadd.f32 %v894_v7, %v3468_v63  ;;  %1982 = vmatpush1.bf16.msra.mxu0 %v2866_v24  ;;  %v1229_v34 = vmax.f32 %v891_v30, 0.0 }
 0x1c9   : > { %v1232_v33 = vmax.f32 %v893_v6, 0.0  ;;  %1983 = vmatprep.subr.bf16.mxu0 %v2871_v29 }
 0x1ca   : > { %v1233_v49 = vmax.f32 %v895_v19, 0.0 }
 0x1cb   : > { %v1332_v50 = vpack.c.bf16 %v1232_v33, %v1228_v17 }
 0x1cc   : > { %v1333_v3 = vpack.c.bf16 %v1233_v49, %v1229_v34  ;;  %v898_v4 = vpop.f32.mrb[28].mxu1  ;;  %1984 = vmatpush1.bf16.msra.mxu0 %v2869_v20 }
 0x1cd   : > { %v899_v22 = vadd.f32 %v898_v4, %v3463_v61  ;;  %v900_v31 = vpop.f32.mrb[29].mxu1  ;;  %1985 = vmatprep.subr.bf16.mxu0 %v2874_v18 }
 0x1ce   : > { %v901_v36 = vadd.f32 %v900_v31, %v3468_v63  ;;  %v902_v37 = vpop.f32.mrb[30].mxu1  ;;  %1860 = vmatprep.mubr.bf16.mxu0 %v1333_v3 }
 0x1cf   : > { %v903_v38 = vadd.f32 %v902_v37, %v3463_v61  ;;  %v904_v39 = vpop.f32.mrb[31].mxu1  ;;  %1861 = vmatmul.mubr.bf16.gmra.mrb[24].mxu0 %v1332_v50  ;;  %v1236_v27 = vmax.f32 %v899_v22, 0.0 }
 0x1d0   : > { %v905_v41 = vadd.f32 %v904_v39, %v3468_v63  ;;  %1986 = vmatpush1.bf16.msra.mxu0 %v2872_v21  ;;  %v1237_v45 = vmax.f32 %v901_v36, 0.0 }
 0x1d1   : > { %v1240_v44 = vmax.f32 %v903_v38, 0.0  ;;  %1987 = vmatprep.subr.bf16.mxu0 %v2877_v32 }
 0x1d2   : > { %v1241_v46 = vmax.f32 %v905_v41, 0.0 }
 0x1d3   : > { %v1336_v47 = vpack.c.bf16 %v1240_v44, %v1236_v27 }
 0x1d4   : > { %v1337_v48 = vpack.c.bf16 %v1241_v46, %v1237_v45  ;;  %v908_v52 = vpop.f32.mrb[32].mxu1  ;;  %1988 = vmatpush1.bf16.msra.mxu0 %v2875_v43 }
 0x1d5   : > { %v909_v55 = vadd.f32 %v908_v52, %v3463_v61  ;;  %v910_v56 = vpop.f32.mrb[33].mxu1  ;;  %1989 = vmatprep.subr.bf16.mxu0 %v2880_v28 }
 0x1d6   : > { %v911_v58 = vadd.f32 %v910_v56, %v3468_v63  ;;  %v912_v59 = vpop.f32.mrb[34].mxu1  ;;  %1870 = vmatprep.mubr.bf16.mxu0 %v1337_v48 }
 0x1d7   : > { %v913_v60 = vadd.f32 %v912_v59, %v3463_v61  ;;  %v914_v62 = vpop.f32.mrb[35].mxu1  ;;  %1871 = vmatmul.mubr.bf16.gmra.mrb[28].mxu0 %v1336_v47  ;;  %v1244_v35 = vmax.f32 %v909_v55, 0.0 }
 0x1d8   : > { %v915_v0 = vadd.f32 %v914_v62, %v3468_v63  ;;  %1990 = vmatpush1.bf16.msra.mxu0 %v2878_v54  ;;  %v1245_v5 = vmax.f32 %v911_v58, 0.0 }
 0x1d9   : > { %v1248_v2 = vmax.f32 %v913_v60, 0.0  ;;  %1991 = vmatprep.subr.bf16.mxu0 %v2883_v57 }
 0x1da   : > { %v1249_v8 = vmax.f32 %v915_v0, 0.0 }
 0x1db   : > { %v1340_v9 = vpack.c.bf16 %v1248_v2, %v1244_v35 }
 0x1dc   : > { %v1341_v11 = vpack.c.bf16 %v1249_v8, %v1245_v5  ;;  %v918_v10 = vpop.f32.mrb[36].mxu1  ;;  %1992 = vmatpush1.bf16.msra.mxu0 %v2881_v1 }
 0x1dd   : > { %v919_v12 = vadd.f32 %v918_v10, %v3463_v61  ;;  %v920_v13 = vpop.f32.mrb[37].mxu1 }
 0x1de   : > { %v921_v14 = vadd.f32 %v920_v13, %v3468_v63  ;;  %v922_v16 = vpop.f32.mrb[38].mxu1  ;;  %1880 = vmatprep.mubr.bf16.mxu0 %v1341_v11 }
 0x1df   : > { %v923_v23 = vadd.f32 %v922_v16, %v3463_v61  ;;  %v924_v24 = vpop.f32.mrb[39].mxu1  ;;  %1881 = vmatmul.mubr.bf16.gmra.mrb[32].mxu0 %v1340_v9  ;;  %v1252_v26 = vmax.f32 %v919_v12, 0.0 }
 0x1e0   : > { %v925_v25 = vadd.f32 %v924_v24, %v3468_v63  ;;  %v1253_v30 = vmax.f32 %v921_v14, 0.0 }
 0x1e1   : > { %v1256_v29 = vmax.f32 %v923_v23, 0.0 }
 0x1e2   : > { %v1257_v15 = vmax.f32 %v925_v25, 0.0 }
 0x1e3   : > { %v1344_v6 = vpack.c.bf16 %v1256_v29, %v1252_v26 }
 0x1e4   : > { %v1345_v7 = vpack.c.bf16 %v1257_v15, %v1253_v30  ;;  %v928_v19 = vpop.f32.mrb[40].mxu1 }
 0x1e5   : > { %v929_v20 = vadd.f32 %v928_v19, %v3463_v61  ;;  %v930_v17 = vpop.f32.mrb[41].mxu1 }
 0x1e6   : > { %v931_v33 = vadd.f32 %v930_v17, %v3468_v63  ;;  %v932_v18 = vpop.f32.mrb[42].mxu1  ;;  %1890 = vmatprep.mubr.bf16.mxu0 %v1345_v7 }
 0x1e7   : > { %v933_v34 = vadd.f32 %v932_v18, %v3463_v61  ;;  %v934_v49 = vpop.f32.mrb[43].mxu1  ;;  %1891 = vmatmul.mubr.bf16.gmra.mrb[36].mxu0 %v1344_v6  ;;  %v1260_v3 = vmax.f32 %v929_v20, 0.0 }
 0x1e8   : > { %v935_v50 = vadd.f32 %v934_v49, %v3468_v63  ;;  %v1261_v21 = vmax.f32 %v931_v33, 0.0 }
 0x1e9   : > { %v1264_v4 = vmax.f32 %v933_v34, 0.0 }
 0x1ea   : > { %v1265_v22 = vmax.f32 %v935_v50, 0.0 }
 0x1eb   : > { %v1348_v31 = vpack.c.bf16 %v1264_v4, %v1260_v3 }
 0x1ec   : > { %v1349_v32 = vpack.c.bf16 %v1265_v22, %v1261_v21  ;;  %v938_v36 = vpop.f32.mrb[44].mxu1 }
 0x1ed   : > { %v939_v37 = vadd.f32 %v938_v36, %v3463_v61  ;;  %v940_v38 = vpop.f32.mrb[45].mxu1 }
 0x1ee   : > { %v941_v39 = vadd.f32 %v940_v38, %v3468_v63  ;;  %v942_v41 = vpop.f32.mrb[46].mxu1  ;;  %1900 = vmatprep.mubr.bf16.mxu0 %v1349_v32 }
 0x1ef   : > { %v943_v43 = vadd.f32 %v942_v41, %v3463_v61  ;;  %v944_v27 = vpop.f32.mrb[47].mxu1  ;;  %1901 = vmatmul.mubr.bf16.gmra.mrb[40].mxu0 %v1348_v31  ;;  %v1268_v28 = vmax.f32 %v939_v37, 0.0  ;;  %v464_v37 = vsub.s32 2, %v3449_v40  ;;  %v468_v41 = vsub.s32 3, %v3449_v40 }
 0x1f0   : > { %v945_v44 = vadd.f32 %v944_v27, %v3468_v63  ;;  %v1269_v46 = vmax.f32 %v941_v39, 0.0 }
 0x1f1   : > { %v1272_v45 = vmax.f32 %v943_v43, 0.0 }
 0x1f2   : > { %v1273_v47 = vmax.f32 %v945_v44, 0.0 }
 0x1f3   : > { %v1352_v48 = vpack.c.bf16 %v1272_v45, %v1268_v28 }
 0x1f4   : > { %v1353_v52 = vpack.c.bf16 %v1273_v47, %v1269_v46  ;;  %v948_v54 = vpop.f32.mrb[48].mxu1  ;;  %v3547_v46 = vrot.slane %v3456_v51, %v464_v37 }
 0x1f5   : > { %v949_v55 = vadd.f32 %v948_v54, %v3463_v61  ;;  %v950_v56 = vpop.f32.mrb[49].mxu1 }
 0x1f6   : > { %v951_v57 = vadd.f32 %v950_v56, %v3468_v63  ;;  %v952_v58 = vpop.f32.mrb[50].mxu1  ;;  %1910 = vmatprep.mubr.bf16.mxu0 %v1353_v52  ;;  %v3550_v52 = vrot.slane %v3456_v51, %v468_v41 }
 0x1f7   : > { %v953_v59 = vadd.f32 %v952_v58, %v3463_v61  ;;  %v954_v60 = vpop.f32.mrb[51].mxu1  ;;  %1911 = vmatmul.mubr.bf16.gmra.mrb[44].mxu0 %v1352_v48  ;;  %v1276_v0 = vmax.f32 %v949_v55, 0.0 }
 0x1f8   : > { %v955_v62 = vadd.f32 %v954_v60, %v3468_v63  ;;  %v1277_v35 = vmax.f32 %v951_v57, 0.0 }
 0x1f9   : > { %v1280_v1 = vmax.f32 %v953_v59, 0.0 }
 0x1fa   : > { %v1281_v2 = vmax.f32 %v955_v62, 0.0 }
 0x1fb   : > { %v1356_v5 = vpack.c.bf16 %v1280_v1, %v1276_v0 }
 0x1fc   : > { %v1357_v8 = vpack.c.bf16 %v1281_v2, %v1277_v35  ;;  %v958_v9 = vpop.f32.mrb[52].mxu1 }
 0x1fd   : > { %v959_v11 = vadd.f32 %v958_v9, %v3463_v61  ;;  %v960_v10 = vpop.f32.mrb[53].mxu1 }
 0x1fe   : > { %v961_v12 = vadd.f32 %v960_v10, %v3468_v63  ;;  %v962_v13 = vpop.f32.mrb[54].mxu1  ;;  %1920 = vmatprep.mubr.bf16.mxu0 %v1357_v8 }
 0x1ff   : > { %v963_v14 = vadd.f32 %v962_v13, %v3463_v61  ;;  %v964_v16 = vpop.f32.mrb[55].mxu1  ;;  %1921 = vmatmul.mubr.bf16.gmra.mrb[48].mxu0 %v1356_v5  ;;  %v1284_v24 = vmax.f32 %v959_v11, 0.0 }
 0x200   : > { %v965_v23 = vadd.f32 %v964_v16, %v3468_v63  ;;  %v1285_v26 = vmax.f32 %v961_v12, 0.0 }
 0x201   : > { %v1288_v25 = vmax.f32 %v963_v14, 0.0 }
 0x202   : > { %v1289_v29 = vmax.f32 %v965_v23, 0.0 }
 0x203   : > { %v1360_v30 = vpack.c.bf16 %v1288_v25, %v1284_v24 }
 0x204   : > { %v1361_v15 = vpack.c.bf16 %v1289_v29, %v1285_v26  ;;  %v968_v6 = vpop.f32.mrb[56].mxu1 }
 0x205   : > { %v969_v7 = vadd.f32 %v968_v6, %v3463_v61  ;;  %v970_v19 = vpop.f32.mrb[57].mxu1 }
 0x206   : > { %v971_v20 = vadd.f32 %v970_v19, %v3468_v63  ;;  %v972_v17 = vpop.f32.mrb[58].mxu1  ;;  %1930 = vmatprep.mubr.bf16.mxu0 %v1361_v15 }
 0x207   : > { %v973_v33 = vadd.f32 %v972_v17, %v3463_v61  ;;  %v974_v18 = vpop.f32.mrb[59].mxu1  ;;  %1931 = vmatmul.mubr.bf16.gmra.mrb[52].mxu0 %v1360_v30  ;;  %v1292_v49 = vmax.f32 %v969_v7, 0.0 }
 0x208   : > { %v975_v34 = vadd.f32 %v974_v18, %v3468_v63  ;;  %v1293_v3 = vmax.f32 %v971_v20, 0.0 }
 0x209   : > { %v1296_v50 = vmax.f32 %v973_v33, 0.0 }
 0x20a   : > { %v1297_v4 = vmax.f32 %v975_v34, 0.0 }
 0x20b   : > { %v1364_v21 = vpack.c.bf16 %v1296_v50, %v1292_v49 }
 0x20c   : > { %v1365_v22 = vpack.c.bf16 %v1297_v4, %v1293_v3  ;;  %v978_v31 = vpop.f32.mrb[60].mxu1 }
 0x20d   : > { %v979_v32 = vadd.f32 %v978_v31, %v3463_v61  ;;  %v980_v36 = vpop.f32.mrb[61].mxu1 }
 0x20e   : > { %v981_v38 = vadd.f32 %v980_v36, %v3468_v63  ;;  %v982_v39 = vpop.f32.mrb[62].mxu1  ;;  %1940 = vmatprep.mubr.bf16.mxu0 %v1365_v22 }
 0x20f   : > { %v983_v43 = vadd.f32 %v982_v39, %v3463_v61  ;;  %v984_v27 = vpop.f32.mrb[63].mxu1  ;;  %1941 = vmatmul.mubr.bf16.gmra.mrb[56].mxu0 %v1364_v21  ;;  %v1300_v28 = vmax.f32 %v979_v32, 0.0 }
 0x210   : > { %v985_v44 = vadd.f32 %v984_v27, %v3468_v63  ;;  %v1301_v47 = vmax.f32 %v981_v38, 0.0 }
 0x211   : > { %v1304_v45 = vmax.f32 %v983_v43, 0.0 }
 0x212   : > { %v1305_v48 = vmax.f32 %v985_v44, 0.0 }
 0x213   : > { %v1368_v54 = vpack.c.bf16 %v1304_v45, %v1300_v28 }
 0x214   : > { %v1369_v55 = vpack.c.bf16 %v1305_v48, %v1301_v47  ;;  %v1021_v56 = vpop.f32.mrb[64].mxu1 }
 0x215   : > { %v1022_v57 = vadd.f32 %v1021_v56, %v3547_v46  ;;  %v1023_v61 = vpop.f32.mrb[65].mxu1 }
 0x216   : > { %v1024_v58 = vadd.f32 %v1023_v61, %v3550_v52  ;;  %v1025_v59 = vpop.f32.mrb[66].mxu1  ;;  %1950 = vmatprep.mubr.bf16.mxu0 %v1369_v55 }
 0x217   : > { %v1026_v63 = vadd.f32 %v1025_v59, %v3547_v46  ;;  %v1027_v60 = vpop.f32.mrb[67].mxu1  ;;  %1951 = vmatmul.mubr.bf16.gmra.mrb[60].mxu0 %v1368_v54  ;;  %v1182_v0 = vmax.f32 %v1022_v57, 0.0 }
 0x218   : > { %v1028_v62 = vadd.f32 %v1027_v60, %v3550_v52  ;;  %v1183_v51 = vmax.f32 %v1024_v58, 0.0 }
 0x219   : > { %v1186_v1 = vmax.f32 %v1026_v63, 0.0 }
 0x21a   : > { %v1187_v35 = vmax.f32 %v1028_v62, 0.0 }
 0x21b   : > { %v1310_v2 = vpack.c.bf16 %v1186_v1, %v1182_v0 }
 0x21c   : > { %v1311_v5 = vpack.c.bf16 %v1187_v35, %v1183_v51  ;;  %v1031_v8 = vpop.f32.mrb[68].mxu1 }
 0x21d   : > { %v1032_v9 = vadd.f32 %v1031_v8, %v3547_v46  ;;  %v1033_v11 = vpop.f32.mrb[69].mxu1 }
 0x21e   : > { %v1034_v10 = vadd.f32 %v1033_v11, %v3550_v52  ;;  %v1035_v12 = vpop.f32.mrb[70].mxu1  ;;  %1993 = vmatprep.mubr.bf16.mxu0 %v1311_v5 }
 0x21f   : > { %v1036_v13 = vadd.f32 %v1035_v12, %v3547_v46  ;;  %v1037_v14 = vpop.f32.mrb[71].mxu1  ;;  %1994 = vmatmul.mubr.bf16.vlgmr.msra.gmra.mrb[0].mxu0 %v1310_v2  ;;  %v1190_v23 = vmax.f32 %v1032_v9, 0.0 }
 0x220   : > { %v1038_v16 = vadd.f32 %v1037_v14, %v3550_v52  ;;  %v1191_v25 = vmax.f32 %v1034_v10, 0.0 }
 0x221   : > { %v1194_v24 = vmax.f32 %v1036_v13, 0.0 }
 0x222   : > { %v1195_v26 = vmax.f32 %v1038_v16, 0.0 }
 0x223   : > { %v1314_v29 = vpack.c.bf16 %v1194_v24, %v1190_v23 }
 0x224   : > { %v1315_v30 = vpack.c.bf16 %v1195_v26, %v1191_v25  ;;  %v1041_v15 = vpop.f32.mrb[72].mxu1 }
 0x225   : > { %v1042_v6 = vadd.f32 %v1041_v15, %v3547_v46  ;;  %v1043_v7 = vpop.f32.mrb[73].mxu1 }
 0x226   : > { %v1044_v19 = vadd.f32 %v1043_v7, %v3550_v52  ;;  %v1045_v20 = vpop.f32.mrb[74].mxu1  ;;  %2003 = vmatprep.mubr.bf16.mxu0 %v1315_v30 }
 0x227   : > { %v1046_v17 = vadd.f32 %v1045_v20, %v3547_v46  ;;  %v1047_v33 = vpop.f32.mrb[75].mxu1  ;;  %2004 = vmatmul.mubr.bf16.gmra.mrb[4].mxu0 %v1314_v29  ;;  %v1198_v34 = vmax.f32 %v1042_v6, 0.0 }
 0x228   : > { %v1048_v18 = vadd.f32 %v1047_v33, %v3550_v52  ;;  %v1199_v50 = vmax.f32 %v1044_v19, 0.0 }
 0x229   : > { %v1202_v49 = vmax.f32 %v1046_v17, 0.0 }
 0x22a   : > { %v1203_v3 = vmax.f32 %v1048_v18, 0.0 }
 0x22b   : > { %v1318_v4 = vpack.c.bf16 %v1202_v49, %v1198_v34 }
 0x22c   : > { %v1319_v21 = vpack.c.bf16 %v1203_v3, %v1199_v50  ;;  %v1051_v22 = vpop.f32.mrb[76].mxu1 }
 0x22d   : > { %v1052_v31 = vadd.f32 %v1051_v22, %v3547_v46  ;;  %v1053_v32 = vpop.f32.mrb[77].mxu1 }
 0x22e   : > { %v1054_v36 = vadd.f32 %v1053_v32, %v3550_v52  ;;  %v1055_v37 = vpop.f32.mrb[78].mxu1  ;;  %2013 = vmatprep.mubr.bf16.mxu0 %v1319_v21 }
 0x22f   : > { %v1056_v38 = vadd.f32 %v1055_v37, %v3547_v46  ;;  %v1057_v39 = vpop.f32.mrb[79].mxu1  ;;  %2014 = vmatmul.mubr.bf16.gmra.mrb[8].mxu0 %v1318_v4  ;;  %v1206_v43 = vmax.f32 %v1052_v31, 0.0 }
 0x230   : > { %v1058_v41 = vadd.f32 %v1057_v39, %v3550_v52  ;;  %v1207_v44 = vmax.f32 %v1054_v36, 0.0 }
 0x231   : > { %v1210_v27 = vmax.f32 %v1056_v38, 0.0 }
 0x232   : > { %v1211_v28 = vmax.f32 %v1058_v41, 0.0 }
 0x233   : > { %v1322_v45 = vpack.c.bf16 %v1210_v27, %v1206_v43 }
 0x234   : > { %v1323_v47 = vpack.c.bf16 %v1211_v28, %v1207_v44  ;;  %v1061_v48 = vpop.f32.mrb[80].mxu1 }
 0x235   : > { %v1062_v54 = vadd.f32 %v1061_v48, %v3547_v46  ;;  %v1063_v55 = vpop.f32.mrb[81].mxu1 }
 0x236   : > { %v1064_v56 = vadd.f32 %v1063_v55, %v3550_v52  ;;  %v1065_v57 = vpop.f32.mrb[82].mxu1  ;;  %2023 = vmatprep.mubr.bf16.mxu0 %v1323_v47 }
 0x237   : > { %v1066_v61 = vadd.f32 %v1065_v57, %v3547_v46  ;;  %v1067_v58 = vpop.f32.mrb[83].mxu1  ;;  %2024 = vmatmul.mubr.bf16.gmra.mrb[12].mxu0 %v1322_v45  ;;  %v1214_v63 = vmax.f32 %v1062_v54, 0.0 }
 0x238   : > { %v1068_v59 = vadd.f32 %v1067_v58, %v3550_v52  ;;  %v1215_v62 = vmax.f32 %v1064_v56, 0.0 }
 0x239   : > { %v1218_v60 = vmax.f32 %v1066_v61, 0.0 }
 0x23a   : > { %v1219_v0 = vmax.f32 %v1068_v59, 0.0 }
 0x23b   : > { %v1326_v1 = vpack.c.bf16 %v1218_v60, %v1214_v63 }
 0x23c   : > { %v1327_v51 = vpack.c.bf16 %v1219_v0, %v1215_v62  ;;  %v1071_v35 = vpop.f32.mrb[84].mxu1 }
 0x23d   : > { %v1072_v2 = vadd.f32 %v1071_v35, %v3547_v46  ;;  %v1073_v5 = vpop.f32.mrb[85].mxu1 }
 0x23e   : > { %v1074_v8 = vadd.f32 %v1073_v5, %v3550_v52  ;;  %v1075_v9 = vpop.f32.mrb[86].mxu1  ;;  %2033 = vmatprep.mubr.bf16.mxu0 %v1327_v51 }
 0x23f   : > { %v1076_v11 = vadd.f32 %v1075_v9, %v3547_v46  ;;  %v1077_v10 = vpop.f32.mrb[87].mxu1  ;;  %2034 = vmatmul.mubr.bf16.gmra.mrb[16].mxu0 %v1326_v1  ;;  %v1222_v13 = vmax.f32 %v1072_v2, 0.0 }
 0x240   : > { %v1078_v12 = vadd.f32 %v1077_v10, %v3550_v52  ;;  %v1223_v16 = vmax.f32 %v1074_v8, 0.0 }
 0x241   : > { %v1226_v14 = vmax.f32 %v1076_v11, 0.0 }
 0x242   : > { %v1227_v23 = vmax.f32 %v1078_v12, 0.0 }
 0x243   : > { %v1330_v24 = vpack.c.bf16 %v1226_v14, %v1222_v13 }
 0x244   : > { %v1331_v25 = vpack.c.bf16 %v1227_v23, %v1223_v16  ;;  %v1081_v26 = vpop.f32.mrb[88].mxu1 }
 0x245   : > { %v1082_v29 = vadd.f32 %v1081_v26, %v3547_v46  ;;  %v1083_v30 = vpop.f32.mrb[89].mxu1 }
 0x246   : > { %v1084_v15 = vadd.f32 %v1083_v30, %v3550_v52  ;;  %v1085_v6 = vpop.f32.mrb[90].mxu1  ;;  %2043 = vmatprep.mubr.bf16.mxu0 %v1331_v25 }
 0x247   : > { %v1086_v7 = vadd.f32 %v1085_v6, %v3547_v46  ;;  %v1087_v19 = vpop.f32.mrb[91].mxu1  ;;  %2044 = vmatmul.mubr.bf16.gmra.mrb[20].mxu0 %v1330_v24  ;;  %v1230_v17 = vmax.f32 %v1082_v29, 0.0 }
 0x248   : > { %v1088_v20 = vadd.f32 %v1087_v19, %v3550_v52  ;;  %v1231_v18 = vmax.f32 %v1084_v15, 0.0 }
 0x249   : > { %v1234_v33 = vmax.f32 %v1086_v7, 0.0 }
 0x24a   : > { %v1235_v34 = vmax.f32 %v1088_v20, 0.0 }
 0x24b   : > { %v1334_v49 = vpack.c.bf16 %v1234_v33, %v1230_v17 }
 0x24c   : > { %v1335_v50 = vpack.c.bf16 %v1235_v34, %v1231_v18  ;;  %v1091_v3 = vpop.f32.mrb[92].mxu1 }
 0x24d   : > { %v1092_v4 = vadd.f32 %v1091_v3, %v3547_v46  ;;  %v1093_v21 = vpop.f32.mrb[93].mxu1 }
 0x24e   : > { %v1094_v22 = vadd.f32 %v1093_v21, %v3550_v52  ;;  %v1095_v31 = vpop.f32.mrb[94].mxu1  ;;  %2053 = vmatprep.mubr.bf16.mxu0 %v1335_v50 }
 0x24f   : > { %v1096_v32 = vadd.f32 %v1095_v31, %v3547_v46  ;;  %v1097_v36 = vpop.f32.mrb[95].mxu1  ;;  %2054 = vmatmul.mubr.bf16.gmra.mrb[24].mxu0 %v1334_v49  ;;  %v1238_v38 = vmax.f32 %v1092_v4, 0.0 }
 0x250   : > { %v1098_v37 = vadd.f32 %v1097_v36, %v3550_v52  ;;  %v1239_v41 = vmax.f32 %v1094_v22, 0.0 }
 0x251   : > { %v1242_v39 = vmax.f32 %v1096_v32, 0.0 }
 0x252   : > { %v1243_v43 = vmax.f32 %v1098_v37, 0.0 }
 0x253   : > { %v1338_v27 = vpack.c.bf16 %v1242_v39, %v1238_v38 }
 0x254   : > { %v1339_v44 = vpack.c.bf16 %v1243_v43, %v1239_v41  ;;  %v1101_v28 = vpop.f32.mrb[96].mxu1 }
 0x255   : > { %v1102_v45 = vadd.f32 %v1101_v28, %v3547_v46  ;;  %v1103_v47 = vpop.f32.mrb[97].mxu1 }
 0x256   : > { %v1104_v48 = vadd.f32 %v1103_v47, %v3550_v52  ;;  %v1105_v54 = vpop.f32.mrb[98].mxu1  ;;  %2063 = vmatprep.mubr.bf16.mxu0 %v1339_v44 }
 0x257   : > { %v1106_v55 = vadd.f32 %v1105_v54, %v3547_v46  ;;  %v1107_v56 = vpop.f32.mrb[99].mxu1  ;;  %2064 = vmatmul.mubr.bf16.gmra.mrb[28].mxu0 %v1338_v27  ;;  %v1246_v61 = vmax.f32 %v1102_v45, 0.0 }
 0x258   : > { %v1108_v57 = vadd.f32 %v1107_v56, %v3550_v52  ;;  %v1247_v59 = vmax.f32 %v1104_v48, 0.0 }
 0x259   : > { %v1250_v58 = vmax.f32 %v1106_v55, 0.0 }
 0x25a   : > { %v1251_v63 = vmax.f32 %v1108_v57, 0.0 }
 0x25b   : > { %v1342_v60 = vpack.c.bf16 %v1250_v58, %v1246_v61 }
 0x25c   : > { %v1343_v62 = vpack.c.bf16 %v1251_v63, %v1247_v59  ;;  %v1111_v0 = vpop.f32.mrb[100].mxu1 }
 0x25d   : > { %v1112_v1 = vadd.f32 %v1111_v0, %v3547_v46  ;;  %v1113_v51 = vpop.f32.mrb[101].mxu1 }
 0x25e   : > { %v1114_v35 = vadd.f32 %v1113_v51, %v3550_v52  ;;  %v1115_v2 = vpop.f32.mrb[102].mxu1  ;;  %2073 = vmatprep.mubr.bf16.mxu0 %v1343_v62 }
 0x25f   : > { %v1116_v5 = vadd.f32 %v1115_v2, %v3547_v46  ;;  %v1117_v8 = vpop.f32.mrb[103].mxu1  ;;  %2074 = vmatmul.mubr.bf16.gmra.mrb[32].mxu0 %v1342_v60  ;;  %v1254_v11 = vmax.f32 %v1112_v1, 0.0 }
 0x260   : > { %v1118_v9 = vadd.f32 %v1117_v8, %v3550_v52  ;;  %v1255_v12 = vmax.f32 %v1114_v35, 0.0 }
 0x261   : > { %v1258_v10 = vmax.f32 %v1116_v5, 0.0 }
 0x262   : > { %v1259_v13 = vmax.f32 %v1118_v9, 0.0 }
 0x263   : > { %v1346_v14 = vpack.c.bf16 %v1258_v10, %v1254_v11 }
 0x264   : > { %v1347_v16 = vpack.c.bf16 %v1259_v13, %v1255_v12  ;;  %v1121_v23 = vpop.f32.mrb[104].mxu1 }
 0x265   : > { %v1122_v24 = vadd.f32 %v1121_v23, %v3547_v46  ;;  %v1123_v25 = vpop.f32.mrb[105].mxu1 }
 0x266   : > { %v1124_v26 = vadd.f32 %v1123_v25, %v3550_v52  ;;  %v1125_v29 = vpop.f32.mrb[106].mxu1  ;;  %2083 = vmatprep.mubr.bf16.mxu0 %v1347_v16 }
 0x267   : > { %v1126_v30 = vadd.f32 %v1125_v29, %v3547_v46  ;;  %v1127_v15 = vpop.f32.mrb[107].mxu1  ;;  %2084 = vmatmul.mubr.bf16.gmra.mrb[36].mxu0 %v1346_v14  ;;  %v1262_v7 = vmax.f32 %v1122_v24, 0.0 }
 0x268   : > { %v1128_v6 = vadd.f32 %v1127_v15, %v3550_v52  ;;  %v1263_v20 = vmax.f32 %v1124_v26, 0.0 }
 0x269   : > { %v1266_v19 = vmax.f32 %v1126_v30, 0.0 }
 0x26a   : > { %v1267_v17 = vmax.f32 %v1128_v6, 0.0 }
 0x26b   : > { %v1350_v33 = vpack.c.bf16 %v1266_v19, %v1262_v7 }
 0x26c   : > { %v1351_v18 = vpack.c.bf16 %v1267_v17, %v1263_v20  ;;  %v1131_v34 = vpop.f32.mrb[108].mxu1 }
 0x26d   : > { %v1132_v49 = vadd.f32 %v1131_v34, %v3547_v46  ;;  %v1133_v50 = vpop.f32.mrb[109].mxu1 }
 0x26e   : > { %v1134_v3 = vadd.f32 %v1133_v50, %v3550_v52  ;;  %v1135_v4 = vpop.f32.mrb[110].mxu1  ;;  %2093 = vmatprep.mubr.bf16.mxu0 %v1351_v18 }
 0x26f   : > { %v1136_v21 = vadd.f32 %v1135_v4, %v3547_v46  ;;  %v1137_v22 = vpop.f32.mrb[111].mxu1  ;;  %2094 = vmatmul.mubr.bf16.gmra.mrb[40].mxu0 %v1350_v33  ;;  %v1270_v32 = vmax.f32 %v1132_v49, 0.0 }
 0x270   : > { %v1138_v31 = vadd.f32 %v1137_v22, %v3550_v52  ;;  %v1271_v37 = vmax.f32 %v1134_v3, 0.0 }
 0x271   : > { %v1274_v36 = vmax.f32 %v1136_v21, 0.0 }
 0x272   : > { %v1275_v38 = vmax.f32 %v1138_v31, 0.0 }
 0x273   : > { %v1354_v39 = vpack.c.bf16 %v1274_v36, %v1270_v32 }
 0x274   : > { %v1355_v41 = vpack.c.bf16 %v1275_v38, %v1271_v37  ;;  %v1141_v43 = vpop.f32.mrb[112].mxu1  ;;  %v1436_v38 = vld [vmem:[%s3826_s4] sm:$0x3] }
 0x275   : > { %v1142_v27 = vadd.f32 %v1141_v43, %v3547_v46  ;;  %v1143_v44 = vpop.f32.mrb[113].mxu1 }
 0x276   : > { %v1144_v28 = vadd.f32 %v1143_v44, %v3550_v52  ;;  %v1145_v45 = vpop.f32.mrb[114].mxu1  ;;  %2103 = vmatprep.mubr.bf16.mxu0 %v1355_v41 }
 0x277   : > { %v1146_v47 = vadd.f32 %v1145_v45, %v3547_v46  ;;  %v1147_v48 = vpop.f32.mrb[115].mxu1  ;;  %2104 = vmatmul.mubr.bf16.gmra.mrb[44].mxu0 %v1354_v39  ;;  %v1278_v55 = vmax.f32 %v1142_v27, 0.0 }
 0x278   : > { %v1148_v54 = vadd.f32 %v1147_v48, %v3550_v52  ;;  %v1279_v57 = vmax.f32 %v1144_v28, 0.0 }
 0x279   : > { %v1282_v56 = vmax.f32 %v1146_v47, 0.0 }
 0x27a   : > { %v1283_v61 = vmax.f32 %v1148_v54, 0.0 }
 0x27b   : > { %v1358_v58 = vpack.c.bf16 %v1282_v56, %v1278_v55 }
 0x27c   : > { %v1359_v59 = vpack.c.bf16 %v1283_v61, %v1279_v57  ;;  %v1151_v63 = vpop.f32.mrb[116].mxu1 }
 0x27d   : > { %v1152_v60 = vadd.f32 %v1151_v63, %v3547_v46  ;;  %v1153_v62 = vpop.f32.mrb[117].mxu1 }
 0x27e   : > { %v1154_v0 = vadd.f32 %v1153_v62, %v3550_v52  ;;  %v1155_v1 = vpop.f32.mrb[118].mxu1  ;;  %2113 = vmatprep.mubr.bf16.mxu0 %v1359_v59 }
 0x27f   : > { %v1156_v51 = vadd.f32 %v1155_v1, %v3547_v46  ;;  %v1157_v35 = vpop.f32.mrb[119].mxu1  ;;  %2114 = vmatmul.mubr.bf16.gmra.mrb[48].mxu0 %v1358_v58  ;;  %v1286_v5 = vmax.f32 %v1152_v60, 0.0 }
 0x280   : > { %v1158_v2 = vadd.f32 %v1157_v35, %v3550_v52  ;;  %v1287_v9 = vmax.f32 %v1154_v0, 0.0 }
 0x281   : > { %v1290_v8 = vmax.f32 %v1156_v51, 0.0 }
 0x282   : > { %v1291_v11 = vmax.f32 %v1158_v2, 0.0 }
 0x283   : > { %v1362_v10 = vpack.c.bf16 %v1290_v8, %v1286_v5 }
 0x284   : > { %v1363_v12 = vpack.c.bf16 %v1291_v11, %v1287_v9  ;;  %v1161_v13 = vpop.f32.mrb[120].mxu1 }
 0x285   : > { %v1162_v14 = vadd.f32 %v1161_v13, %v3547_v46  ;;  %v1163_v16 = vpop.f32.mrb[121].mxu1 }
 0x286   : > { %v1164_v23 = vadd.f32 %v1163_v16, %v3550_v52  ;;  %v1165_v24 = vpop.f32.mrb[122].mxu1  ;;  %2123 = vmatprep.mubr.bf16.mxu0 %v1363_v12 }
 0x287   : > { %v1166_v25 = vadd.f32 %v1165_v24, %v3547_v46  ;;  %v1167_v26 = vpop.f32.mrb[123].mxu1  ;;  %2124 = vmatmul.mubr.bf16.gmra.mrb[52].mxu0 %v1362_v10  ;;  %v1294_v30 = vmax.f32 %v1162_v14, 0.0 }
 0x288   : > { %v1168_v29 = vadd.f32 %v1167_v26, %v3550_v52  ;;  %v1295_v6 = vmax.f32 %v1164_v23, 0.0 }
 0x289   : > { %v1298_v15 = vmax.f32 %v1166_v25, 0.0 }
 0x28a   : > { %v1299_v7 = vmax.f32 %v1168_v29, 0.0 }
 0x28b   : > { %v1366_v19 = vpack.c.bf16 %v1298_v15, %v1294_v30 }
 0x28c   : > { %v1367_v20 = vpack.c.bf16 %v1299_v7, %v1295_v6  ;;  %v1171_v17 = vpop.f32.mrb[124].mxu1 }
 0x28d   : > { %v1172_v33 = vadd.f32 %v1171_v17, %v3547_v46  ;;  %v1173_v18 = vpop.f32.mrb[125].mxu1 }
 0x28e   : > { %v1174_v34 = vadd.f32 %v1173_v18, %v3550_v52  ;;  %v1175_v49 = vpop.f32.mrb[126].mxu1  ;;  %2133 = vmatprep.mubr.bf16.mxu0 %v1367_v20 }
 0x28f   : > { %v1176_v50 = vadd.f32 %v1175_v49, %v3547_v46  ;;  %v1177_v3 = vpop.f32.mrb[127].mxu1  ;;  %2134 = vmatmul.mubr.bf16.gmra.mrb[56].mxu0 %v1366_v19  ;;  %v1302_v21 = vmax.f32 %v1172_v33, 0.0  ;;  %v3621_v46 = vrot.slane %v1436_v38, %v456_v42 }
 0x290   : > { %v1178_v4 = vadd.f32 %v1177_v3, %v3550_v52  ;;  %v1303_v31 = vmax.f32 %v1174_v34, 0.0  ;;  %v3625_v52 = vrot.slane %v1436_v38, %v460_v53 }
 0x291   : > { %v1306_v22 = vmax.f32 %v1176_v50, 0.0 }
 0x292   : > { %v1307_v32 = vmax.f32 %v1178_v4, 0.0 }
 0x293   : > { %v1370_v36 = vpack.c.bf16 %v1306_v22, %v1302_v21 }
 0x294   : > { %v1371_v37 = vpack.c.bf16 %v1307_v32, %v1303_v31 }
 0x296   : > { %2143 = vmatprep.mubr.bf16.mxu0 %v1371_v37 }
 0x297   : > { %2144 = vmatmul.mubr.bf16.gmra.mrb[60].mxu0 %v1370_v36 }
 0x2f2   : > { %v1995_v39 = vpop.f32.mrb[0].mxu0 }
 0x2f3   : > { %v2496_v41 = vadd.f32 %v1995_v39, %v3621_v46  ;;  %v1997_v43 = vpop.f32.mrb[1].mxu0 }
 0x2f4   : > { %v2497_v27 = vadd.f32 %v1997_v43, %v3625_v52  ;;  %v1999_v44 = vpop.f32.mrb[2].mxu0 }
 0x2f5   : > { %2154 = vst [vmem:[%s3631_s27] sm:$0xff] %v2496_v41  ;;  %v2498_v40 = vadd.f32 %v1999_v44, %v3621_v46  ;;  %v2001_v42 = vpop.f32.mrb[3].mxu0 }
 0x2f6   : > { %2155 = vst [vmem:[%s3631_s27 + $0x8] sm:$0xff] %v2497_v27  ;;  %v2499_v53 = vadd.f32 %v2001_v42, %v3625_v52 }
 0x2f7   : > { %2156 = vst [vmem:[%s3631_s27 + $0x10] sm:$0xff] %v2498_v40 }
 0x2f8   : > { %2157 = vst [vmem:[%s3631_s27 + $0x18] sm:$0xff] %v2499_v53 }
 0x2fa   : > { %v2005_v28 = vpop.f32.mrb[4].mxu0 }
 0x2fb   : > { %v2500_v45 = vadd.f32 %v2005_v28, %v3621_v46  ;;  %v2007_v47 = vpop.f32.mrb[5].mxu0 }
 0x2fc   : > { %v2501_v48 = vadd.f32 %v2007_v47, %v3625_v52  ;;  %v2009_v54 = vpop.f32.mrb[6].mxu0 }
 0x2fd   : > { %2158 = vst [vmem:[%s3631_s27 + $0x20] sm:$0xff] %v2500_v45  ;;  %v2502_v55 = vadd.f32 %v2009_v54, %v3621_v46  ;;  %v2011_v56 = vpop.f32.mrb[7].mxu0 }
 0x2fe   : > { %2159 = vst [vmem:[%s3631_s27 + $0x28] sm:$0xff] %v2501_v48  ;;  %v2503_v57 = vadd.f32 %v2011_v56, %v3625_v52 }
 0x2ff   : > { %2160 = vst [vmem:[%s3631_s27 + $0x30] sm:$0xff] %v2502_v55 }
 0x300   : > { %2161 = vst [vmem:[%s3631_s27 + $0x38] sm:$0xff] %v2503_v57 }
 0x302   : > { %v2015_v61 = vpop.f32.mrb[8].mxu0 }
 0x303   : > { %v2504_v58 = vadd.f32 %v2015_v61, %v3621_v46  ;;  %v2017_v59 = vpop.f32.mrb[9].mxu0 }
 0x304   : > { %v2505_v63 = vadd.f32 %v2017_v59, %v3625_v52  ;;  %v2019_v60 = vpop.f32.mrb[10].mxu0 }
 0x305   : > { %2162 = vst [vmem:[%s3631_s27 + $0x40] sm:$0xff] %v2504_v58  ;;  %v2506_v62 = vadd.f32 %v2019_v60, %v3621_v46  ;;  %v2021_v0 = vpop.f32.mrb[11].mxu0 }
 0x306   : > { %2163 = vst [vmem:[%s3631_s27 + $0x48] sm:$0xff] %v2505_v63  ;;  %v2507_v1 = vadd.f32 %v2021_v0, %v3625_v52 }
 0x307   : > { %2164 = vst [vmem:[%s3631_s27 + $0x50] sm:$0xff] %v2506_v62 }
 0x308   : > { %2165 = vst [vmem:[%s3631_s27 + $0x58] sm:$0xff] %v2507_v1 }
 0x30a   : > { %v2025_v51 = vpop.f32.mrb[12].mxu0 }
 0x30b   : > { %v2508_v35 = vadd.f32 %v2025_v51, %v3621_v46  ;;  %v2027_v2 = vpop.f32.mrb[13].mxu0 }
 0x30c   : > { %v2509_v5 = vadd.f32 %v2027_v2, %v3625_v52  ;;  %v2029_v8 = vpop.f32.mrb[14].mxu0 }
 0x30d   : > { %2166 = vst [vmem:[%s3631_s27 + $0x60] sm:$0xff] %v2508_v35  ;;  %v2510_v9 = vadd.f32 %v2029_v8, %v3621_v46  ;;  %v2031_v11 = vpop.f32.mrb[15].mxu0 }
 0x30e   : > { %2167 = vst [vmem:[%s3631_s27 + $0x68] sm:$0xff] %v2509_v5  ;;  %v2511_v10 = vadd.f32 %v2031_v11, %v3625_v52 }
 0x30f   : > { %2168 = vst [vmem:[%s3631_s27 + $0x70] sm:$0xff] %v2510_v9 }
 0x310   : > { %2169 = vst [vmem:[%s3631_s27 + $0x78] sm:$0xff] %v2511_v10 }
 0x312   : > { %v2035_v12 = vpop.f32.mrb[16].mxu0 }
 0x313   : > { %v2512_v13 = vadd.f32 %v2035_v12, %v3621_v46  ;;  %v2037_v14 = vpop.f32.mrb[17].mxu0 }
 0x314   : > { %v2513_v16 = vadd.f32 %v2037_v14, %v3625_v52  ;;  %v2039_v23 = vpop.f32.mrb[18].mxu0 }
 0x315   : > { %2170 = vst [vmem:[%s3631_s27 + $0x80] sm:$0xff] %v2512_v13  ;;  %v2514_v24 = vadd.f32 %v2039_v23, %v3621_v46  ;;  %v2041_v25 = vpop.f32.mrb[19].mxu0 }
 0x316   : > { %2171 = vst [vmem:[%s3631_s27 + $0x88] sm:$0xff] %v2513_v16  ;;  %v2515_v26 = vadd.f32 %v2041_v25, %v3625_v52 }
 0x317   : > { %2172 = vst [vmem:[%s3631_s27 + $0x90] sm:$0xff] %v2514_v24 }
 0x318   : > { %2173 = vst [vmem:[%s3631_s27 + $0x98] sm:$0xff] %v2515_v26 }
 0x31a   : > { %v2045_v29 = vpop.f32.mrb[20].mxu0 }
 0x31b   : > { %v2516_v30 = vadd.f32 %v2045_v29, %v3621_v46  ;;  %v2047_v15 = vpop.f32.mrb[21].mxu0 }
 0x31c   : > { %v2517_v6 = vadd.f32 %v2047_v15, %v3625_v52  ;;  %v2049_v7 = vpop.f32.mrb[22].mxu0 }
 0x31d   : > { %2174 = vst [vmem:[%s3631_s27 + $0xa0] sm:$0xff] %v2516_v30  ;;  %v2518_v19 = vadd.f32 %v2049_v7, %v3621_v46  ;;  %v2051_v20 = vpop.f32.mrb[23].mxu0 }
 0x31e   : > { %2175 = vst [vmem:[%s3631_s27 + $0xa8] sm:$0xff] %v2517_v6  ;;  %v2519_v17 = vadd.f32 %v2051_v20, %v3625_v52 }
 0x31f   : > { %2176 = vst [vmem:[%s3631_s27 + $0xb0] sm:$0xff] %v2518_v19 }
 0x320   : > { %2177 = vst [vmem:[%s3631_s27 + $0xb8] sm:$0xff] %v2519_v17 }
 0x322   : > { %v2055_v33 = vpop.f32.mrb[24].mxu0 }
 0x323   : > { %v2520_v18 = vadd.f32 %v2055_v33, %v3621_v46  ;;  %v2057_v34 = vpop.f32.mrb[25].mxu0 }
 0x324   : > { %v2521_v49 = vadd.f32 %v2057_v34, %v3625_v52  ;;  %v2059_v50 = vpop.f32.mrb[26].mxu0 }
 0x325   : > { %2178 = vst [vmem:[%s3631_s27 + $0xc0] sm:$0xff] %v2520_v18  ;;  %v2522_v3 = vadd.f32 %v2059_v50, %v3621_v46  ;;  %v2061_v4 = vpop.f32.mrb[27].mxu0 }
 0x326   : > { %2179 = vst [vmem:[%s3631_s27 + $0xc8] sm:$0xff] %v2521_v49  ;;  %v2523_v21 = vadd.f32 %v2061_v4, %v3625_v52 }
 0x327   : > { %2180 = vst [vmem:[%s3631_s27 + $0xd0] sm:$0xff] %v2522_v3 }
 0x328   : > { %2181 = vst [vmem:[%s3631_s27 + $0xd8] sm:$0xff] %v2523_v21 }
 0x32a   : > { %v2065_v22 = vpop.f32.mrb[28].mxu0 }
 0x32b   : > { %v2524_v31 = vadd.f32 %v2065_v22, %v3621_v46  ;;  %v2067_v32 = vpop.f32.mrb[29].mxu0 }
 0x32c   : > { %v2525_v36 = vadd.f32 %v2067_v32, %v3625_v52  ;;  %v2069_v37 = vpop.f32.mrb[30].mxu0 }
 0x32d   : > { %2182 = vst [vmem:[%s3631_s27 + $0xe0] sm:$0xff] %v2524_v31  ;;  %v2526_v38 = vadd.f32 %v2069_v37, %v3621_v46  ;;  %v2071_v39 = vpop.f32.mrb[31].mxu0 }
 0x32e   : > { %2183 = vst [vmem:[%s3631_s27 + $0xe8] sm:$0xff] %v2525_v36  ;;  %v2527_v41 = vadd.f32 %v2071_v39, %v3625_v52 }
 0x32f   : > { %2184 = vst [vmem:[%s3631_s27 + $0xf0] sm:$0xff] %v2526_v38 }
 0x330   : > { %2185 = vst [vmem:[%s3631_s27 + $0xf8] sm:$0xff] %v2527_v41 }
 0x332   : > { %v2075_v43 = vpop.f32.mrb[32].mxu0 }
 0x333   : > { %v2528_v27 = vadd.f32 %v2075_v43, %v3621_v46  ;;  %v2077_v44 = vpop.f32.mrb[33].mxu0 }
 0x334   : > { %v2529_v40 = vadd.f32 %v2077_v44, %v3625_v52  ;;  %v2079_v42 = vpop.f32.mrb[34].mxu0 }
 0x335   : > { %2186 = vst [vmem:[%s3631_s27 + $0x100] sm:$0xff] %v2528_v27  ;;  %v2530_v53 = vadd.f32 %v2079_v42, %v3621_v46  ;;  %v2081_v28 = vpop.f32.mrb[35].mxu0 }
 0x336   : > { %2187 = vst [vmem:[%s3631_s27 + $0x108] sm:$0xff] %v2529_v40  ;;  %v2531_v45 = vadd.f32 %v2081_v28, %v3625_v52 }
 0x337   : > { %2188 = vst [vmem:[%s3631_s27 + $0x110] sm:$0xff] %v2530_v53 }
 0x338   : > { %2189 = vst [vmem:[%s3631_s27 + $0x118] sm:$0xff] %v2531_v45 }
 0x33a   : > { %v2085_v47 = vpop.f32.mrb[36].mxu0 }
 0x33b   : > { %v2532_v48 = vadd.f32 %v2085_v47, %v3621_v46  ;;  %v2087_v54 = vpop.f32.mrb[37].mxu0 }
 0x33c   : > { %v2533_v55 = vadd.f32 %v2087_v54, %v3625_v52  ;;  %v2089_v56 = vpop.f32.mrb[38].mxu0 }
 0x33d   : > { %2190 = vst [vmem:[%s3631_s27 + $0x120] sm:$0xff] %v2532_v48  ;;  %v2534_v57 = vadd.f32 %v2089_v56, %v3621_v46  ;;  %v2091_v61 = vpop.f32.mrb[39].mxu0 }
 0x33e   : > { %2191 = vst [vmem:[%s3631_s27 + $0x128] sm:$0xff] %v2533_v55  ;;  %v2535_v58 = vadd.f32 %v2091_v61, %v3625_v52 }
 0x33f   : > { %2192 = vst [vmem:[%s3631_s27 + $0x130] sm:$0xff] %v2534_v57 }
 0x340   : > { %2193 = vst [vmem:[%s3631_s27 + $0x138] sm:$0xff] %v2535_v58 }
 0x342   : > { %v2095_v59 = vpop.f32.mrb[40].mxu0 }
 0x343   : > { %v2536_v63 = vadd.f32 %v2095_v59, %v3621_v46  ;;  %v2097_v60 = vpop.f32.mrb[41].mxu0 }
 0x344   : > { %v2537_v62 = vadd.f32 %v2097_v60, %v3625_v52  ;;  %v2099_v0 = vpop.f32.mrb[42].mxu0 }
 0x345   : > { %2194 = vst [vmem:[%s3631_s27 + $0x140] sm:$0xff] %v2536_v63  ;;  %v2538_v1 = vadd.f32 %v2099_v0, %v3621_v46  ;;  %v2101_v51 = vpop.f32.mrb[43].mxu0 }
 0x346   : > { %2195 = vst [vmem:[%s3631_s27 + $0x148] sm:$0xff] %v2537_v62  ;;  %v2539_v35 = vadd.f32 %v2101_v51, %v3625_v52 }
 0x347   : > { %2196 = vst [vmem:[%s3631_s27 + $0x150] sm:$0xff] %v2538_v1 }
 0x348   : > { %2197 = vst [vmem:[%s3631_s27 + $0x158] sm:$0xff] %v2539_v35 }
 0x34a   : > { %v2105_v2 = vpop.f32.mrb[44].mxu0 }
 0x34b   : > { %v2540_v5 = vadd.f32 %v2105_v2, %v3621_v46  ;;  %v2107_v8 = vpop.f32.mrb[45].mxu0 }
 0x34c   : > { %v2541_v9 = vadd.f32 %v2107_v8, %v3625_v52  ;;  %v2109_v11 = vpop.f32.mrb[46].mxu0 }
 0x34d   : > { %2198 = vst [vmem:[%s3631_s27 + $0x160] sm:$0xff] %v2540_v5  ;;  %v2542_v10 = vadd.f32 %v2109_v11, %v3621_v46  ;;  %v2111_v12 = vpop.f32.mrb[47].mxu0 }
 0x34e   : > { %2199 = vst [vmem:[%s3631_s27 + $0x168] sm:$0xff] %v2541_v9  ;;  %v2543_v13 = vadd.f32 %v2111_v12, %v3625_v52 }
 0x34f   : > { %2200 = vst [vmem:[%s3631_s27 + $0x170] sm:$0xff] %v2542_v10 }
 0x350   : > { %2201 = vst [vmem:[%s3631_s27 + $0x178] sm:$0xff] %v2543_v13 }
 0x352   : > { %v2115_v14 = vpop.f32.mrb[48].mxu0 }
 0x353   : > { %v2544_v16 = vadd.f32 %v2115_v14, %v3621_v46  ;;  %v2117_v23 = vpop.f32.mrb[49].mxu0 }
 0x354   : > { %v2545_v24 = vadd.f32 %v2117_v23, %v3625_v52  ;;  %v2119_v25 = vpop.f32.mrb[50].mxu0 }
 0x355   : > { %2202 = vst [vmem:[%s3631_s27 + $0x180] sm:$0xff] %v2544_v16  ;;  %v2546_v26 = vadd.f32 %v2119_v25, %v3621_v46  ;;  %v2121_v29 = vpop.f32.mrb[51].mxu0 }
 0x356   : > { %2203 = vst [vmem:[%s3631_s27 + $0x188] sm:$0xff] %v2545_v24  ;;  %v2547_v30 = vadd.f32 %v2121_v29, %v3625_v52 }
 0x357   : > { %2204 = vst [vmem:[%s3631_s27 + $0x190] sm:$0xff] %v2546_v26 }
 0x358   : > { %2205 = vst [vmem:[%s3631_s27 + $0x198] sm:$0xff] %v2547_v30 }
 0x35a   : > { %v2125_v15 = vpop.f32.mrb[52].mxu0 }
 0x35b   : > { %v2548_v6 = vadd.f32 %v2125_v15, %v3621_v46  ;;  %v2127_v7 = vpop.f32.mrb[53].mxu0 }
 0x35c   : > { %v2549_v19 = vadd.f32 %v2127_v7, %v3625_v52  ;;  %v2129_v20 = vpop.f32.mrb[54].mxu0 }
 0x35d   : > { %2206 = vst [vmem:[%s3631_s27 + $0x1a0] sm:$0xff] %v2548_v6  ;;  %v2550_v17 = vadd.f32 %v2129_v20, %v3621_v46  ;;  %v2131_v33 = vpop.f32.mrb[55].mxu0 }
 0x35e   : > { %2207 = vst [vmem:[%s3631_s27 + $0x1a8] sm:$0xff] %v2549_v19  ;;  %v2551_v18 = vadd.f32 %v2131_v33, %v3625_v52 }
 0x35f   : > { %2208 = vst [vmem:[%s3631_s27 + $0x1b0] sm:$0xff] %v2550_v17 }
 0x360   : > { %2209 = vst [vmem:[%s3631_s27 + $0x1b8] sm:$0xff] %v2551_v18 }
 0x362   : > { %v2135_v34 = vpop.f32.mrb[56].mxu0 }
 0x363   : > { %v2552_v49 = vadd.f32 %v2135_v34, %v3621_v46  ;;  %v2137_v50 = vpop.f32.mrb[57].mxu0 }
 0x364   : > { %v2553_v3 = vadd.f32 %v2137_v50, %v3625_v52  ;;  %v2139_v4 = vpop.f32.mrb[58].mxu0 }
 0x365   : > { %2210 = vst [vmem:[%s3631_s27 + $0x1c0] sm:$0xff] %v2552_v49  ;;  %v2554_v21 = vadd.f32 %v2139_v4, %v3621_v46  ;;  %v2141_v22 = vpop.f32.mrb[59].mxu0 }
 0x366   : > { %2211 = vst [vmem:[%s3631_s27 + $0x1c8] sm:$0xff] %v2553_v3  ;;  %v2555_v31 = vadd.f32 %v2141_v22, %v3625_v52 }
 0x367   : > { %2212 = vst [vmem:[%s3631_s27 + $0x1d0] sm:$0xff] %v2554_v21 }
 0x368   : > { %2213 = vst [vmem:[%s3631_s27 + $0x1d8] sm:$0xff] %v2555_v31 }
 0x36a   : > { %v2145_v32 = vpop.f32.mrb[60].mxu0  ;;  %2225 = sbr.rel (!%p3843_p9) target bundleno = 909 (0x38d), region = 56 }
 0x36b   : > { %v2556_v36 = vadd.f32 %v2145_v32, %v3621_v46  ;;  %v2147_v37 = vpop.f32.mrb[61].mxu0 }
 0x36c   : > { %v2557_v38 = vadd.f32 %v2147_v37, %v3625_v52  ;;  %v2149_v39 = vpop.f32.mrb[62].mxu0 }
 0x36d   : > { %2214 = vst [vmem:[%s3631_s27 + $0x1e0] sm:$0xff] %v2556_v36  ;;  %v2558_v41 = vadd.f32 %v2149_v39, %v3621_v46  ;;  %v2151_v43 = vpop.f32.mrb[63].mxu0 }
 0x36e   : > { %2215 = vst [vmem:[%s3631_s27 + $0x1e8] sm:$0xff] %v2557_v38  ;;  %v2559_v27 = vadd.f32 %v2151_v43, %v3625_v52 }
 0x36f   : > { %2216 = vst [vmem:[%s3631_s27 + $0x1f0] sm:$0xff] %v2558_v41 }
 0x370   : > { %2217 = vst [vmem:[%s3631_s27 + $0x1f8] sm:$0xff] %v2559_v27 }
 0x371   : > { %s3853_s12 = smov (!%p2228_p10, %s2227_s12), 32 }
 0x372   : > { %s3763_s25 = sshll.u32 %s3853_s12, 8 }
 0x373   : > { %s2233_s28 = ssub.s32 8192, %s3763_s25 }
 0x374   : > { %2234 = vsyncadd %s2219_s8, %s2233_s28  ;;  %p2483_p1 = scmp.ne.s32.totalorder %s3763_s25, 0  ;;  %s2495_s30 = sshll.u32 %s3103_s22, 13 }
 0x375   : > { %s3773_s11 = scalar_lea.hbm %s3827_s5, %s2495_s30  ;;  %s2240_s14 = sshll.u32 %s3631_s27, 4  ;;  %s3776_s14 = int_to_ptr.vmem [resolvable:$true] %s2240_s14 }
 0x376   : > { %s2968_s15 = scalar_lea.vmem %s3776_s14, %s3763_s25  ;;  %s3049_s16 = smov [#allocation8]  }
 0x377   : > { %p2969_p3 = scmp.ne.s32.totalorder %s3776_s14, %s2968_s15  ;;  %s2972_s29 = sshll.u32 %s3049_s16, 4  ;;  %s2973_s29 = int_to_ptr.vmem [resolvable:$false] %s2972_s29 }
 0x378   : > { %s2974_s22 = scalar_lea.vmem %s2973_s29, 16384  ;;  %p2975_p11 = scmp.lt.s32.totalorder %s3776_s14, %s2973_s29 }
 0x379   : > { %p2970_p5 = pnand %p2969_p3, %p2483_p1  ;;  %p2976_p13 = scmp.lt.s32.totalorder %s2974_s22, %s2968_s15 }
 0x37b   : > { %p2971_p6 = pneg %p2970_p5  ;;  %p2977_p0 = por %p2976_p13, %p2975_p11 }
 0x37d   : > { %p2978_p12 = pnand %p2977_p0, %p2971_p6 }
 0x37f   : > { %2981 = shalt.err (!%p2978_p12)
}
 0x380   : > { %s2982_s7 = scalar_lea.hbm %s3773_s11, %s3763_s25  ;;  %s2986_s27 = scalar_lea.hbm %s3827_s5, 12288 }
 0x381   : > { %p2983_p7 = scmp.ne.s32.totalorder %s3773_s11, %s2982_s7  ;;  %p2987_p9 = scmp.lt.u32.totalorder %s3773_s11, %s3827_s5 }
 0x382   : > { %p2988_p10 = scmp.lt.u32.totalorder %s2986_s27, %s2982_s7  ;;  %p2990_p5 = scmp.lt.u32.totalorder %s2982_s7, %s3773_s11 }
 0x383   : > { %p2984_p2 = pnand %p2983_p7, %p2483_p1 }
 0x384   : > { %p2989_p3 = por %p2988_p10, %p2987_p9 }
 0x385   : > { %p2985_p8 = pneg %p2984_p2 }
 0x386   : > { %p2991_p6 = por %p2990_p5, %p2989_p3 }
 0x388   : > { %p2992_p11 = pnand %p2991_p6, %p2985_p8 }
 0x38a   : > { %2995 = shalt.err (!%p2992_p11)
}
 0x38b   : > { %s3050_s28 = smov 256   ;;  %s3051_s30 = smov 16  }
 0x38c   : > { %2246 = dma.vmem_to_hbm [thread:$0]  (%p2483_p1), %s3776_s14, %s3763_s25, %s3773_s11, %s2219_s8, %s3050_s28, %s3050_s28, %s3051_s30  }
 0x38d PF: > { %s2255_s26 = sand.u32 1, %s3026_s18   ;;  %p3844_p13 = scmp.ne.s32.totalorder %s3835_s6, 0 }
 0x38e   : > { %s2256_s9 = scalar_lea.sflag [#allocation4], %s2255_s26 }
 0x38f   : > { %p2642_p0 = pnand %p2336_p4, %p3844_p13 }
 0x391   : > { %3021 = dma.done.wait (!%p2642_p0), %s2256_s9, 8192  }
 0x392   : > { %3023 = vsyncadd (!%p2642_p0), %s2256_s9, 4294959104  ;;  %s3845_s15 = sld [smem:[#allocation12_spill]]  ;;  %p19_p12 = scmp.ge.s32.totalorder %s3107_s24, 4  }
 0x393   : > { %s3846_s18 = smov %s3030_s19  ;;  %s3847_s19 = smov %s3034_s20 }
 0x394   : > { %s3849_s21 = smov %s3107_s24  ;;  %21 = sbr.rel (!%p19_p12) target bundleno = 6 (0x6), region = 93 }
 0x398   : > { %s3848_s20 = smov %s3845_s15 }
 0x39b   :  { %2261 = vsyncpa [#allocation3], 1 }
 0x39c   :  { %2263 = vsyncpa [#allocation3 + $0x1], 1 }
 0x39d   :  { %2264 = vsyncpa [#allocation6], 1 }
 0x39e   :  { %2265 = vsyncpa [#allocation4], 1 }
 0x39f   :  { %2267 = vsyncpa [#allocation4 + $0x1], 1 }

</bundles_post_ra>
